<compile_context>
chip_gen: v5e
topology: v5e:2x2
jax: 0.10.0
libtpu: 0.0.40
codegen_flags: <defaults>
</compile_context>

<pallas_src>
import functools

import jax
import jax.numpy as jnp
from jax import lax
from jax.experimental import pallas as pl
from jax.experimental.pallas import tpu as pltpu

EPS = 1e-6          # layerNorm eps (annotated-transformer default)
NUM_HEADS = 4
NEG_BIG = 1e9       # large-negative additive mask (scores kept in f32)


# --------------------------- in-kernel helpers ------------------------------ #

def _layer_norm(x, a, b):
    # a*(x-mean)/(std+eps)+b with unbiased std (ddof=1), eps added to std (not var).
    d = x.shape[-1]
    mean = jnp.mean(x, axis=-1, keepdims=True)
    var = jnp.sum((x - mean) ** 2, axis=-1, keepdims=True) / jnp.float32(d - 1)
    return a * (x - mean) / (jnp.sqrt(var) + EPS) + b      # exact divide (LN feeds residuals)


def _softmax(scores):
    m = jnp.max(scores, axis=-1, keepdims=True)
    e = jnp.exp(scores - m)
    denom = jnp.sum(e, axis=-1, keepdims=True)
    return e * pl.reciprocal(denom, approx=True)            # EUP reciprocal (softmax only)


def _mha(q_ref, q_rows, q_col0, kv_ref, k_col0, v_col0,
         mask_bias, heads_ref, wo, bo, num_heads, dk, scale):
    """Multi-head attention.

    q_ref / kv_ref are bf16 VMEM scratch refs; per-head Q/K/V are lane-slices of the refs
    (no big materialized values). Head outputs are written contiguously into heads_ref and a
    single K=D out-projection is applied at the end.
    """
    for h in range(num_heads):                               # static, unrolled
        lo = h * dk
        qh = q_ref[q_rows, q_col0 + lo:q_col0 + lo + dk]     # (TQ,  dk) bf16
        kh = kv_ref[:, k_col0 + lo:k_col0 + lo + dk]         # (Skv, dk) bf16
        vh = kv_ref[:, v_col0 + lo:v_col0 + lo + dk]         # (Skv, dk) bf16
        s = lax.dot_general(qh, kh, (((1,), (1,)), ((), ())),
                            preferred_element_type=jnp.float32)          # (TQ, Skv) f32
        s = s * scale + mask_bias
        p = _softmax(s)
        head = jnp.dot(p.astype(jnp.bfloat16), vh,
                       preferred_element_type=jnp.float32)               # (TQ, dk) f32
        heads_ref[:, lo:lo + dk] = head.astype(jnp.bfloat16)
    # single (TQ, D) @ (D, D) output projection, contraction K = D
    return jnp.dot(heads_ref[...], wo, preferred_element_type=jnp.float32) + bo


# ------------------------------ fused kernel -------------------------------- #

def fused_block_kernel(x_ref, mem_ref, tgt_mask_ref, align_mask_ref,
                       ln1_a_ref, ln1_b_ref, ln2_a_ref, ln2_b_ref, ln3_a_ref, ln3_b_ref,
                       wqkv_s_ref, bqkv_s_ref, wo_s_ref, bo_s_ref,
                       wq_x_ref, bq_x_ref, wkv_x_ref, bkv_x_ref, wo_x_ref, bo_x_ref,
                       w1_ref, b1_ref, w2_ref, b2_ref,
                       o_ref,
                       qkv_self, kv_src, q_scr, heads_scr,
                       *, num_heads):
    S = x_ref.shape[1]
    D = x_ref.shape[2]
    TQ = o_ref.shape[1]
    dk = D // num_heads
    scale = 1.0 / jnp.sqrt(jnp.float32(dk))
    qi = pl.program_id(1)

    # ---- once per batch element: full-sequence self-attn Q/K/V and memory K/V -> VMEM scratch ----
    @pl.when(qi == 0)
    def _():
        x_full = x_ref[0].astype(jnp.float32)                                     # (S, D)
        h1 = _layer_norm(x_full, ln1_a_ref[...].astype(jnp.float32),
                         ln1_b_ref[...].astype(jnp.float32))
        qkv = jnp.dot(h1.astype(jnp.bfloat16), wqkv_s_ref[...],
                      preferred_element_type=jnp.float32) + bqkv_s_ref[...]       # (S, 3D)
        qkv_self[...] = qkv.astype(jnp.bfloat16)
        kv = jnp.dot(mem_ref[0].astype(jnp.bfloat16), wkv_x_ref[...],
                     preferred_element_type=jnp.float32) + bkv_x_ref[...]         # (Smem, 2D)
        kv_src[...] = kv.astype(jnp.bfloat16)

    # ---- per query tile ----
    q_start = pl.multiple_of(qi * TQ, TQ)
    x_t = x_ref[0, pl.ds(q_start, TQ), :].astype(jnp.float32)                     # (TQ, D)

    # additive mask biases (int8 0/1 -> 0 / -1e9), shared across heads
    tgt_bias = (tgt_mask_ref[0].astype(jnp.float32) - 1.0) * NEG_BIG              # (TQ, S)
    align_bias = (align_mask_ref[0].astype(jnp.float32) - 1.0) * NEG_BIG          # (TQ, Smem)

    # -- sub-block 1: pre-LN self attention + residual (dropout = identity) --
    attn1 = _mha(qkv_self, pl.ds(q_start, TQ), 0, qkv_self, D, 2 * D,
                 tgt_bias, heads_scr, wo_s_ref[...], bo_s_ref[...], num_heads, dk, scale)
    x_t = x_t + attn1

    # -- sub-block 2: pre-LN align (source) attention + residual --
    h2 = _layer_norm(x_t, ln2_a_ref[...].astype(jnp.float32),
                     ln2_b_ref[...].astype(jnp.float32))
    q2 = jnp.dot(h2.astype(jnp.bfloat16), wq_x_ref[...],
                 preferred_element_type=jnp.float32) + bq_x_ref[...]
    q_scr[...] = q2.astype(jnp.bfloat16)
    attn2 = _mha(q_scr, slice(None), 0, kv_src, 0, D,
                 align_bias, heads_scr, wo_x_ref[...], bo_x_ref[...], num_heads, dk, scale)
    x_t = x_t + attn2

    # -- sub-block 3: pre-LN feed-forward + residual --
    h3 = _layer_norm(x_t, ln3_a_ref[...].astype(jnp.float32),
                     ln3_b_ref[...].astype(jnp.float32))
    hidden = jnp.maximum(
        jnp.dot(h3.astype(jnp.bfloat16), w1_ref[...],
                preferred_element_type=jnp.float32) + b1_ref[...], 0.0)            # (TQ, D_FF)
    ff = jnp.dot(hidden.astype(jnp.bfloat16), w2_ref[...],
                 preferred_element_type=jnp.float32) + b2_ref[...]
    o_ref[0] = (x_t + ff).astype(o_ref.dtype)


# ------------------------------ host wrapper -------------------------------- #

def prepare_weights(params):
    """Fuse projections and cast matmul weights to bf16 ONCE (outside the per-call path)."""
    sa, xa, ff = params["self_attn"], params["src_attn"], params["ff"]
    bf = lambda w: w.astype(jnp.bfloat16)
    f32 = lambda w: w.astype(jnp.float32)
    return {
        "ln1_a": f32(params["ln1_a"]), "ln1_b": f32(params["ln1_b"]),
        "ln2_a": f32(params["ln2_a"]), "ln2_b": f32(params["ln2_b"]),
        "ln3_a": f32(params["ln3_a"]), "ln3_b": f32(params["ln3_b"]),
        "wqkv_s": bf(jnp.concatenate([sa["wq"], sa["wk"], sa["wv"]], axis=1)),   # (D, 3D)
        "bqkv_s": f32(jnp.concatenate([sa["bq"], sa["bk"], sa["bv"]], axis=1)),  # (1, 3D)
        "wo_s": bf(sa["wo"]), "bo_s": f32(sa["bo"]),
        "wq_x": bf(xa["wq"]), "bq_x": f32(xa["bq"]),
        "wkv_x": bf(jnp.concatenate([xa["wk"], xa["wv"]], axis=1)),              # (D, 2D)
        "bkv_x": f32(jnp.concatenate([xa["bk"], xa["bv"]], axis=1)),             # (1, 2D)
        "wo_x": bf(xa["wo"]), "bo_x": f32(xa["bo"]),
        "w1": bf(ff["w1"]), "b1": f32(ff["b1"]),
        "w2": bf(ff["w2"]), "b2": f32(ff["b2"]),
    }


def self_align_attention_forward(x, memory, align_mask, tgt_mask, w,
                                 num_heads=NUM_HEADS, tq=None,
                                 single_buffer_weights=True):
    B, S, D = x.shape
    Smem = memory.shape[1]
    D_FF = w["w1"].shape[1]

    # query-tile size: bounds scores / FFN hidden to O(TQ); full seq for tiny S
    if tq is None:
        tq = S if S <= 256 else 256
    if S % tq != 0:
        tq = S
    n_q = S // tq

    # masks shipped as int8 (4x less DMA than f32); no-op cast if caller already passes int8
    tgt_mask_i8 = tgt_mask.astype(jnp.int8)
    align_mask_i8 = align_mask.astype(jnp.int8)

    kernel = functools.partial(fused_block_kernel, num_heads=num_heads)

    def rep(shape):
        # weights: constant block index -> DMA'd once, resident across the whole grid;
        # single-buffered when supported (they never change, so double-buffering is pure waste)
        imap = lambda b, q, _n=len(shape): (0,) * _n
        if single_buffer_weights:
            return pl.BlockSpec(shape, imap, pipeline_mode=pl.Buffered(1))
        return pl.BlockSpec(shape, imap)

    in_specs = [
        pl.BlockSpec((1, S, D), lambda b, q: (b, 0, 0)),        # x (full seq, resident per batch)
        pl.BlockSpec((1, Smem, D), lambda b, q: (b, 0, 0)),     # memory
        pl.BlockSpec((1, tq, S), lambda b, q: (b, q, 0)),       # tgt_mask tile (int8)
        pl.BlockSpec((1, tq, Smem), lambda b, q: (b, q, 0)),    # align_mask tile (int8)
        rep((1, D)), rep((1, D)),                               # ln1 a/b
        rep((1, D)), rep((1, D)),                               # ln2 a/b
        rep((1, D)), rep((1, D)),                               # ln3 a/b
        rep((D, 3 * D)), rep((1, 3 * D)),                       # self-attn fused QKV (bf16 / f32)
        rep((D, D)), rep((1, D)),                               # self-attn out proj
        rep((D, D)), rep((1, D)),                               # src-attn Q proj
        rep((D, 2 * D)), rep((1, 2 * D)),                       # src-attn fused KV
        rep((D, D)), rep((1, D)),                               # src-attn out proj
        rep((D, D_FF)), rep((1, D_FF)),                         # ff w1/b1
        rep((D_FF, D)), rep((1, D)),                            # ff w2/b2
    ]

    # explicit scoped-VMEM limit sized from the actual footprint (+ headroom), clamped
    w_mult = 1 if single_buffer_weights else 2
    weight_bytes = sum(int(v.size) * v.dtype.itemsize for v in w.values()) * w_mult
    act_bytes = 2 * (S * D * 4 + Smem * D * 4 + tq * S + tq * Smem + tq * D * 4)  # double-buffered
    scratch_bytes = 2 * (S * 3 * D + Smem * 2 * D + 2 * tq * D)                    # bf16 scratch
    vmem_limit = int(min(max(weight_bytes + act_bytes + scratch_bytes + (8 << 20), 32 << 20),
                         100 << 20))

    return pl.pallas_call(
        kernel,
        out_shape=jax.ShapeDtypeStruct((B, S, D), x.dtype),
        grid=(B, n_q),
        in_specs=in_specs,
        out_specs=pl.BlockSpec((1, tq, D), lambda b, q: (b, q, 0)),
        scratch_shapes=[
            pltpu.VMEM((S, 3 * D), jnp.bfloat16),      # self-attn Q,K,V for the full sequence
            pltpu.VMEM((Smem, 2 * D), jnp.bfloat16),   # src-attn K,V from memory
            pltpu.VMEM((tq, D), jnp.bfloat16),         # src-attn Q tile
            pltpu.VMEM((tq, D), jnp.bfloat16),         # per-head outputs assembled before out-proj
        ],
        compiler_params=pltpu.CompilerParams(
            dimension_semantics=("parallel", "arbitrary"),   # batch parallel (megacore); q-tiles
            vmem_limit_bytes=vmem_limit),                    # reuse per-batch KV scratch -> arbitrary
    )(x, memory, tgt_mask_i8, align_mask_i8,
      w["ln1_a"], w["ln1_b"], w["ln2_a"], w["ln2_b"], w["ln3_a"], w["ln3_b"],
      w["wqkv_s"], w["bqkv_s"], w["wo_s"], w["bo_s"],
      w["wq_x"], w["bq_x"], w["wkv_x"], w["bkv_x"], w["wo_x"], w["bo_x"],
      w["w1"], w["b1"], w["w2"], w["b2"])


# ------------------------------ param init --------------------------------- #

def init_params(key, d_model, d_ff):
    ks = jax.random.split(key, 16)
    n = lambda k, shape, s=0.05: (s * jax.random.normal(k, shape)).astype(jnp.float32)

    def attn_params(k):
        kk = jax.random.split(k, 8)
        return {
            "wq": n(kk[0], (d_model, d_model)), "bq": n(kk[1], (1, d_model)),
            "wk": n(kk[2], (d_model, d_model)), "bk": n(kk[3], (1, d_model)),
            "wv": n(kk[4], (d_model, d_model)), "bv": n(kk[5], (1, d_model)),
            "wo": n(kk[6], (d_model, d_model)), "bo": n(kk[7], (1, d_model)),
        }

    return {
        "ln1_a": 1.0 + n(ks[0], (1, d_model), 0.1), "ln1_b": n(ks[1], (1, d_model), 0.1),
        "ln2_a": 1.0 + n(ks[2], (1, d_model), 0.1), "ln2_b": n(ks[3], (1, d_model), 0.1),
        "ln3_a": 1.0 + n(ks[4], (1, d_model), 0.1), "ln3_b": n(ks[5], (1, d_model), 0.1),
        "self_attn": attn_params(ks[6]),
        "src_attn": attn_params(ks[7]),
        "ff": {
            "w1": n(ks[8], (d_model, d_ff)), "b1": n(ks[9], (1, d_ff)),
            "w2": n(ks[10], (d_ff, d_model)), "b2": n(ks[11], (1, d_model)),
        },
    }


# ---------------------------------- main ------------------------------------ #

if __name__ == "__main__":
    B, S, S_MEM, D, D_FF = 2, 8, 8, 32, 64

    key = jax.random.PRNGKey(0)
    k_x, k_m, k_p = jax.random.split(key, 3)

    x = jax.random.normal(k_x, (B, S, D), dtype=jnp.float32)
    memory = jax.random.normal(k_m, (B, S_MEM, D), dtype=jnp.float32)

    # masks as int8 0/1 (1 = keep): causal tgt_mask; align_mask masks last 2 memory slots of batch 1
    tgt_mask = jnp.broadcast_to(
        jnp.tril(jnp.ones((S, S), dtype=jnp.int8))[None], (B, S, S))
    align_mask = jnp.ones((B, S, S_MEM), dtype=jnp.int8)
    align_mask = align_mask.at[1, :, S_MEM - 2:].set(0)

    params = init_params(k_p, D, D_FF)
    weights = prepare_weights(params)   # fusion + bf16 cast done ONCE, outside the call path

    fwd = jax.jit(functools.partial(self_align_attention_forward,
                                    single_buffer_weights=True))
    try:
        out = jax.block_until_ready(fwd(x, memory, align_mask, tgt_mask, weights))
    except Exception:
        # pipeline_mode=pl.Buffered(1) not supported by this jax/Mosaic build -> default buffering
        fwd = jax.jit(functools.partial(self_align_attention_forward,
                                        single_buffer_weights=False))
        out = jax.block_until_ready(fwd(x, memory, align_mask, tgt_mask, weights))

    assert out.shape == (B, S, D) and out.dtype == jnp.float32
    assert bool(jnp.all(jnp.isfinite(out)))
    print("KERNEL_OK")
</pallas_src>

<mosaic_0001>
module attributes {stable_mosaic.version = 11 : i64} {
  func.func @fused_block_kernel(%arg0: i32, %arg1: i32, %arg2: memref<1x8x32xf32, #tpu.memory_space<vmem>>, %arg3: memref<1x8x32xf32, #tpu.memory_space<vmem>>, %arg4: memref<1x8x8xi8, #tpu.memory_space<vmem>>, %arg5: memref<1x8x8xi8, #tpu.memory_space<vmem>>, %arg6: memref<1x32xf32, #tpu.memory_space<vmem>>, %arg7: memref<1x32xf32, #tpu.memory_space<vmem>>, %arg8: memref<1x32xf32, #tpu.memory_space<vmem>>, %arg9: memref<1x32xf32, #tpu.memory_space<vmem>>, %arg10: memref<1x32xf32, #tpu.memory_space<vmem>>, %arg11: memref<1x32xf32, #tpu.memory_space<vmem>>, %arg12: memref<32x96xbf16, #tpu.memory_space<vmem>>, %arg13: memref<1x96xf32, #tpu.memory_space<vmem>>, %arg14: memref<32x32xbf16, #tpu.memory_space<vmem>>, %arg15: memref<1x32xf32, #tpu.memory_space<vmem>>, %arg16: memref<32x32xbf16, #tpu.memory_space<vmem>>, %arg17: memref<1x32xf32, #tpu.memory_space<vmem>>, %arg18: memref<32x64xbf16, #tpu.memory_space<vmem>>, %arg19: memref<1x64xf32, #tpu.memory_space<vmem>>, %arg20: memref<32x32xbf16, #tpu.memory_space<vmem>>, %arg21: memref<1x32xf32, #tpu.memory_space<vmem>>, %arg22: memref<32x64xbf16, #tpu.memory_space<vmem>>, %arg23: memref<1x64xf32, #tpu.memory_space<vmem>>, %arg24: memref<64x32xbf16, #tpu.memory_space<vmem>>, %arg25: memref<1x32xf32, #tpu.memory_space<vmem>>, %arg26: memref<1x8x32xf32, #tpu.memory_space<vmem>>, %arg27: memref<8x96xbf16, #tpu.memory_space<vmem>>, %arg28: memref<8x64xbf16, #tpu.memory_space<vmem>>, %arg29: memref<8x32xbf16, #tpu.memory_space<vmem>>, %arg30: memref<8x32xbf16, #tpu.memory_space<vmem>>) attributes {dimension_semantics = [#tpu.dimension_semantics<parallel>, #tpu.dimension_semantics<arbitrary>], iteration_bounds = array<i64: 2, 1>, scalar_prefetch = 0 : i64, scratch_operands = 4 : i64, tpu.core_type = #tpu.core_type<tc>, window_params = [{transform_indices = @transform_0, window_bounds = array<i64: 1, 8, 32>}, {transform_indices = @transform_1, window_bounds = array<i64: 1, 8, 32>}, {transform_indices = @transform_2, window_bounds = array<i64: 1, 8, 8>}, {transform_indices = @transform_3, window_bounds = array<i64: 1, 8, 8>}, {pipeline_mode = #tpu.pipeline_mode<synchronous>, transform_indices = @transform_4, window_bounds = array<i64: 1, 32>}, {pipeline_mode = #tpu.pipeline_mode<synchronous>, transform_indices = @transform_5, window_bounds = array<i64: 1, 32>}, {pipeline_mode = #tpu.pipeline_mode<synchronous>, transform_indices = @transform_6, window_bounds = array<i64: 1, 32>}, {pipeline_mode = #tpu.pipeline_mode<synchronous>, transform_indices = @transform_7, window_bounds = array<i64: 1, 32>}, {pipeline_mode = #tpu.pipeline_mode<synchronous>, transform_indices = @transform_8, window_bounds = array<i64: 1, 32>}, {pipeline_mode = #tpu.pipeline_mode<synchronous>, transform_indices = @transform_9, window_bounds = array<i64: 1, 32>}, {pipeline_mode = #tpu.pipeline_mode<synchronous>, transform_indices = @transform_10, window_bounds = array<i64: 32, 96>}, {pipeline_mode = #tpu.pipeline_mode<synchronous>, transform_indices = @transform_11, window_bounds = array<i64: 1, 96>}, {pipeline_mode = #tpu.pipeline_mode<synchronous>, transform_indices = @transform_12, window_bounds = array<i64: 32, 32>}, {pipeline_mode = #tpu.pipeline_mode<synchronous>, transform_indices = @transform_13, window_bounds = array<i64: 1, 32>}, {pipeline_mode = #tpu.pipeline_mode<synchronous>, transform_indices = @transform_14, window_bounds = array<i64: 32, 32>}, {pipeline_mode = #tpu.pipeline_mode<synchronous>, transform_indices = @transform_15, window_bounds = array<i64: 1, 32>}, {pipeline_mode = #tpu.pipeline_mode<synchronous>, transform_indices = @transform_16, window_bounds = array<i64: 32, 64>}, {pipeline_mode = #tpu.pipeline_mode<synchronous>, transform_indices = @transform_17, window_bounds = array<i64: 1, 64>}, {pipeline_mode = #tpu.pipeline_mode<synchronous>, transform_indices = @transform_18, window_bounds = array<i64: 32, 32>}, {pipeline_mode = #tpu.pipeline_mode<synchronous>, transform_indices = @transform_19, window_bounds = array<i64: 1, 32>}, {pipeline_mode = #tpu.pipeline_mode<synchronous>, transform_indices = @transform_20, window_bounds = array<i64: 32, 64>}, {pipeline_mode = #tpu.pipeline_mode<synchronous>, transform_indices = @transform_21, window_bounds = array<i64: 1, 64>}, {pipeline_mode = #tpu.pipeline_mode<synchronous>, transform_indices = @transform_22, window_bounds = array<i64: 64, 32>}, {pipeline_mode = #tpu.pipeline_mode<synchronous>, transform_indices = @transform_23, window_bounds = array<i64: 1, 32>}, {transform_indices = @transform_24, window_bounds = array<i64: 1, 8, 32>}]} {
    %cst = arith.constant 8.000000e+00 : f32
    %0 = math.sqrt %cst : f32
    %cst_0 = arith.constant 1.000000e+00 : f32
    %1 = arith.divf %cst_0, %0 : f32
    %c0_i32 = arith.constant 0 : i32
    %2 = arith.cmpi eq, %arg1, %c0_i32 : i32
    %3 = arith.extui %2 : i1 to i32
    %c0_i32_1 = arith.constant 0 : i32
    %4 = arith.cmpi ne, %3, %c0_i32_1 : i32
    scf.if %4 {
      %c0_147 = arith.constant 0 : index
      %c0_148 = arith.constant 0 : index
      %c0_149 = arith.constant 0 : index
      %284 = vector.load %arg2[%c0_147, %c0_148, %c0_149] : memref<1x8x32xf32, #tpu.memory_space<vmem>>, vector<1x8x32xf32>
      %285 = vector.shape_cast %284 : vector<1x8x32xf32> to vector<8x32xf32>
      %c0_150 = arith.constant 0 : index
      %c0_151 = arith.constant 0 : index
      %286 = vector.load %arg6[%c0_150, %c0_151] : memref<1x32xf32, #tpu.memory_space<vmem>>, vector<1x32xf32>
      %c0_152 = arith.constant 0 : index
      %c0_153 = arith.constant 0 : index
      %287 = vector.load %arg7[%c0_152, %c0_153] : memref<1x32xf32, #tpu.memory_space<vmem>>, vector<1x32xf32>
      %cst_154 = arith.constant dense<0.000000e+00> : vector<8xf32>
      %288 = vector.multi_reduction <add>, %285, %cst_154 [1] : vector<8x32xf32> to vector<8xf32>
      %289 = vector.shape_cast %288 : vector<8xf32> to vector<8x1xf32>
      %cst_155 = arith.constant 3.200000e+01 : f32
      %290 = vector.broadcast %cst_155 : f32 to vector<8x1xf32>
      %291 = arith.divf %289, %290 : vector<8x1xf32>
      %292 = vector.broadcast %291 : vector<8x1xf32> to vector<8x32xf32>
      %293 = arith.subf %285, %292 : vector<8x32xf32>
      %294 = arith.mulf %293, %293 : vector<8x32xf32>
      %cst_156 = arith.constant dense<0.000000e+00> : vector<8xf32>
      %295 = vector.multi_reduction <add>, %294, %cst_156 [1] : vector<8x32xf32> to vector<8xf32>
      %296 = vector.shape_cast %295 : vector<8xf32> to vector<8x1xf32>
      %cst_157 = arith.constant 3.100000e+01 : f32
      %297 = vector.broadcast %cst_157 : f32 to vector<8x1xf32>
      %298 = arith.divf %296, %297 : vector<8x1xf32>
      %299 = vector.broadcast %291 : vector<8x1xf32> to vector<8x32xf32>
      %300 = arith.subf %285, %299 : vector<8x32xf32>
      %301 = vector.broadcast %286 : vector<1x32xf32> to vector<8x32xf32>
      %302 = arith.mulf %301, %300 : vector<8x32xf32>
      %303 = math.sqrt %298 : vector<8x1xf32>
      %cst_158 = arith.constant 9.99999997E-7 : f32
      %304 = vector.broadcast %cst_158 : f32 to vector<8x1xf32>
      %305 = arith.addf %303, %304 : vector<8x1xf32>
      %306 = vector.broadcast %305 : vector<8x1xf32> to vector<8x32xf32>
      %307 = arith.divf %302, %306 : vector<8x32xf32>
      %308 = vector.broadcast %287 : vector<1x32xf32> to vector<8x32xf32>
      %309 = arith.addf %307, %308 : vector<8x32xf32>
      %310 = arith.truncf %309 : vector<8x32xf32> to vector<8x32xbf16>
      %c0_159 = arith.constant 0 : index
      %c0_160 = arith.constant 0 : index
      %311 = vector.load %arg12[%c0_159, %c0_160] : memref<32x96xbf16, #tpu.memory_space<vmem>>, vector<32x96xbf16>
      %cst_161 = arith.constant dense<0.000000e+00> : vector<8x96xf32>
      %312 = tpu.matmul %310, %311, %cst_161 {dimension_numbers = #tpu.dot_dimension_numbers<[1], [0], [0], [1], [0, 0, 1, 1], [], []>} : vector<8x32xbf16>, vector<32x96xbf16>, vector<8x96xf32> -> vector<8x96xf32>
      %c0_162 = arith.constant 0 : index
      %c0_163 = arith.constant 0 : index
      %313 = vector.load %arg13[%c0_162, %c0_163] : memref<1x96xf32, #tpu.memory_space<vmem>>, vector<1x96xf32>
      %314 = vector.broadcast %313 : vector<1x96xf32> to vector<8x96xf32>
      %315 = arith.addf %312, %314 : vector<8x96xf32>
      %316 = arith.truncf %315 : vector<8x96xf32> to vector<8x96xbf16>
      %c0_164 = arith.constant 0 : index
      %c0_165 = arith.constant 0 : index
      %317 = vector.load %arg27[%c0_164, %c0_165] : memref<8x96xbf16, #tpu.memory_space<vmem>>, vector<8x96xbf16>
      tpu.vector_store %arg27[%c0_164, %c0_165], %316 {strides = array<i32>} : memref<8x96xbf16, #tpu.memory_space<vmem>>, vector<8x96xbf16>,
      %c0_166 = arith.constant 0 : index
      %c0_167 = arith.constant 0 : index
      %c0_168 = arith.constant 0 : index
      %318 = vector.load %arg3[%c0_166, %c0_167, %c0_168] : memref<1x8x32xf32, #tpu.memory_space<vmem>>, vector<1x8x32xf32>
      %319 = vector.shape_cast %318 : vector<1x8x32xf32> to vector<8x32xf32>
      %320 = arith.truncf %319 : vector<8x32xf32> to vector<8x32xbf16>
      %c0_169 = arith.constant 0 : index
      %c0_170 = arith.constant 0 : index
      %321 = vector.load %arg18[%c0_169, %c0_170] : memref<32x64xbf16, #tpu.memory_space<vmem>>, vector<32x64xbf16>
      %cst_171 = arith.constant dense<0.000000e+00> : vector<8x64xf32>
      %322 = tpu.matmul %320, %321, %cst_171 {dimension_numbers = #tpu.dot_dimension_numbers<[1], [0], [0], [1], [0, 0, 1, 1], [], []>} : vector<8x32xbf16>, vector<32x64xbf16>, vector<8x64xf32> -> vector<8x64xf32>
      %c0_172 = arith.constant 0 : index
      %c0_173 = arith.constant 0 : index
      %323 = vector.load %arg19[%c0_172, %c0_173] : memref<1x64xf32, #tpu.memory_space<vmem>>, vector<1x64xf32>
      %324 = vector.broadcast %323 : vector<1x64xf32> to vector<8x64xf32>
      %325 = arith.addf %322, %324 : vector<8x64xf32>
      %326 = arith.truncf %325 : vector<8x64xf32> to vector<8x64xbf16>
      %c0_174 = arith.constant 0 : index
      %c0_175 = arith.constant 0 : index
      %327 = vector.load %arg28[%c0_174, %c0_175] : memref<8x64xbf16, #tpu.memory_space<vmem>>, vector<8x64xbf16>
      tpu.vector_store %arg28[%c0_174, %c0_175], %326 {strides = array<i32>} : memref<8x64xbf16, #tpu.memory_space<vmem>>, vector<8x64xbf16>,
    } else {
    }
    %c8_i32 = arith.constant 8 : i32
    %5 = arith.muli %arg1, %c8_i32 : i32
    %6 = tpu.assume_multiple %5, 8 : i32
    %c0 = arith.constant 0 : index
    %7 = arith.index_cast %6 : i32 to index
    %c0_2 = arith.constant 0 : index
    %8 = vector.load %arg2[%c0, %7, %c0_2] : memref<1x8x32xf32, #tpu.memory_space<vmem>>, vector<1x8x32xf32>
    %9 = vector.shape_cast %8 : vector<1x8x32xf32> to vector<8x32xf32>
    %c0_3 = arith.constant 0 : index
    %c0_4 = arith.constant 0 : index
    %c0_5 = arith.constant 0 : index
    %10 = vector.load %arg4[%c0_3, %c0_4, %c0_5] : memref<1x8x8xi8, #tpu.memory_space<vmem>>, vector<1x8x8xi8>
    %11 = vector.shape_cast %10 : vector<1x8x8xi8> to vector<8x8xi8>
    %12 = arith.sitofp %11 : vector<8x8xi8> to vector<8x8xf32>
    %cst_6 = arith.constant 1.000000e+00 : f32
    %13 = vector.broadcast %cst_6 : f32 to vector<8x8xf32>
    %14 = arith.subf %12, %13 : vector<8x8xf32>
    %cst_7 = arith.constant 1.000000e+09 : f32
    %15 = vector.broadcast %cst_7 : f32 to vector<8x8xf32>
    %16 = arith.mulf %14, %15 : vector<8x8xf32>
    %c0_8 = arith.constant 0 : index
    %c0_9 = arith.constant 0 : index
    %c0_10 = arith.constant 0 : index
    %17 = vector.load %arg5[%c0_8, %c0_9, %c0_10] : memref<1x8x8xi8, #tpu.memory_space<vmem>>, vector<1x8x8xi8>
    %18 = vector.shape_cast %17 : vector<1x8x8xi8> to vector<8x8xi8>
    %19 = arith.sitofp %18 : vector<8x8xi8> to vector<8x8xf32>
    %cst_11 = arith.constant 1.000000e+00 : f32
    %20 = vector.broadcast %cst_11 : f32 to vector<8x8xf32>
    %21 = arith.subf %19, %20 : vector<8x8xf32>
    %cst_12 = arith.constant 1.000000e+09 : f32
    %22 = vector.broadcast %cst_12 : f32 to vector<8x8xf32>
    %23 = arith.mulf %21, %22 : vector<8x8xf32>
    %c0_13 = arith.constant 0 : index
    %c0_14 = arith.constant 0 : index
    %24 = vector.load %arg14[%c0_13, %c0_14] : memref<32x32xbf16, #tpu.memory_space<vmem>>, vector<32x32xbf16>
    %c0_15 = arith.constant 0 : index
    %c0_16 = arith.constant 0 : index
    %25 = vector.load %arg15[%c0_15, %c0_16] : memref<1x32xf32, #tpu.memory_space<vmem>>, vector<1x32xf32>
    %26 = arith.index_cast %6 : i32 to index
    %c0_17 = arith.constant 0 : index
    %27 = vector.load %arg27[%26, %c0_17] : memref<8x96xbf16, #tpu.memory_space<vmem>>, vector<8x8xbf16>
    %c0_18 = arith.constant 0 : index
    %c32 = arith.constant 32 : index
    %28 = vector.load %arg27[%c0_18, %c32] : memref<8x96xbf16, #tpu.memory_space<vmem>>, vector<8x8xbf16>
    %c0_19 = arith.constant 0 : index
    %c64 = arith.constant 64 : index
    %29 = vector.load %arg27[%c0_19, %c64] : memref<8x96xbf16, #tpu.memory_space<vmem>>, vector<8x8xbf16>
    %cst_20 = arith.constant dense<0.000000e+00> : vector<8x8xf32>
    %30 = tpu.matmul %27, %28, %cst_20 {dimension_numbers = #tpu.dot_dimension_numbers<[1], [1], [0], [0], [0, 0, 1, 0], [], []>} : vector<8x8xbf16>, vector<8x8xbf16>, vector<8x8xf32> -> vector<8x8xf32>
    %31 = vector.broadcast %1 : f32 to vector<8x8xf32>
    %32 = arith.mulf %30, %31 : vector<8x8xf32>
    %33 = arith.addf %32, %16 : vector<8x8xf32>
    %cst_21 = arith.constant dense<0xFF800000> : vector<8xf32>
    %34 = vector.multi_reduction <maximumf>, %33, %cst_21 [1] : vector<8x8xf32> to vector<8xf32>
    %35 = vector.shape_cast %34 : vector<8xf32> to vector<8x1xf32>
    %36 = vector.broadcast %35 : vector<8x1xf32> to vector<8x8xf32>
    %37 = arith.subf %33, %36 : vector<8x8xf32>
    %38 = math.exp %37 : vector<8x8xf32>
    %cst_22 = arith.constant dense<0.000000e+00> : vector<8xf32>
    %39 = vector.multi_reduction <add>, %38, %cst_22 [1] : vector<8x8xf32> to vector<8xf32>
    %40 = vector.shape_cast %39 : vector<8xf32> to vector<8x1xf32>
    %41 = tpu.reciprocal %40 {approx = true} : vector<8x1xf32> -> vector<8x1xf32>
    %42 = vector.broadcast %41 : vector<8x1xf32> to vector<8x8xf32>
    %43 = arith.mulf %38, %42 : vector<8x8xf32>
    %44 = arith.truncf %43 : vector<8x8xf32> to vector<8x8xbf16>
    %cst_23 = arith.constant dense<0.000000e+00> : vector<8x8xf32>
    %45 = tpu.matmul %44, %29, %cst_23 {dimension_numbers = #tpu.dot_dimension_numbers<[1], [0], [0], [1], [0, 0, 1, 1], [], []>} : vector<8x8xbf16>, vector<8x8xbf16>, vector<8x8xf32> -> vector<8x8xf32>
    %46 = arith.truncf %45 : vector<8x8xf32> to vector<8x8xbf16>
    %c0_24 = arith.constant 0 : index
    %c0_25 = arith.constant 0 : index
    %47 = vector.load %arg30[%c0_24, %c0_25] : memref<8x32xbf16, #tpu.memory_space<vmem>>, vector<8x8xbf16>
    tpu.vector_store %arg30[%c0_24, %c0_25], %46 {strides = array<i32>} : memref<8x32xbf16, #tpu.memory_space<vmem>>, vector<8x8xbf16>,
    %48 = arith.index_cast %6 : i32 to index
    %c8 = arith.constant 8 : index
    %49 = vector.load %arg27[%48, %c8] : memref<8x96xbf16, #tpu.memory_space<vmem>>, vector<8x8xbf16>
    %c0_26 = arith.constant 0 : index
    %c40 = arith.constant 40 : index
    %50 = vector.load %arg27[%c0_26, %c40] : memref<8x96xbf16, #tpu.memory_space<vmem>>, vector<8x8xbf16>
    %c0_27 = arith.constant 0 : index
    %c72 = arith.constant 72 : index
    %51 = vector.load %arg27[%c0_27, %c72] : memref<8x96xbf16, #tpu.memory_space<vmem>>, vector<8x8xbf16>
    %cst_28 = arith.constant dense<0.000000e+00> : vector<8x8xf32>
    %52 = tpu.matmul %49, %50, %cst_28 {dimension_numbers = #tpu.dot_dimension_numbers<[1], [1], [0], [0], [0, 0, 1, 0], [], []>} : vector<8x8xbf16>, vector<8x8xbf16>, vector<8x8xf32> -> vector<8x8xf32>
    %53 = vector.broadcast %1 : f32 to vector<8x8xf32>
    %54 = arith.mulf %52, %53 : vector<8x8xf32>
    %55 = arith.addf %54, %16 : vector<8x8xf32>
    %cst_29 = arith.constant dense<0xFF800000> : vector<8xf32>
    %56 = vector.multi_reduction <maximumf>, %55, %cst_29 [1] : vector<8x8xf32> to vector<8xf32>
    %57 = vector.shape_cast %56 : vector<8xf32> to vector<8x1xf32>
    %58 = vector.broadcast %57 : vector<8x1xf32> to vector<8x8xf32>
    %59 = arith.subf %55, %58 : vector<8x8xf32>
    %60 = math.exp %59 : vector<8x8xf32>
    %cst_30 = arith.constant dense<0.000000e+00> : vector<8xf32>
    %61 = vector.multi_reduction <add>, %60, %cst_30 [1] : vector<8x8xf32> to vector<8xf32>
    %62 = vector.shape_cast %61 : vector<8xf32> to vector<8x1xf32>
    %63 = tpu.reciprocal %62 {approx = true} : vector<8x1xf32> -> vector<8x1xf32>
    %64 = vector.broadcast %63 : vector<8x1xf32> to vector<8x8xf32>
    %65 = arith.mulf %60, %64 : vector<8x8xf32>
    %66 = arith.truncf %65 : vector<8x8xf32> to vector<8x8xbf16>
    %cst_31 = arith.constant dense<0.000000e+00> : vector<8x8xf32>
    %67 = tpu.matmul %66, %51, %cst_31 {dimension_numbers = #tpu.dot_dimension_numbers<[1], [0], [0], [1], [0, 0, 1, 1], [], []>} : vector<8x8xbf16>, vector<8x8xbf16>, vector<8x8xf32> -> vector<8x8xf32>
    %68 = arith.truncf %67 : vector<8x8xf32> to vector<8x8xbf16>
    %c0_32 = arith.constant 0 : index
    %c8_33 = arith.constant 8 : index
    %69 = vector.load %arg30[%c0_32, %c8_33] : memref<8x32xbf16, #tpu.memory_space<vmem>>, vector<8x8xbf16>
    tpu.vector_store %arg30[%c0_32, %c8_33], %68 {strides = array<i32>} : memref<8x32xbf16, #tpu.memory_space<vmem>>, vector<8x8xbf16>,
    %70 = arith.index_cast %6 : i32 to index
    %c16 = arith.constant 16 : index
    %71 = vector.load %arg27[%70, %c16] : memref<8x96xbf16, #tpu.memory_space<vmem>>, vector<8x8xbf16>
    %c0_34 = arith.constant 0 : index
    %c48 = arith.constant 48 : index
    %72 = vector.load %arg27[%c0_34, %c48] : memref<8x96xbf16, #tpu.memory_space<vmem>>, vector<8x8xbf16>
    %c0_35 = arith.constant 0 : index
    %c80 = arith.constant 80 : index
    %73 = vector.load %arg27[%c0_35, %c80] : memref<8x96xbf16, #tpu.memory_space<vmem>>, vector<8x8xbf16>
    %cst_36 = arith.constant dense<0.000000e+00> : vector<8x8xf32>
    %74 = tpu.matmul %71, %72, %cst_36 {dimension_numbers = #tpu.dot_dimension_numbers<[1], [1], [0], [0], [0, 0, 1, 0], [], []>} : vector<8x8xbf16>, vector<8x8xbf16>, vector<8x8xf32> -> vector<8x8xf32>
    %75 = vector.broadcast %1 : f32 to vector<8x8xf32>
    %76 = arith.mulf %74, %75 : vector<8x8xf32>
    %77 = arith.addf %76, %16 : vector<8x8xf32>
    %cst_37 = arith.constant dense<0xFF800000> : vector<8xf32>
    %78 = vector.multi_reduction <maximumf>, %77, %cst_37 [1] : vector<8x8xf32> to vector<8xf32>
    %79 = vector.shape_cast %78 : vector<8xf32> to vector<8x1xf32>
    %80 = vector.broadcast %79 : vector<8x1xf32> to vector<8x8xf32>
    %81 = arith.subf %77, %80 : vector<8x8xf32>
    %82 = math.exp %81 : vector<8x8xf32>
    %cst_38 = arith.constant dense<0.000000e+00> : vector<8xf32>
    %83 = vector.multi_reduction <add>, %82, %cst_38 [1] : vector<8x8xf32> to vector<8xf32>
    %84 = vector.shape_cast %83 : vector<8xf32> to vector<8x1xf32>
    %85 = tpu.reciprocal %84 {approx = true} : vector<8x1xf32> -> vector<8x1xf32>
    %86 = vector.broadcast %85 : vector<8x1xf32> to vector<8x8xf32>
    %87 = arith.mulf %82, %86 : vector<8x8xf32>
    %88 = arith.truncf %87 : vector<8x8xf32> to vector<8x8xbf16>
    %cst_39 = arith.constant dense<0.000000e+00> : vector<8x8xf32>
    %89 = tpu.matmul %88, %73, %cst_39 {dimension_numbers = #tpu.dot_dimension_numbers<[1], [0], [0], [1], [0, 0, 1, 1], [], []>} : vector<8x8xbf16>, vector<8x8xbf16>, vector<8x8xf32> -> vector<8x8xf32>
    %90 = arith.truncf %89 : vector<8x8xf32> to vector<8x8xbf16>
    %c0_40 = arith.constant 0 : index
    %c16_41 = arith.constant 16 : index
    %91 = vector.load %arg30[%c0_40, %c16_41] : memref<8x32xbf16, #tpu.memory_space<vmem>>, vector<8x8xbf16>
    tpu.vector_store %arg30[%c0_40, %c16_41], %90 {strides = array<i32>} : memref<8x32xbf16, #tpu.memory_space<vmem>>, vector<8x8xbf16>,
    %92 = arith.index_cast %6 : i32 to index
    %c24 = arith.constant 24 : index
    %93 = vector.load %arg27[%92, %c24] : memref<8x96xbf16, #tpu.memory_space<vmem>>, vector<8x8xbf16>
    %c0_42 = arith.constant 0 : index
    %c56 = arith.constant 56 : index
    %94 = vector.load %arg27[%c0_42, %c56] : memref<8x96xbf16, #tpu.memory_space<vmem>>, vector<8x8xbf16>
    %c0_43 = arith.constant 0 : index
    %c88 = arith.constant 88 : index
    %95 = vector.load %arg27[%c0_43, %c88] : memref<8x96xbf16, #tpu.memory_space<vmem>>, vector<8x8xbf16>
    %cst_44 = arith.constant dense<0.000000e+00> : vector<8x8xf32>
    %96 = tpu.matmul %93, %94, %cst_44 {dimension_numbers = #tpu.dot_dimension_numbers<[1], [1], [0], [0], [0, 0, 1, 0], [], []>} : vector<8x8xbf16>, vector<8x8xbf16>, vector<8x8xf32> -> vector<8x8xf32>
    %97 = vector.broadcast %1 : f32 to vector<8x8xf32>
    %98 = arith.mulf %96, %97 : vector<8x8xf32>
    %99 = arith.addf %98, %16 : vector<8x8xf32>
    %cst_45 = arith.constant dense<0xFF800000> : vector<8xf32>
    %100 = vector.multi_reduction <maximumf>, %99, %cst_45 [1] : vector<8x8xf32> to vector<8xf32>
    %101 = vector.shape_cast %100 : vector<8xf32> to vector<8x1xf32>
    %102 = vector.broadcast %101 : vector<8x1xf32> to vector<8x8xf32>
    %103 = arith.subf %99, %102 : vector<8x8xf32>
    %104 = math.exp %103 : vector<8x8xf32>
    %cst_46 = arith.constant dense<0.000000e+00> : vector<8xf32>
    %105 = vector.multi_reduction <add>, %104, %cst_46 [1] : vector<8x8xf32> to vector<8xf32>
    %106 = vector.shape_cast %105 : vector<8xf32> to vector<8x1xf32>
    %107 = tpu.reciprocal %106 {approx = true} : vector<8x1xf32> -> vector<8x1xf32>
    %108 = vector.broadcast %107 : vector<8x1xf32> to vector<8x8xf32>
    %109 = arith.mulf %104, %108 : vector<8x8xf32>
    %110 = arith.truncf %109 : vector<8x8xf32> to vector<8x8xbf16>
    %cst_47 = arith.constant dense<0.000000e+00> : vector<8x8xf32>
    %111 = tpu.matmul %110, %95, %cst_47 {dimension_numbers = #tpu.dot_dimension_numbers<[1], [0], [0], [1], [0, 0, 1, 1], [], []>} : vector<8x8xbf16>, vector<8x8xbf16>, vector<8x8xf32> -> vector<8x8xf32>
    %112 = arith.truncf %111 : vector<8x8xf32> to vector<8x8xbf16>
    %c0_48 = arith.constant 0 : index
    %c24_49 = arith.constant 24 : index
    %113 = vector.load %arg30[%c0_48, %c24_49] : memref<8x32xbf16, #tpu.memory_space<vmem>>, vector<8x8xbf16>
    tpu.vector_store %arg30[%c0_48, %c24_49], %112 {strides = array<i32>} : memref<8x32xbf16, #tpu.memory_space<vmem>>, vector<8x8xbf16>,
    %c0_50 = arith.constant 0 : index
    %c0_51 = arith.constant 0 : index
    %114 = vector.load %arg30[%c0_50, %c0_51] : memref<8x32xbf16, #tpu.memory_space<vmem>>, vector<8x32xbf16>
    %cst_52 = arith.constant dense<0.000000e+00> : vector<8x32xf32>
    %115 = tpu.matmul %114, %24, %cst_52 {dimension_numbers = #tpu.dot_dimension_numbers<[1], [0], [0], [1], [0, 0, 1, 1], [], []>} : vector<8x32xbf16>, vector<32x32xbf16>, vector<8x32xf32> -> vector<8x32xf32>
    %116 = vector.broadcast %25 : vector<1x32xf32> to vector<8x32xf32>
    %117 = arith.addf %115, %116 : vector<8x32xf32>
    %118 = arith.addf %9, %117 : vector<8x32xf32>
    %c0_53 = arith.constant 0 : index
    %c0_54 = arith.constant 0 : index
    %119 = vector.load %arg8[%c0_53, %c0_54] : memref<1x32xf32, #tpu.memory_space<vmem>>, vector<1x32xf32>
    %c0_55 = arith.constant 0 : index
    %c0_56 = arith.constant 0 : index
    %120 = vector.load %arg9[%c0_55, %c0_56] : memref<1x32xf32, #tpu.memory_space<vmem>>, vector<1x32xf32>
    %cst_57 = arith.constant dense<0.000000e+00> : vector<8xf32>
    %121 = vector.multi_reduction <add>, %118, %cst_57 [1] : vector<8x32xf32> to vector<8xf32>
    %122 = vector.shape_cast %121 : vector<8xf32> to vector<8x1xf32>
    %cst_58 = arith.constant 3.200000e+01 : f32
    %123 = vector.broadcast %cst_58 : f32 to vector<8x1xf32>
    %124 = arith.divf %122, %123 : vector<8x1xf32>
    %125 = vector.broadcast %124 : vector<8x1xf32> to vector<8x32xf32>
    %126 = arith.subf %118, %125 : vector<8x32xf32>
    %127 = arith.mulf %126, %126 : vector<8x32xf32>
    %cst_59 = arith.constant dense<0.000000e+00> : vector<8xf32>
    %128 = vector.multi_reduction <add>, %127, %cst_59 [1] : vector<8x32xf32> to vector<8xf32>
    %129 = vector.shape_cast %128 : vector<8xf32> to vector<8x1xf32>
    %cst_60 = arith.constant 3.100000e+01 : f32
    %130 = vector.broadcast %cst_60 : f32 to vector<8x1xf32>
    %131 = arith.divf %129, %130 : vector<8x1xf32>
    %132 = vector.broadcast %124 : vector<8x1xf32> to vector<8x32xf32>
    %133 = arith.subf %118, %132 : vector<8x32xf32>
    %134 = vector.broadcast %119 : vector<1x32xf32> to vector<8x32xf32>
    %135 = arith.mulf %134, %133 : vector<8x32xf32>
    %136 = math.sqrt %131 : vector<8x1xf32>
    %cst_61 = arith.constant 9.99999997E-7 : f32
    %137 = vector.broadcast %cst_61 : f32 to vector<8x1xf32>
    %138 = arith.addf %136, %137 : vector<8x1xf32>
    %139 = vector.broadcast %138 : vector<8x1xf32> to vector<8x32xf32>
    %140 = arith.divf %135, %139 : vector<8x32xf32>
    %141 = vector.broadcast %120 : vector<1x32xf32> to vector<8x32xf32>
    %142 = arith.addf %140, %141 : vector<8x32xf32>
    %143 = arith.truncf %142 : vector<8x32xf32> to vector<8x32xbf16>
    %c0_62 = arith.constant 0 : index
    %c0_63 = arith.constant 0 : index
    %144 = vector.load %arg16[%c0_62, %c0_63] : memref<32x32xbf16, #tpu.memory_space<vmem>>, vector<32x32xbf16>
    %cst_64 = arith.constant dense<0.000000e+00> : vector<8x32xf32>
    %145 = tpu.matmul %143, %144, %cst_64 {dimension_numbers = #tpu.dot_dimension_numbers<[1], [0], [0], [1], [0, 0, 1, 1], [], []>} : vector<8x32xbf16>, vector<32x32xbf16>, vector<8x32xf32> -> vector<8x32xf32>
    %c0_65 = arith.constant 0 : index
    %c0_66 = arith.constant 0 : index
    %146 = vector.load %arg17[%c0_65, %c0_66] : memref<1x32xf32, #tpu.memory_space<vmem>>, vector<1x32xf32>
    %147 = vector.broadcast %146 : vector<1x32xf32> to vector<8x32xf32>
    %148 = arith.addf %145, %147 : vector<8x32xf32>
    %149 = arith.truncf %148 : vector<8x32xf32> to vector<8x32xbf16>
    %c0_67 = arith.constant 0 : index
    %c0_68 = arith.constant 0 : index
    %150 = vector.load %arg29[%c0_67, %c0_68] : memref<8x32xbf16, #tpu.memory_space<vmem>>, vector<8x32xbf16>
    tpu.vector_store %arg29[%c0_67, %c0_68], %149 {strides = array<i32>} : memref<8x32xbf16, #tpu.memory_space<vmem>>, vector<8x32xbf16>,
    %c0_69 = arith.constant 0 : index
    %c0_70 = arith.constant 0 : index
    %151 = vector.load %arg20[%c0_69, %c0_70] : memref<32x32xbf16, #tpu.memory_space<vmem>>, vector<32x32xbf16>
    %c0_71 = arith.constant 0 : index
    %c0_72 = arith.constant 0 : index
    %152 = vector.load %arg21[%c0_71, %c0_72] : memref<1x32xf32, #tpu.memory_space<vmem>>, vector<1x32xf32>
    %c0_73 = arith.constant 0 : index
    %c0_74 = arith.constant 0 : index
    %153 = vector.load %arg29[%c0_73, %c0_74] : memref<8x32xbf16, #tpu.memory_space<vmem>>, vector<8x8xbf16>
    %c0_75 = arith.constant 0 : index
    %c0_76 = arith.constant 0 : index
    %154 = vector.load %arg28[%c0_75, %c0_76] : memref<8x64xbf16, #tpu.memory_space<vmem>>, vector<8x8xbf16>
    %c0_77 = arith.constant 0 : index
    %c32_78 = arith.constant 32 : index
    %155 = vector.load %arg28[%c0_77, %c32_78] : memref<8x64xbf16, #tpu.memory_space<vmem>>, vector<8x8xbf16>
    %cst_79 = arith.constant dense<0.000000e+00> : vector<8x8xf32>
    %156 = tpu.matmul %153, %154, %cst_79 {dimension_numbers = #tpu.dot_dimension_numbers<[1], [1], [0], [0], [0, 0, 1, 0], [], []>} : vector<8x8xbf16>, vector<8x8xbf16>, vector<8x8xf32> -> vector<8x8xf32>
    %157 = vector.broadcast %1 : f32 to vector<8x8xf32>
    %158 = arith.mulf %156, %157 : vector<8x8xf32>
    %159 = arith.addf %158, %23 : vector<8x8xf32>
    %cst_80 = arith.constant dense<0xFF800000> : vector<8xf32>
    %160 = vector.multi_reduction <maximumf>, %159, %cst_80 [1] : vector<8x8xf32> to vector<8xf32>
    %161 = vector.shape_cast %160 : vector<8xf32> to vector<8x1xf32>
    %162 = vector.broadcast %161 : vector<8x1xf32> to vector<8x8xf32>
    %163 = arith.subf %159, %162 : vector<8x8xf32>
    %164 = math.exp %163 : vector<8x8xf32>
    %cst_81 = arith.constant dense<0.000000e+00> : vector<8xf32>
    %165 = vector.multi_reduction <add>, %164, %cst_81 [1] : vector<8x8xf32> to vector<8xf32>
    %166 = vector.shape_cast %165 : vector<8xf32> to vector<8x1xf32>
    %167 = tpu.reciprocal %166 {approx = true} : vector<8x1xf32> -> vector<8x1xf32>
    %168 = vector.broadcast %167 : vector<8x1xf32> to vector<8x8xf32>
    %169 = arith.mulf %164, %168 : vector<8x8xf32>
    %170 = arith.truncf %169 : vector<8x8xf32> to vector<8x8xbf16>
    %cst_82 = arith.constant dense<0.000000e+00> : vector<8x8xf32>
    %171 = tpu.matmul %170, %155, %cst_82 {dimension_numbers = #tpu.dot_dimension_numbers<[1], [0], [0], [1], [0, 0, 1, 1], [], []>} : vector<8x8xbf16>, vector<8x8xbf16>, vector<8x8xf32> -> vector<8x8xf32>
    %172 = arith.truncf %171 : vector<8x8xf32> to vector<8x8xbf16>
    %c0_83 = arith.constant 0 : index
    %c0_84 = arith.constant 0 : index
    %173 = vector.load %arg30[%c0_83, %c0_84] : memref<8x32xbf16, #tpu.memory_space<vmem>>, vector<8x8xbf16>
    tpu.vector_store %arg30[%c0_83, %c0_84], %172 {strides = array<i32>} : memref<8x32xbf16, #tpu.memory_space<vmem>>, vector<8x8xbf16>,
    %c0_85 = arith.constant 0 : index
    %c8_86 = arith.constant 8 : index
    %174 = vector.load %arg29[%c0_85, %c8_86] : memref<8x32xbf16, #tpu.memory_space<vmem>>, vector<8x8xbf16>
    %c0_87 = arith.constant 0 : index
    %c8_88 = arith.constant 8 : index
    %175 = vector.load %arg28[%c0_87, %c8_88] : memref<8x64xbf16, #tpu.memory_space<vmem>>, vector<8x8xbf16>
    %c0_89 = arith.constant 0 : index
    %c40_90 = arith.constant 40 : index
    %176 = vector.load %arg28[%c0_89, %c40_90] : memref<8x64xbf16, #tpu.memory_space<vmem>>, vector<8x8xbf16>
    %cst_91 = arith.constant dense<0.000000e+00> : vector<8x8xf32>
    %177 = tpu.matmul %174, %175, %cst_91 {dimension_numbers = #tpu.dot_dimension_numbers<[1], [1], [0], [0], [0, 0, 1, 0], [], []>} : vector<8x8xbf16>, vector<8x8xbf16>, vector<8x8xf32> -> vector<8x8xf32>
    %178 = vector.broadcast %1 : f32 to vector<8x8xf32>
    %179 = arith.mulf %177, %178 : vector<8x8xf32>
    %180 = arith.addf %179, %23 : vector<8x8xf32>
    %cst_92 = arith.constant dense<0xFF800000> : vector<8xf32>
    %181 = vector.multi_reduction <maximumf>, %180, %cst_92 [1] : vector<8x8xf32> to vector<8xf32>
    %182 = vector.shape_cast %181 : vector<8xf32> to vector<8x1xf32>
    %183 = vector.broadcast %182 : vector<8x1xf32> to vector<8x8xf32>
    %184 = arith.subf %180, %183 : vector<8x8xf32>
    %185 = math.exp %184 : vector<8x8xf32>
    %cst_93 = arith.constant dense<0.000000e+00> : vector<8xf32>
    %186 = vector.multi_reduction <add>, %185, %cst_93 [1] : vector<8x8xf32> to vector<8xf32>
    %187 = vector.shape_cast %186 : vector<8xf32> to vector<8x1xf32>
    %188 = tpu.reciprocal %187 {approx = true} : vector<8x1xf32> -> vector<8x1xf32>
    %189 = vector.broadcast %188 : vector<8x1xf32> to vector<8x8xf32>
    %190 = arith.mulf %185, %189 : vector<8x8xf32>
    %191 = arith.truncf %190 : vector<8x8xf32> to vector<8x8xbf16>
    %cst_94 = arith.constant dense<0.000000e+00> : vector<8x8xf32>
    %192 = tpu.matmul %191, %176, %cst_94 {dimension_numbers = #tpu.dot_dimension_numbers<[1], [0], [0], [1], [0, 0, 1, 1], [], []>} : vector<8x8xbf16>, vector<8x8xbf16>, vector<8x8xf32> -> vector<8x8xf32>
    %193 = arith.truncf %192 : vector<8x8xf32> to vector<8x8xbf16>
    %c0_95 = arith.constant 0 : index
    %c8_96 = arith.constant 8 : index
    %194 = vector.load %arg30[%c0_95, %c8_96] : memref<8x32xbf16, #tpu.memory_space<vmem>>, vector<8x8xbf16>
    tpu.vector_store %arg30[%c0_95, %c8_96], %193 {strides = array<i32>} : memref<8x32xbf16, #tpu.memory_space<vmem>>, vector<8x8xbf16>,
    %c0_97 = arith.constant 0 : index
    %c16_98 = arith.constant 16 : index
    %195 = vector.load %arg29[%c0_97, %c16_98] : memref<8x32xbf16, #tpu.memory_space<vmem>>, vector<8x8xbf16>
    %c0_99 = arith.constant 0 : index
    %c16_100 = arith.constant 16 : index
    %196 = vector.load %arg28[%c0_99, %c16_100] : memref<8x64xbf16, #tpu.memory_space<vmem>>, vector<8x8xbf16>
    %c0_101 = arith.constant 0 : index
    %c48_102 = arith.constant 48 : index
    %197 = vector.load %arg28[%c0_101, %c48_102] : memref<8x64xbf16, #tpu.memory_space<vmem>>, vector<8x8xbf16>
    %cst_103 = arith.constant dense<0.000000e+00> : vector<8x8xf32>
    %198 = tpu.matmul %195, %196, %cst_103 {dimension_numbers = #tpu.dot_dimension_numbers<[1], [1], [0], [0], [0, 0, 1, 0], [], []>} : vector<8x8xbf16>, vector<8x8xbf16>, vector<8x8xf32> -> vector<8x8xf32>
    %199 = vector.broadcast %1 : f32 to vector<8x8xf32>
    %200 = arith.mulf %198, %199 : vector<8x8xf32>
    %201 = arith.addf %200, %23 : vector<8x8xf32>
    %cst_104 = arith.constant dense<0xFF800000> : vector<8xf32>
    %202 = vector.multi_reduction <maximumf>, %201, %cst_104 [1] : vector<8x8xf32> to vector<8xf32>
    %203 = vector.shape_cast %202 : vector<8xf32> to vector<8x1xf32>
    %204 = vector.broadcast %203 : vector<8x1xf32> to vector<8x8xf32>
    %205 = arith.subf %201, %204 : vector<8x8xf32>
    %206 = math.exp %205 : vector<8x8xf32>
    %cst_105 = arith.constant dense<0.000000e+00> : vector<8xf32>
    %207 = vector.multi_reduction <add>, %206, %cst_105 [1] : vector<8x8xf32> to vector<8xf32>
    %208 = vector.shape_cast %207 : vector<8xf32> to vector<8x1xf32>
    %209 = tpu.reciprocal %208 {approx = true} : vector<8x1xf32> -> vector<8x1xf32>
    %210 = vector.broadcast %209 : vector<8x1xf32> to vector<8x8xf32>
    %211 = arith.mulf %206, %210 : vector<8x8xf32>
    %212 = arith.truncf %211 : vector<8x8xf32> to vector<8x8xbf16>
    %cst_106 = arith.constant dense<0.000000e+00> : vector<8x8xf32>
    %213 = tpu.matmul %212, %197, %cst_106 {dimension_numbers = #tpu.dot_dimension_numbers<[1], [0], [0], [1], [0, 0, 1, 1], [], []>} : vector<8x8xbf16>, vector<8x8xbf16>, vector<8x8xf32> -> vector<8x8xf32>
    %214 = arith.truncf %213 : vector<8x8xf32> to vector<8x8xbf16>
    %c0_107 = arith.constant 0 : index
    %c16_108 = arith.constant 16 : index
    %215 = vector.load %arg30[%c0_107, %c16_108] : memref<8x32xbf16, #tpu.memory_space<vmem>>, vector<8x8xbf16>
    tpu.vector_store %arg30[%c0_107, %c16_108], %214 {strides = array<i32>} : memref<8x32xbf16, #tpu.memory_space<vmem>>, vector<8x8xbf16>,
    %c0_109 = arith.constant 0 : index
    %c24_110 = arith.constant 24 : index
    %216 = vector.load %arg29[%c0_109, %c24_110] : memref<8x32xbf16, #tpu.memory_space<vmem>>, vector<8x8xbf16>
    %c0_111 = arith.constant 0 : index
    %c24_112 = arith.constant 24 : index
    %217 = vector.load %arg28[%c0_111, %c24_112] : memref<8x64xbf16, #tpu.memory_space<vmem>>, vector<8x8xbf16>
    %c0_113 = arith.constant 0 : index
    %c56_114 = arith.constant 56 : index
    %218 = vector.load %arg28[%c0_113, %c56_114] : memref<8x64xbf16, #tpu.memory_space<vmem>>, vector<8x8xbf16>
    %cst_115 = arith.constant dense<0.000000e+00> : vector<8x8xf32>
    %219 = tpu.matmul %216, %217, %cst_115 {dimension_numbers = #tpu.dot_dimension_numbers<[1], [1], [0], [0], [0, 0, 1, 0], [], []>} : vector<8x8xbf16>, vector<8x8xbf16>, vector<8x8xf32> -> vector<8x8xf32>
    %220 = vector.broadcast %1 : f32 to vector<8x8xf32>
    %221 = arith.mulf %219, %220 : vector<8x8xf32>
    %222 = arith.addf %221, %23 : vector<8x8xf32>
    %cst_116 = arith.constant dense<0xFF800000> : vector<8xf32>
    %223 = vector.multi_reduction <maximumf>, %222, %cst_116 [1] : vector<8x8xf32> to vector<8xf32>
    %224 = vector.shape_cast %223 : vector<8xf32> to vector<8x1xf32>
    %225 = vector.broadcast %224 : vector<8x1xf32> to vector<8x8xf32>
    %226 = arith.subf %222, %225 : vector<8x8xf32>
    %227 = math.exp %226 : vector<8x8xf32>
    %cst_117 = arith.constant dense<0.000000e+00> : vector<8xf32>
    %228 = vector.multi_reduction <add>, %227, %cst_117 [1] : vector<8x8xf32> to vector<8xf32>
    %229 = vector.shape_cast %228 : vector<8xf32> to vector<8x1xf32>
    %230 = tpu.reciprocal %229 {approx = true} : vector<8x1xf32> -> vector<8x1xf32>
    %231 = vector.broadcast %230 : vector<8x1xf32> to vector<8x8xf32>
    %232 = arith.mulf %227, %231 : vector<8x8xf32>
    %233 = arith.truncf %232 : vector<8x8xf32> to vector<8x8xbf16>
    %cst_118 = arith.constant dense<0.000000e+00> : vector<8x8xf32>
    %234 = tpu.matmul %233, %218, %cst_118 {dimension_numbers = #tpu.dot_dimension_numbers<[1], [0], [0], [1], [0, 0, 1, 1], [], []>} : vector<8x8xbf16>, vector<8x8xbf16>, vector<8x8xf32> -> vector<8x8xf32>
    %235 = arith.truncf %234 : vector<8x8xf32> to vector<8x8xbf16>
    %c0_119 = arith.constant 0 : index
    %c24_120 = arith.constant 24 : index
    %236 = vector.load %arg30[%c0_119, %c24_120] : memref<8x32xbf16, #tpu.memory_space<vmem>>, vector<8x8xbf16>
    tpu.vector_store %arg30[%c0_119, %c24_120], %235 {strides = array<i32>} : memref<8x32xbf16, #tpu.memory_space<vmem>>, vector<8x8xbf16>,
    %c0_121 = arith.constant 0 : index
    %c0_122 = arith.constant 0 : index
    %237 = vector.load %arg30[%c0_121, %c0_122] : memref<8x32xbf16, #tpu.memory_space<vmem>>, vector<8x32xbf16>
    %cst_123 = arith.constant dense<0.000000e+00> : vector<8x32xf32>
    %238 = tpu.matmul %237, %151, %cst_123 {dimension_numbers = #tpu.dot_dimension_numbers<[1], [0], [0], [1], [0, 0, 1, 1], [], []>} : vector<8x32xbf16>, vector<32x32xbf16>, vector<8x32xf32> -> vector<8x32xf32>
    %239 = vector.broadcast %152 : vector<1x32xf32> to vector<8x32xf32>
    %240 = arith.addf %238, %239 : vector<8x32xf32>
    %241 = arith.addf %118, %240 : vector<8x32xf32>
    %c0_124 = arith.constant 0 : index
    %c0_125 = arith.constant 0 : index
    %242 = vector.load %arg10[%c0_124, %c0_125] : memref<1x32xf32, #tpu.memory_space<vmem>>, vector<1x32xf32>
    %c0_126 = arith.constant 0 : index
    %c0_127 = arith.constant 0 : index
    %243 = vector.load %arg11[%c0_126, %c0_127] : memref<1x32xf32, #tpu.memory_space<vmem>>, vector<1x32xf32>
    %cst_128 = arith.constant dense<0.000000e+00> : vector<8xf32>
    %244 = vector.multi_reduction <add>, %241, %cst_128 [1] : vector<8x32xf32> to vector<8xf32>
    %245 = vector.shape_cast %244 : vector<8xf32> to vector<8x1xf32>
    %cst_129 = arith.constant 3.200000e+01 : f32
    %246 = vector.broadcast %cst_129 : f32 to vector<8x1xf32>
    %247 = arith.divf %245, %246 : vector<8x1xf32>
    %248 = vector.broadcast %247 : vector<8x1xf32> to vector<8x32xf32>
    %249 = arith.subf %241, %248 : vector<8x32xf32>
    %250 = arith.mulf %249, %249 : vector<8x32xf32>
    %cst_130 = arith.constant dense<0.000000e+00> : vector<8xf32>
    %251 = vector.multi_reduction <add>, %250, %cst_130 [1] : vector<8x32xf32> to vector<8xf32>
    %252 = vector.shape_cast %251 : vector<8xf32> to vector<8x1xf32>
    %cst_131 = arith.constant 3.100000e+01 : f32
    %253 = vector.broadcast %cst_131 : f32 to vector<8x1xf32>
    %254 = arith.divf %252, %253 : vector<8x1xf32>
    %255 = vector.broadcast %247 : vector<8x1xf32> to vector<8x32xf32>
    %256 = arith.subf %241, %255 : vector<8x32xf32>
    %257 = vector.broadcast %242 : vector<1x32xf32> to vector<8x32xf32>
    %258 = arith.mulf %257, %256 : vector<8x32xf32>
    %259 = math.sqrt %254 : vector<8x1xf32>
    %cst_132 = arith.constant 9.99999997E-7 : f32
    %260 = vector.broadcast %cst_132 : f32 to vector<8x1xf32>
    %261 = arith.addf %259, %260 : vector<8x1xf32>
    %262 = vector.broadcast %261 : vector<8x1xf32> to vector<8x32xf32>
    %263 = arith.divf %258, %262 : vector<8x32xf32>
    %264 = vector.broadcast %243 : vector<1x32xf32> to vector<8x32xf32>
    %265 = arith.addf %263, %264 : vector<8x32xf32>
    %266 = arith.truncf %265 : vector<8x32xf32> to vector<8x32xbf16>
    %c0_133 = arith.constant 0 : index
    %c0_134 = arith.constant 0 : index
    %267 = vector.load %arg22[%c0_133, %c0_134] : memref<32x64xbf16, #tpu.memory_space<vmem>>, vector<32x64xbf16>
    %cst_135 = arith.constant dense<0.000000e+00> : vector<8x64xf32>
    %268 = tpu.matmul %266, %267, %cst_135 {dimension_numbers = #tpu.dot_dimension_numbers<[1], [0], [0], [1], [0, 0, 1, 1], [], []>} : vector<8x32xbf16>, vector<32x64xbf16>, vector<8x64xf32> -> vector<8x64xf32>
    %c0_136 = arith.constant 0 : index
    %c0_137 = arith.constant 0 : index
    %269 = vector.load %arg23[%c0_136, %c0_137] : memref<1x64xf32, #tpu.memory_space<vmem>>, vector<1x64xf32>
    %270 = vector.broadcast %269 : vector<1x64xf32> to vector<8x64xf32>
    %271 = arith.addf %268, %270 : vector<8x64xf32>
    %cst_138 = arith.constant 0.000000e+00 : f32
    %272 = vector.broadcast %cst_138 : f32 to vector<8x64xf32>
    %273 = arith.maximumf %271, %272 : vector<8x64xf32>
    %274 = arith.truncf %273 : vector<8x64xf32> to vector<8x64xbf16>
    %c0_139 = arith.constant 0 : index
    %c0_140 = arith.constant 0 : index
    %275 = vector.load %arg24[%c0_139, %c0_140] : memref<64x32xbf16, #tpu.memory_space<vmem>>, vector<64x32xbf16>
    %cst_141 = arith.constant dense<0.000000e+00> : vector<8x32xf32>
    %276 = tpu.matmul %274, %275, %cst_141 {dimension_numbers = #tpu.dot_dimension_numbers<[1], [0], [0], [1], [0, 0, 1, 1], [], []>} : vector<8x64xbf16>, vector<64x32xbf16>, vector<8x32xf32> -> vector<8x32xf32>
    %c0_142 = arith.constant 0 : index
    %c0_143 = arith.constant 0 : index
    %277 = vector.load %arg25[%c0_142, %c0_143] : memref<1x32xf32, #tpu.memory_space<vmem>>, vector<1x32xf32>
    %278 = vector.broadcast %277 : vector<1x32xf32> to vector<8x32xf32>
    %279 = arith.addf %276, %278 : vector<8x32xf32>
    %280 = arith.addf %241, %279 : vector<8x32xf32>
    %c0_144 = arith.constant 0 : index
    %c0_145 = arith.constant 0 : index
    %c0_146 = arith.constant 0 : index
    %281 = vector.load %arg26[%c0_144, %c0_145, %c0_146] : memref<1x8x32xf32, #tpu.memory_space<vmem>>, vector<1x8x32xf32>
    %282 = vector.shape_cast %281 : vector<1x8x32xf32> to vector<8x32xf32>
    %283 = vector.shape_cast %280 : vector<8x32xf32> to vector<1x8x32xf32>
    tpu.vector_store %arg26[%c0_144, %c0_145, %c0_146], %283 {strides = array<i32>} : memref<1x8x32xf32, #tpu.memory_space<vmem>>, vector<1x8x32xf32>,
    return
  }
  func.func @transform_0(%arg0: i32, %arg1: i32) -> (i32, i32, i32) {
    %c0_i32 = arith.constant 0 : i32
    %c0_i32_0 = arith.constant 0 : i32
    %c0_i32_1 = arith.constant 0 : i32
    return %arg0, %c0_i32, %c0_i32_0 : i32, i32, i32
  }
  func.func @transform_1(%arg0: i32, %arg1: i32) -> (i32, i32, i32) {
    %c0_i32 = arith.constant 0 : i32
    %c0_i32_0 = arith.constant 0 : i32
    %c0_i32_1 = arith.constant 0 : i32
    return %arg0, %c0_i32, %c0_i32_0 : i32, i32, i32
  }
  func.func @transform_2(%arg0: i32, %arg1: i32) -> (i32, i32, i32) {
    %c0_i32 = arith.constant 0 : i32
    %c0_i32_0 = arith.constant 0 : i32
    return %arg0, %arg1, %c0_i32 : i32, i32, i32
  }
  func.func @transform_3(%arg0: i32, %arg1: i32) -> (i32, i32, i32) {
    %c0_i32 = arith.constant 0 : i32
    %c0_i32_0 = arith.constant 0 : i32
    return %arg0, %arg1, %c0_i32 : i32, i32, i32
  }
  func.func @transform_4(%arg0: i32, %arg1: i32) -> (i32, i32) {
    %c0_i32 = arith.constant 0 : i32
    %c0_i32_0 = arith.constant 0 : i32
    %c0_i32_1 = arith.constant 0 : i32
    return %c0_i32, %c0_i32_0 : i32, i32
  }
  func.func @transform_5(%arg0: i32, %arg1: i32) -> (i32, i32) {
    %c0_i32 = arith.constant 0 : i32
    %c0_i32_0 = arith.constant 0 : i32
    %c0_i32_1 = arith.constant 0 : i32
    return %c0_i32, %c0_i32_0 : i32, i32
  }
  func.func @transform_6(%arg0: i32, %arg1: i32) -> (i32, i32) {
    %c0_i32 = arith.constant 0 : i32
    %c0_i32_0 = arith.constant 0 : i32
    %c0_i32_1 = arith.constant 0 : i32
    return %c0_i32, %c0_i32_0 : i32, i32
  }
  func.func @transform_7(%arg0: i32, %arg1: i32) -> (i32, i32) {
    %c0_i32 = arith.constant 0 : i32
    %c0_i32_0 = arith.constant 0 : i32
    %c0_i32_1 = arith.constant 0 : i32
    return %c0_i32, %c0_i32_0 : i32, i32
  }
  func.func @transform_8(%arg0: i32, %arg1: i32) -> (i32, i32) {
    %c0_i32 = arith.constant 0 : i32
    %c0_i32_0 = arith.constant 0 : i32
    %c0_i32_1 = arith.constant 0 : i32
    return %c0_i32, %c0_i32_0 : i32, i32
  }
  func.func @transform_9(%arg0: i32, %arg1: i32) -> (i32, i32) {
    %c0_i32 = arith.constant 0 : i32
    %c0_i32_0 = arith.constant 0 : i32
    %c0_i32_1 = arith.constant 0 : i32
    return %c0_i32, %c0_i32_0 : i32, i32
  }
  func.func @transform_10(%arg0: i32, %arg1: i32) -> (i32, i32) {
    %c0_i32 = arith.constant 0 : i32
    %c0_i32_0 = arith.constant 0 : i32
    %c0_i32_1 = arith.constant 0 : i32
    return %c0_i32, %c0_i32_0 : i32, i32
  }
  func.func @transform_11(%arg0: i32, %arg1: i32) -> (i32, i32) {
    %c0_i32 = arith.constant 0 : i32
    %c0_i32_0 = arith.constant 0 : i32
    %c0_i32_1 = arith.constant 0 : i32
    return %c0_i32, %c0_i32_0 : i32, i32
  }
  func.func @transform_12(%arg0: i32, %arg1: i32) -> (i32, i32) {
    %c0_i32 = arith.constant 0 : i32
    %c0_i32_0 = arith.constant 0 : i32
    %c0_i32_1 = arith.constant 0 : i32
    return %c0_i32, %c0_i32_0 : i32, i32
  }
  func.func @transform_13(%arg0: i32, %arg1: i32) -> (i32, i32) {
    %c0_i32 = arith.constant 0 : i32
    %c0_i32_0 = arith.constant 0 : i32
    %c0_i32_1 = arith.constant 0 : i32
    return %c0_i32, %c0_i32_0 : i32, i32
  }
  func.func @transform_14(%arg0: i32, %arg1: i32) -> (i32, i32) {
    %c0_i32 = arith.constant 0 : i32
    %c0_i32_0 = arith.constant 0 : i32
    %c0_i32_1 = arith.constant 0 : i32
    return %c0_i32, %c0_i32_0 : i32, i32
  }
  func.func @transform_15(%arg0: i32, %arg1: i32) -> (i32, i32) {
    %c0_i32 = arith.constant 0 : i32
    %c0_i32_0 = arith.constant 0 : i32
    %c0_i32_1 = arith.constant 0 : i32
    return %c0_i32, %c0_i32_0 : i32, i32
  }
  func.func @transform_16(%arg0: i32, %arg1: i32) -> (i32, i32) {
    %c0_i32 = arith.constant 0 : i32
    %c0_i32_0 = arith.constant 0 : i32
    %c0_i32_1 = arith.constant 0 : i32
    return %c0_i32, %c0_i32_0 : i32, i32
  }
  func.func @transform_17(%arg0: i32, %arg1: i32) -> (i32, i32) {
    %c0_i32 = arith.constant 0 : i32
    %c0_i32_0 = arith.constant 0 : i32
    %c0_i32_1 = arith.constant 0 : i32
    return %c0_i32, %c0_i32_0 : i32, i32
  }
  func.func @transform_18(%arg0: i32, %arg1: i32) -> (i32, i32) {
    %c0_i32 = arith.constant 0 : i32
    %c0_i32_0 = arith.constant 0 : i32
    %c0_i32_1 = arith.constant 0 : i32
    return %c0_i32, %c0_i32_0 : i32, i32
  }
  func.func @transform_19(%arg0: i32, %arg1: i32) -> (i32, i32) {
    %c0_i32 = arith.constant 0 : i32
    %c0_i32_0 = arith.constant 0 : i32
    %c0_i32_1 = arith.constant 0 : i32
    return %c0_i32, %c0_i32_0 : i32, i32
  }
  func.func @transform_20(%arg0: i32, %arg1: i32) -> (i32, i32) {
    %c0_i32 = arith.constant 0 : i32
    %c0_i32_0 = arith.constant 0 : i32
    %c0_i32_1 = arith.constant 0 : i32
    return %c0_i32, %c0_i32_0 : i32, i32
  }
  func.func @transform_21(%arg0: i32, %arg1: i32) -> (i32, i32) {
    %c0_i32 = arith.constant 0 : i32
    %c0_i32_0 = arith.constant 0 : i32
    %c0_i32_1 = arith.constant 0 : i32
    return %c0_i32, %c0_i32_0 : i32, i32
  }
  func.func @transform_22(%arg0: i32, %arg1: i32) -> (i32, i32) {
    %c0_i32 = arith.constant 0 : i32
    %c0_i32_0 = arith.constant 0 : i32
    %c0_i32_1 = arith.constant 0 : i32
    return %c0_i32, %c0_i32_0 : i32, i32
  }
  func.func @transform_23(%arg0: i32, %arg1: i32) -> (i32, i32) {
    %c0_i32 = arith.constant 0 : i32
    %c0_i32_0 = arith.constant 0 : i32
    %c0_i32_1 = arith.constant 0 : i32
    return %c0_i32, %c0_i32_0 : i32, i32
  }
  func.func @transform_24(%arg0: i32, %arg1: i32) -> (i32, i32, i32) {
    %c0_i32 = arith.constant 0 : i32
    %c0_i32_0 = arith.constant 0 : i32
    return %arg0, %arg1, %c0_i32 : i32, i32, i32
  }
}

module attributes {stable_mosaic.version = 11 : i64} {
  func.func @fused_block_kernel(%arg0: i32, %arg1: i32, %arg2: memref<1x8x32xf32, #tpu.memory_space<vmem>>, %arg3: memref<1x8x32xf32, #tpu.memory_space<vmem>>, %arg4: memref<1x8x8xi8, #tpu.memory_space<vmem>>, %arg5: memref<1x8x8xi8, #tpu.memory_space<vmem>>, %arg6: memref<1x32xf32, #tpu.memory_space<vmem>>, %arg7: memref<1x32xf32, #tpu.memory_space<vmem>>, %arg8: memref<1x32xf32, #tpu.memory_space<vmem>>, %arg9: memref<1x32xf32, #tpu.memory_space<vmem>>, %arg10: memref<1x32xf32, #tpu.memory_space<vmem>>, %arg11: memref<1x32xf32, #tpu.memory_space<vmem>>, %arg12: memref<32x96xbf16, #tpu.memory_space<vmem>>, %arg13: memref<1x96xf32, #tpu.memory_space<vmem>>, %arg14: memref<32x32xbf16, #tpu.memory_space<vmem>>, %arg15: memref<1x32xf32, #tpu.memory_space<vmem>>, %arg16: memref<32x32xbf16, #tpu.memory_space<vmem>>, %arg17: memref<1x32xf32, #tpu.memory_space<vmem>>, %arg18: memref<32x64xbf16, #tpu.memory_space<vmem>>, %arg19: memref<1x64xf32, #tpu.memory_space<vmem>>, %arg20: memref<32x32xbf16, #tpu.memory_space<vmem>>, %arg21: memref<1x32xf32, #tpu.memory_space<vmem>>, %arg22: memref<32x64xbf16, #tpu.memory_space<vmem>>, %arg23: memref<1x64xf32, #tpu.memory_space<vmem>>, %arg24: memref<64x32xbf16, #tpu.memory_space<vmem>>, %arg25: memref<1x32xf32, #tpu.memory_space<vmem>>, %arg26: memref<1x8x32xf32, #tpu.memory_space<vmem>>, %arg27: memref<8x96xbf16, #tpu.memory_space<vmem>>, %arg28: memref<8x64xbf16, #tpu.memory_space<vmem>>, %arg29: memref<8x32xbf16, #tpu.memory_space<vmem>>, %arg30: memref<8x32xbf16, #tpu.memory_space<vmem>>) attributes {dimension_semantics = [#tpu.dimension_semantics<parallel>, #tpu.dimension_semantics<arbitrary>], iteration_bounds = array<i64: 2, 1>, scalar_prefetch = 0 : i64, scratch_operands = 4 : i64, tpu.core_type = #tpu.core_type<tc>, window_params = [{transform_indices = @transform_0, window_bounds = array<i64: 1, 8, 32>}, {transform_indices = @transform_1, window_bounds = array<i64: 1, 8, 32>}, {transform_indices = @transform_2, window_bounds = array<i64: 1, 8, 8>}, {transform_indices = @transform_3, window_bounds = array<i64: 1, 8, 8>}, {pipeline_mode = #tpu.pipeline_mode<synchronous>, transform_indices = @transform_4, window_bounds = array<i64: 1, 32>}, {pipeline_mode = #tpu.pipeline_mode<synchronous>, transform_indices = @transform_5, window_bounds = array<i64: 1, 32>}, {pipeline_mode = #tpu.pipeline_mode<synchronous>, transform_indices = @transform_6, window_bounds = array<i64: 1, 32>}, {pipeline_mode = #tpu.pipeline_mode<synchronous>, transform_indices = @transform_7, window_bounds = array<i64: 1, 32>}, {pipeline_mode = #tpu.pipeline_mode<synchronous>, transform_indices = @transform_8, window_bounds = array<i64: 1, 32>}, {pipeline_mode = #tpu.pipeline_mode<synchronous>, transform_indices = @transform_9, window_bounds = array<i64: 1, 32>}, {pipeline_mode = #tpu.pipeline_mode<synchronous>, transform_indices = @transform_10, window_bounds = array<i64: 32, 96>}, {pipeline_mode = #tpu.pipeline_mode<synchronous>, transform_indices = @transform_11, window_bounds = array<i64: 1, 96>}, {pipeline_mode = #tpu.pipeline_mode<synchronous>, transform_indices = @transform_12, window_bounds = array<i64: 32, 32>}, {pipeline_mode = #tpu.pipeline_mode<synchronous>, transform_indices = @transform_13, window_bounds = array<i64: 1, 32>}, {pipeline_mode = #tpu.pipeline_mode<synchronous>, transform_indices = @transform_14, window_bounds = array<i64: 32, 32>}, {pipeline_mode = #tpu.pipeline_mode<synchronous>, transform_indices = @transform_15, window_bounds = array<i64: 1, 32>}, {pipeline_mode = #tpu.pipeline_mode<synchronous>, transform_indices = @transform_16, window_bounds = array<i64: 32, 64>}, {pipeline_mode = #tpu.pipeline_mode<synchronous>, transform_indices = @transform_17, window_bounds = array<i64: 1, 64>}, {pipeline_mode = #tpu.pipeline_mode<synchronous>, transform_indices = @transform_18, window_bounds = array<i64: 32, 32>}, {pipeline_mode = #tpu.pipeline_mode<synchronous>, transform_indices = @transform_19, window_bounds = array<i64: 1, 32>}, {pipeline_mode = #tpu.pipeline_mode<synchronous>, transform_indices = @transform_20, window_bounds = array<i64: 32, 64>}, {pipeline_mode = #tpu.pipeline_mode<synchronous>, transform_indices = @transform_21, window_bounds = array<i64: 1, 64>}, {pipeline_mode = #tpu.pipeline_mode<synchronous>, transform_indices = @transform_22, window_bounds = array<i64: 64, 32>}, {pipeline_mode = #tpu.pipeline_mode<synchronous>, transform_indices = @transform_23, window_bounds = array<i64: 1, 32>}, {transform_indices = @transform_24, window_bounds = array<i64: 1, 8, 32>}]} {
    %cst = arith.constant 8.000000e+00 : f32
    %0 = math.sqrt %cst : f32
    %cst_0 = arith.constant 1.000000e+00 : f32
    %1 = arith.divf %cst_0, %0 : f32
    %c0_i32 = arith.constant 0 : i32
    %2 = arith.cmpi eq, %arg1, %c0_i32 : i32
    %3 = arith.extui %2 : i1 to i32
    %c0_i32_1 = arith.constant 0 : i32
    %4 = arith.cmpi ne, %3, %c0_i32_1 : i32
    scf.if %4 {
      %c0_147 = arith.constant 0 : index
      %c0_148 = arith.constant 0 : index
      %c0_149 = arith.constant 0 : index
      %284 = vector.load %arg2[%c0_147, %c0_148, %c0_149] : memref<1x8x32xf32, #tpu.memory_space<vmem>>, vector<1x8x32xf32>
      %285 = vector.shape_cast %284 : vector<1x8x32xf32> to vector<8x32xf32>
      %c0_150 = arith.constant 0 : index
      %c0_151 = arith.constant 0 : index
      %286 = vector.load %arg6[%c0_150, %c0_151] : memref<1x32xf32, #tpu.memory_space<vmem>>, vector<1x32xf32>
      %c0_152 = arith.constant 0 : index
      %c0_153 = arith.constant 0 : index
      %287 = vector.load %arg7[%c0_152, %c0_153] : memref<1x32xf32, #tpu.memory_space<vmem>>, vector<1x32xf32>
      %cst_154 = arith.constant dense<0.000000e+00> : vector<8xf32>
      %288 = vector.multi_reduction <add>, %285, %cst_154 [1] : vector<8x32xf32> to vector<8xf32>
      %289 = vector.shape_cast %288 : vector<8xf32> to vector<8x1xf32>
      %cst_155 = arith.constant 3.200000e+01 : f32
      %290 = vector.broadcast %cst_155 : f32 to vector<8x1xf32>
      %291 = arith.divf %289, %290 : vector<8x1xf32>
      %292 = vector.broadcast %291 : vector<8x1xf32> to vector<8x32xf32>
      %293 = arith.subf %285, %292 : vector<8x32xf32>
      %294 = arith.mulf %293, %293 : vector<8x32xf32>
      %cst_156 = arith.constant dense<0.000000e+00> : vector<8xf32>
      %295 = vector.multi_reduction <add>, %294, %cst_156 [1] : vector<8x32xf32> to vector<8xf32>
      %296 = vector.shape_cast %295 : vector<8xf32> to vector<8x1xf32>
      %cst_157 = arith.constant 3.100000e+01 : f32
      %297 = vector.broadcast %cst_157 : f32 to vector<8x1xf32>
      %298 = arith.divf %296, %297 : vector<8x1xf32>
      %299 = vector.broadcast %291 : vector<8x1xf32> to vector<8x32xf32>
      %300 = arith.subf %285, %299 : vector<8x32xf32>
      %301 = vector.broadcast %286 : vector<1x32xf32> to vector<8x32xf32>
      %302 = arith.mulf %301, %300 : vector<8x32xf32>
      %303 = math.sqrt %298 : vector<8x1xf32>
      %cst_158 = arith.constant 9.99999997E-7 : f32
      %304 = vector.broadcast %cst_158 : f32 to vector<8x1xf32>
      %305 = arith.addf %303, %304 : vector<8x1xf32>
      %306 = vector.broadcast %305 : vector<8x1xf32> to vector<8x32xf32>
      %307 = arith.divf %302, %306 : vector<8x32xf32>
      %308 = vector.broadcast %287 : vector<1x32xf32> to vector<8x32xf32>
      %309 = arith.addf %307, %308 : vector<8x32xf32>
      %310 = arith.truncf %309 : vector<8x32xf32> to vector<8x32xbf16>
      %c0_159 = arith.constant 0 : index
      %c0_160 = arith.constant 0 : index
      %311 = vector.load %arg12[%c0_159, %c0_160] : memref<32x96xbf16, #tpu.memory_space<vmem>>, vector<32x96xbf16>
      %cst_161 = arith.constant dense<0.000000e+00> : vector<8x96xf32>
      %312 = tpu.matmul %310, %311, %cst_161 {dimension_numbers = #tpu.dot_dimension_numbers<[1], [0], [0], [1], [0, 0, 1, 1], [], []>} : vector<8x32xbf16>, vector<32x96xbf16>, vector<8x96xf32> -> vector<8x96xf32>
      %c0_162 = arith.constant 0 : index
      %c0_163 = arith.constant 0 : index
      %313 = vector.load %arg13[%c0_162, %c0_163] : memref<1x96xf32, #tpu.memory_space<vmem>>, vector<1x96xf32>
      %314 = vector.broadcast %313 : vector<1x96xf32> to vector<8x96xf32>
      %315 = arith.addf %312, %314 : vector<8x96xf32>
      %316 = arith.truncf %315 : vector<8x96xf32> to vector<8x96xbf16>
      %c0_164 = arith.constant 0 : index
      %c0_165 = arith.constant 0 : index
      %317 = vector.load %arg27[%c0_164, %c0_165] : memref<8x96xbf16, #tpu.memory_space<vmem>>, vector<8x96xbf16>
      tpu.vector_store %arg27[%c0_164, %c0_165], %316 {strides = array<i32>} : memref<8x96xbf16, #tpu.memory_space<vmem>>, vector<8x96xbf16>,
      %c0_166 = arith.constant 0 : index
      %c0_167 = arith.constant 0 : index
      %c0_168 = arith.constant 0 : index
      %318 = vector.load %arg3[%c0_166, %c0_167, %c0_168] : memref<1x8x32xf32, #tpu.memory_space<vmem>>, vector<1x8x32xf32>
      %319 = vector.shape_cast %318 : vector<1x8x32xf32> to vector<8x32xf32>
      %320 = arith.truncf %319 : vector<8x32xf32> to vector<8x32xbf16>
      %c0_169 = arith.constant 0 : index
      %c0_170 = arith.constant 0 : index
      %321 = vector.load %arg18[%c0_169, %c0_170] : memref<32x64xbf16, #tpu.memory_space<vmem>>, vector<32x64xbf16>
      %cst_171 = arith.constant dense<0.000000e+00> : vector<8x64xf32>
      %322 = tpu.matmul %320, %321, %cst_171 {dimension_numbers = #tpu.dot_dimension_numbers<[1], [0], [0], [1], [0, 0, 1, 1], [], []>} : vector<8x32xbf16>, vector<32x64xbf16>, vector<8x64xf32> -> vector<8x64xf32>
      %c0_172 = arith.constant 0 : index
      %c0_173 = arith.constant 0 : index
      %323 = vector.load %arg19[%c0_172, %c0_173] : memref<1x64xf32, #tpu.memory_space<vmem>>, vector<1x64xf32>
      %324 = vector.broadcast %323 : vector<1x64xf32> to vector<8x64xf32>
      %325 = arith.addf %322, %324 : vector<8x64xf32>
      %326 = arith.truncf %325 : vector<8x64xf32> to vector<8x64xbf16>
      %c0_174 = arith.constant 0 : index
      %c0_175 = arith.constant 0 : index
      %327 = vector.load %arg28[%c0_174, %c0_175] : memref<8x64xbf16, #tpu.memory_space<vmem>>, vector<8x64xbf16>
      tpu.vector_store %arg28[%c0_174, %c0_175], %326 {strides = array<i32>} : memref<8x64xbf16, #tpu.memory_space<vmem>>, vector<8x64xbf16>,
    } else {
    }
    %c8_i32 = arith.constant 8 : i32
    %5 = arith.muli %arg1, %c8_i32 : i32
    %6 = tpu.assume_multiple %5, 8 : i32
    %c0 = arith.constant 0 : index
    %7 = arith.index_cast %6 : i32 to index
    %c0_2 = arith.constant 0 : index
    %8 = vector.load %arg2[%c0, %7, %c0_2] : memref<1x8x32xf32, #tpu.memory_space<vmem>>, vector<1x8x32xf32>
    %9 = vector.shape_cast %8 : vector<1x8x32xf32> to vector<8x32xf32>
    %c0_3 = arith.constant 0 : index
    %c0_4 = arith.constant 0 : index
    %c0_5 = arith.constant 0 : index
    %10 = vector.load %arg4[%c0_3, %c0_4, %c0_5] : memref<1x8x8xi8, #tpu.memory_space<vmem>>, vector<1x8x8xi8>
    %11 = vector.shape_cast %10 : vector<1x8x8xi8> to vector<8x8xi8>
    %12 = arith.sitofp %11 : vector<8x8xi8> to vector<8x8xf32>
    %cst_6 = arith.constant 1.000000e+00 : f32
    %13 = vector.broadcast %cst_6 : f32 to vector<8x8xf32>
    %14 = arith.subf %12, %13 : vector<8x8xf32>
    %cst_7 = arith.constant 1.000000e+09 : f32
    %15 = vector.broadcast %cst_7 : f32 to vector<8x8xf32>
    %16 = arith.mulf %14, %15 : vector<8x8xf32>
    %c0_8 = arith.constant 0 : index
    %c0_9 = arith.constant 0 : index
    %c0_10 = arith.constant 0 : index
    %17 = vector.load %arg5[%c0_8, %c0_9, %c0_10] : memref<1x8x8xi8, #tpu.memory_space<vmem>>, vector<1x8x8xi8>
    %18 = vector.shape_cast %17 : vector<1x8x8xi8> to vector<8x8xi8>
    %19 = arith.sitofp %18 : vector<8x8xi8> to vector<8x8xf32>
    %cst_11 = arith.constant 1.000000e+00 : f32
    %20 = vector.broadcast %cst_11 : f32 to vector<8x8xf32>
    %21 = arith.subf %19, %20 : vector<8x8xf32>
    %cst_12 = arith.constant 1.000000e+09 : f32
    %22 = vector.broadcast %cst_12 : f32 to vector<8x8xf32>
    %23 = arith.mulf %21, %22 : vector<8x8xf32>
    %c0_13 = arith.constant 0 : index
    %c0_14 = arith.constant 0 : index
    %24 = vector.load %arg14[%c0_13, %c0_14] : memref<32x32xbf16, #tpu.memory_space<vmem>>, vector<32x32xbf16>
    %c0_15 = arith.constant 0 : index
    %c0_16 = arith.constant 0 : index
    %25 = vector.load %arg15[%c0_15, %c0_16] : memref<1x32xf32, #tpu.memory_space<vmem>>, vector<1x32xf32>
    %26 = arith.index_cast %6 : i32 to index
    %c0_17 = arith.constant 0 : index
    %27 = vector.load %arg27[%26, %c0_17] : memref<8x96xbf16, #tpu.memory_space<vmem>>, vector<8x8xbf16>
    %c0_18 = arith.constant 0 : index
    %c32 = arith.constant 32 : index
    %28 = vector.load %arg27[%c0_18, %c32] : memref<8x96xbf16, #tpu.memory_space<vmem>>, vector<8x8xbf16>
    %c0_19 = arith.constant 0 : index
    %c64 = arith.constant 64 : index
    %29 = vector.load %arg27[%c0_19, %c64] : memref<8x96xbf16, #tpu.memory_space<vmem>>, vector<8x8xbf16>
    %cst_20 = arith.constant dense<0.000000e+00> : vector<8x8xf32>
    %30 = tpu.matmul %27, %28, %cst_20 {dimension_numbers = #tpu.dot_dimension_numbers<[1], [1], [0], [0], [0, 0, 1, 0], [], []>} : vector<8x8xbf16>, vector<8x8xbf16>, vector<8x8xf32> -> vector<8x8xf32>
    %31 = vector.broadcast %1 : f32 to vector<8x8xf32>
    %32 = arith.mulf %30, %31 : vector<8x8xf32>
    %33 = arith.addf %32, %16 : vector<8x8xf32>
    %cst_21 = arith.constant dense<0xFF800000> : vector<8xf32>
    %34 = vector.multi_reduction <maximumf>, %33, %cst_21 [1] : vector<8x8xf32> to vector<8xf32>
    %35 = vector.shape_cast %34 : vector<8xf32> to vector<8x1xf32>
    %36 = vector.broadcast %35 : vector<8x1xf32> to vector<8x8xf32>
    %37 = arith.subf %33, %36 : vector<8x8xf32>
    %38 = math.exp %37 : vector<8x8xf32>
    %cst_22 = arith.constant dense<0.000000e+00> : vector<8xf32>
    %39 = vector.multi_reduction <add>, %38, %cst_22 [1] : vector<8x8xf32> to vector<8xf32>
    %40 = vector.shape_cast %39 : vector<8xf32> to vector<8x1xf32>
    %41 = tpu.reciprocal %40 {approx = true} : vector<8x1xf32> -> vector<8x1xf32>
    %42 = vector.broadcast %41 : vector<8x1xf32> to vector<8x8xf32>
    %43 = arith.mulf %38, %42 : vector<8x8xf32>
    %44 = arith.truncf %43 : vector<8x8xf32> to vector<8x8xbf16>
    %cst_23 = arith.constant dense<0.000000e+00> : vector<8x8xf32>
    %45 = tpu.matmul %44, %29, %cst_23 {dimension_numbers = #tpu.dot_dimension_numbers<[1], [0], [0], [1], [0, 0, 1, 1], [], []>} : vector<8x8xbf16>, vector<8x8xbf16>, vector<8x8xf32> -> vector<8x8xf32>
    %46 = arith.truncf %45 : vector<8x8xf32> to vector<8x8xbf16>
    %c0_24 = arith.constant 0 : index
    %c0_25 = arith.constant 0 : index
    %47 = vector.load %arg30[%c0_24, %c0_25] : memref<8x32xbf16, #tpu.memory_space<vmem>>, vector<8x8xbf16>
    tpu.vector_store %arg30[%c0_24, %c0_25], %46 {strides = array<i32>} : memref<8x32xbf16, #tpu.memory_space<vmem>>, vector<8x8xbf16>,
    %48 = arith.index_cast %6 : i32 to index
    %c8 = arith.constant 8 : index
    %49 = vector.load %arg27[%48, %c8] : memref<8x96xbf16, #tpu.memory_space<vmem>>, vector<8x8xbf16>
    %c0_26 = arith.constant 0 : index
    %c40 = arith.constant 40 : index
    %50 = vector.load %arg27[%c0_26, %c40] : memref<8x96xbf16, #tpu.memory_space<vmem>>, vector<8x8xbf16>
    %c0_27 = arith.constant 0 : index
    %c72 = arith.constant 72 : index
    %51 = vector.load %arg27[%c0_27, %c72] : memref<8x96xbf16, #tpu.memory_space<vmem>>, vector<8x8xbf16>
    %cst_28 = arith.constant dense<0.000000e+00> : vector<8x8xf32>
    %52 = tpu.matmul %49, %50, %cst_28 {dimension_numbers = #tpu.dot_dimension_numbers<[1], [1], [0], [0], [0, 0, 1, 0], [], []>} : vector<8x8xbf16>, vector<8x8xbf16>, vector<8x8xf32> -> vector<8x8xf32>
    %53 = vector.broadcast %1 : f32 to vector<8x8xf32>
    %54 = arith.mulf %52, %53 : vector<8x8xf32>
    %55 = arith.addf %54, %16 : vector<8x8xf32>
    %cst_29 = arith.constant dense<0xFF800000> : vector<8xf32>
    %56 = vector.multi_reduction <maximumf>, %55, %cst_29 [1] : vector<8x8xf32> to vector<8xf32>
    %57 = vector.shape_cast %56 : vector<8xf32> to vector<8x1xf32>
    %58 = vector.broadcast %57 : vector<8x1xf32> to vector<8x8xf32>
    %59 = arith.subf %55, %58 : vector<8x8xf32>
    %60 = math.exp %59 : vector<8x8xf32>
    %cst_30 = arith.constant dense<0.000000e+00> : vector<8xf32>
    %61 = vector.multi_reduction <add>, %60, %cst_30 [1] : vector<8x8xf32> to vector<8xf32>
    %62 = vector.shape_cast %61 : vector<8xf32> to vector<8x1xf32>
    %63 = tpu.reciprocal %62 {approx = true} : vector<8x1xf32> -> vector<8x1xf32>
    %64 = vector.broadcast %63 : vector<8x1xf32> to vector<8x8xf32>
    %65 = arith.mulf %60, %64 : vector<8x8xf32>
    %66 = arith.truncf %65 : vector<8x8xf32> to vector<8x8xbf16>
    %cst_31 = arith.constant dense<0.000000e+00> : vector<8x8xf32>
    %67 = tpu.matmul %66, %51, %cst_31 {dimension_numbers = #tpu.dot_dimension_numbers<[1], [0], [0], [1], [0, 0, 1, 1], [], []>} : vector<8x8xbf16>, vector<8x8xbf16>, vector<8x8xf32> -> vector<8x8xf32>
    %68 = arith.truncf %67 : vector<8x8xf32> to vector<8x8xbf16>
    %c0_32 = arith.constant 0 : index
    %c8_33 = arith.constant 8 : index
    %69 = vector.load %arg30[%c0_32, %c8_33] : memref<8x32xbf16, #tpu.memory_space<vmem>>, vector<8x8xbf16>
    tpu.vector_store %arg30[%c0_32, %c8_33], %68 {strides = array<i32>} : memref<8x32xbf16, #tpu.memory_space<vmem>>, vector<8x8xbf16>,
    %70 = arith.index_cast %6 : i32 to index
    %c16 = arith.constant 16 : index
    %71 = vector.load %arg27[%70, %c16] : memref<8x96xbf16, #tpu.memory_space<vmem>>, vector<8x8xbf16>
    %c0_34 = arith.constant 0 : index
    %c48 = arith.constant 48 : index
    %72 = vector.load %arg27[%c0_34, %c48] : memref<8x96xbf16, #tpu.memory_space<vmem>>, vector<8x8xbf16>
    %c0_35 = arith.constant 0 : index
    %c80 = arith.constant 80 : index
    %73 = vector.load %arg27[%c0_35, %c80] : memref<8x96xbf16, #tpu.memory_space<vmem>>, vector<8x8xbf16>
    %cst_36 = arith.constant dense<0.000000e+00> : vector<8x8xf32>
    %74 = tpu.matmul %71, %72, %cst_36 {dimension_numbers = #tpu.dot_dimension_numbers<[1], [1], [0], [0], [0, 0, 1, 0], [], []>} : vector<8x8xbf16>, vector<8x8xbf16>, vector<8x8xf32> -> vector<8x8xf32>
    %75 = vector.broadcast %1 : f32 to vector<8x8xf32>
    %76 = arith.mulf %74, %75 : vector<8x8xf32>
    %77 = arith.addf %76, %16 : vector<8x8xf32>
    %cst_37 = arith.constant dense<0xFF800000> : vector<8xf32>
    %78 = vector.multi_reduction <maximumf>, %77, %cst_37 [1] : vector<8x8xf32> to vector<8xf32>
    %79 = vector.shape_cast %78 : vector<8xf32> to vector<8x1xf32>
    %80 = vector.broadcast %79 : vector<8x1xf32> to vector<8x8xf32>
    %81 = arith.subf %77, %80 : vector<8x8xf32>
    %82 = math.exp %81 : vector<8x8xf32>
    %cst_38 = arith.constant dense<0.000000e+00> : vector<8xf32>
    %83 = vector.multi_reduction <add>, %82, %cst_38 [1] : vector<8x8xf32> to vector<8xf32>
    %84 = vector.shape_cast %83 : vector<8xf32> to vector<8x1xf32>
    %85 = tpu.reciprocal %84 {approx = true} : vector<8x1xf32> -> vector<8x1xf32>
    %86 = vector.broadcast %85 : vector<8x1xf32> to vector<8x8xf32>
    %87 = arith.mulf %82, %86 : vector<8x8xf32>
    %88 = arith.truncf %87 : vector<8x8xf32> to vector<8x8xbf16>
    %cst_39 = arith.constant dense<0.000000e+00> : vector<8x8xf32>
    %89 = tpu.matmul %88, %73, %cst_39 {dimension_numbers = #tpu.dot_dimension_numbers<[1], [0], [0], [1], [0, 0, 1, 1], [], []>} : vector<8x8xbf16>, vector<8x8xbf16>, vector<8x8xf32> -> vector<8x8xf32>
    %90 = arith.truncf %89 : vector<8x8xf32> to vector<8x8xbf16>
    %c0_40 = arith.constant 0 : index
    %c16_41 = arith.constant 16 : index
    %91 = vector.load %arg30[%c0_40, %c16_41] : memref<8x32xbf16, #tpu.memory_space<vmem>>, vector<8x8xbf16>
    tpu.vector_store %arg30[%c0_40, %c16_41], %90 {strides = array<i32>} : memref<8x32xbf16, #tpu.memory_space<vmem>>, vector<8x8xbf16>,
    %92 = arith.index_cast %6 : i32 to index
    %c24 = arith.constant 24 : index
    %93 = vector.load %arg27[%92, %c24] : memref<8x96xbf16, #tpu.memory_space<vmem>>, vector<8x8xbf16>
    %c0_42 = arith.constant 0 : index
    %c56 = arith.constant 56 : index
    %94 = vector.load %arg27[%c0_42, %c56] : memref<8x96xbf16, #tpu.memory_space<vmem>>, vector<8x8xbf16>
    %c0_43 = arith.constant 0 : index
    %c88 = arith.constant 88 : index
    %95 = vector.load %arg27[%c0_43, %c88] : memref<8x96xbf16, #tpu.memory_space<vmem>>, vector<8x8xbf16>
    %cst_44 = arith.constant dense<0.000000e+00> : vector<8x8xf32>
    %96 = tpu.matmul %93, %94, %cst_44 {dimension_numbers = #tpu.dot_dimension_numbers<[1], [1], [0], [0], [0, 0, 1, 0], [], []>} : vector<8x8xbf16>, vector<8x8xbf16>, vector<8x8xf32> -> vector<8x8xf32>
    %97 = vector.broadcast %1 : f32 to vector<8x8xf32>
    %98 = arith.mulf %96, %97 : vector<8x8xf32>
    %99 = arith.addf %98, %16 : vector<8x8xf32>
    %cst_45 = arith.constant dense<0xFF800000> : vector<8xf32>
    %100 = vector.multi_reduction <maximumf>, %99, %cst_45 [1] : vector<8x8xf32> to vector<8xf32>
    %101 = vector.shape_cast %100 : vector<8xf32> to vector<8x1xf32>
    %102 = vector.broadcast %101 : vector<8x1xf32> to vector<8x8xf32>
    %103 = arith.subf %99, %102 : vector<8x8xf32>
    %104 = math.exp %103 : vector<8x8xf32>
    %cst_46 = arith.constant dense<0.000000e+00> : vector<8xf32>
    %105 = vector.multi_reduction <add>, %104, %cst_46 [1] : vector<8x8xf32> to vector<8xf32>
    %106 = vector.shape_cast %105 : vector<8xf32> to vector<8x1xf32>
    %107 = tpu.reciprocal %106 {approx = true} : vector<8x1xf32> -> vector<8x1xf32>
    %108 = vector.broadcast %107 : vector<8x1xf32> to vector<8x8xf32>
    %109 = arith.mulf %104, %108 : vector<8x8xf32>
    %110 = arith.truncf %109 : vector<8x8xf32> to vector<8x8xbf16>
    %cst_47 = arith.constant dense<0.000000e+00> : vector<8x8xf32>
    %111 = tpu.matmul %110, %95, %cst_47 {dimension_numbers = #tpu.dot_dimension_numbers<[1], [0], [0], [1], [0, 0, 1, 1], [], []>} : vector<8x8xbf16>, vector<8x8xbf16>, vector<8x8xf32> -> vector<8x8xf32>
    %112 = arith.truncf %111 : vector<8x8xf32> to vector<8x8xbf16>
    %c0_48 = arith.constant 0 : index
    %c24_49 = arith.constant 24 : index
    %113 = vector.load %arg30[%c0_48, %c24_49] : memref<8x32xbf16, #tpu.memory_space<vmem>>, vector<8x8xbf16>
    tpu.vector_store %arg30[%c0_48, %c24_49], %112 {strides = array<i32>} : memref<8x32xbf16, #tpu.memory_space<vmem>>, vector<8x8xbf16>,
    %c0_50 = arith.constant 0 : index
    %c0_51 = arith.constant 0 : index
    %114 = vector.load %arg30[%c0_50, %c0_51] : memref<8x32xbf16, #tpu.memory_space<vmem>>, vector<8x32xbf16>
    %cst_52 = arith.constant dense<0.000000e+00> : vector<8x32xf32>
    %115 = tpu.matmul %114, %24, %cst_52 {dimension_numbers = #tpu.dot_dimension_numbers<[1], [0], [0], [1], [0, 0, 1, 1], [], []>} : vector<8x32xbf16>, vector<32x32xbf16>, vector<8x32xf32> -> vector<8x32xf32>
    %116 = vector.broadcast %25 : vector<1x32xf32> to vector<8x32xf32>
    %117 = arith.addf %115, %116 : vector<8x32xf32>
    %118 = arith.addf %9, %117 : vector<8x32xf32>
    %c0_53 = arith.constant 0 : index
    %c0_54 = arith.constant 0 : index
    %119 = vector.load %arg8[%c0_53, %c0_54] : memref<1x32xf32, #tpu.memory_space<vmem>>, vector<1x32xf32>
    %c0_55 = arith.constant 0 : index
    %c0_56 = arith.constant 0 : index
    %120 = vector.load %arg9[%c0_55, %c0_56] : memref<1x32xf32, #tpu.memory_space<vmem>>, vector<1x32xf32>
    %cst_57 = arith.constant dense<0.000000e+00> : vector<8xf32>
    %121 = vector.multi_reduction <add>, %118, %cst_57 [1] : vector<8x32xf32> to vector<8xf32>
    %122 = vector.shape_cast %121 : vector<8xf32> to vector<8x1xf32>
    %cst_58 = arith.constant 3.200000e+01 : f32
    %123 = vector.broadcast %cst_58 : f32 to vector<8x1xf32>
    %124 = arith.divf %122, %123 : vector<8x1xf32>
    %125 = vector.broadcast %124 : vector<8x1xf32> to vector<8x32xf32>
    %126 = arith.subf %118, %125 : vector<8x32xf32>
    %127 = arith.mulf %126, %126 : vector<8x32xf32>
    %cst_59 = arith.constant dense<0.000000e+00> : vector<8xf32>
    %128 = vector.multi_reduction <add>, %127, %cst_59 [1] : vector<8x32xf32> to vector<8xf32>
    %129 = vector.shape_cast %128 : vector<8xf32> to vector<8x1xf32>
    %cst_60 = arith.constant 3.100000e+01 : f32
    %130 = vector.broadcast %cst_60 : f32 to vector<8x1xf32>
    %131 = arith.divf %129, %130 : vector<8x1xf32>
    %132 = vector.broadcast %124 : vector<8x1xf32> to vector<8x32xf32>
    %133 = arith.subf %118, %132 : vector<8x32xf32>
    %134 = vector.broadcast %119 : vector<1x32xf32> to vector<8x32xf32>
    %135 = arith.mulf %134, %133 : vector<8x32xf32>
    %136 = math.sqrt %131 : vector<8x1xf32>
    %cst_61 = arith.constant 9.99999997E-7 : f32
    %137 = vector.broadcast %cst_61 : f32 to vector<8x1xf32>
    %138 = arith.addf %136, %137 : vector<8x1xf32>
    %139 = vector.broadcast %138 : vector<8x1xf32> to vector<8x32xf32>
    %140 = arith.divf %135, %139 : vector<8x32xf32>
    %141 = vector.broadcast %120 : vector<1x32xf32> to vector<8x32xf32>
    %142 = arith.addf %140, %141 : vector<8x32xf32>
    %143 = arith.truncf %142 : vector<8x32xf32> to vector<8x32xbf16>
    %c0_62 = arith.constant 0 : index
    %c0_63 = arith.constant 0 : index
    %144 = vector.load %arg16[%c0_62, %c0_63] : memref<32x32xbf16, #tpu.memory_space<vmem>>, vector<32x32xbf16>
    %cst_64 = arith.constant dense<0.000000e+00> : vector<8x32xf32>
    %145 = tpu.matmul %143, %144, %cst_64 {dimension_numbers = #tpu.dot_dimension_numbers<[1], [0], [0], [1], [0, 0, 1, 1], [], []>} : vector<8x32xbf16>, vector<32x32xbf16>, vector<8x32xf32> -> vector<8x32xf32>
    %c0_65 = arith.constant 0 : index
    %c0_66 = arith.constant 0 : index
    %146 = vector.load %arg17[%c0_65, %c0_66] : memref<1x32xf32, #tpu.memory_space<vmem>>, vector<1x32xf32>
    %147 = vector.broadcast %146 : vector<1x32xf32> to vector<8x32xf32>
    %148 = arith.addf %145, %147 : vector<8x32xf32>
    %149 = arith.truncf %148 : vector<8x32xf32> to vector<8x32xbf16>
    %c0_67 = arith.constant 0 : index
    %c0_68 = arith.constant 0 : index
    %150 = vector.load %arg29[%c0_67, %c0_68] : memref<8x32xbf16, #tpu.memory_space<vmem>>, vector<8x32xbf16>
    tpu.vector_store %arg29[%c0_67, %c0_68], %149 {strides = array<i32>} : memref<8x32xbf16, #tpu.memory_space<vmem>>, vector<8x32xbf16>,
    %c0_69 = arith.constant 0 : index
    %c0_70 = arith.constant 0 : index
    %151 = vector.load %arg20[%c0_69, %c0_70] : memref<32x32xbf16, #tpu.memory_space<vmem>>, vector<32x32xbf16>
    %c0_71 = arith.constant 0 : index
    %c0_72 = arith.constant 0 : index
    %152 = vector.load %arg21[%c0_71, %c0_72] : memref<1x32xf32, #tpu.memory_space<vmem>>, vector<1x32xf32>
    %c0_73 = arith.constant 0 : index
    %c0_74 = arith.constant 0 : index
    %153 = vector.load %arg29[%c0_73, %c0_74] : memref<8x32xbf16, #tpu.memory_space<vmem>>, vector<8x8xbf16>
    %c0_75 = arith.constant 0 : index
    %c0_76 = arith.constant 0 : index
    %154 = vector.load %arg28[%c0_75, %c0_76] : memref<8x64xbf16, #tpu.memory_space<vmem>>, vector<8x8xbf16>
    %c0_77 = arith.constant 0 : index
    %c32_78 = arith.constant 32 : index
    %155 = vector.load %arg28[%c0_77, %c32_78] : memref<8x64xbf16, #tpu.memory_space<vmem>>, vector<8x8xbf16>
    %cst_79 = arith.constant dense<0.000000e+00> : vector<8x8xf32>
    %156 = tpu.matmul %153, %154, %cst_79 {dimension_numbers = #tpu.dot_dimension_numbers<[1], [1], [0], [0], [0, 0, 1, 0], [], []>} : vector<8x8xbf16>, vector<8x8xbf16>, vector<8x8xf32> -> vector<8x8xf32>
    %157 = vector.broadcast %1 : f32 to vector<8x8xf32>
    %158 = arith.mulf %156, %157 : vector<8x8xf32>
    %159 = arith.addf %158, %23 : vector<8x8xf32>
    %cst_80 = arith.constant dense<0xFF800000> : vector<8xf32>
    %160 = vector.multi_reduction <maximumf>, %159, %cst_80 [1] : vector<8x8xf32> to vector<8xf32>
    %161 = vector.shape_cast %160 : vector<8xf32> to vector<8x1xf32>
    %162 = vector.broadcast %161 : vector<8x1xf32> to vector<8x8xf32>
    %163 = arith.subf %159, %162 : vector<8x8xf32>
    %164 = math.exp %163 : vector<8x8xf32>
    %cst_81 = arith.constant dense<0.000000e+00> : vector<8xf32>
    %165 = vector.multi_reduction <add>, %164, %cst_81 [1] : vector<8x8xf32> to vector<8xf32>
    %166 = vector.shape_cast %165 : vector<8xf32> to vector<8x1xf32>
    %167 = tpu.reciprocal %166 {approx = true} : vector<8x1xf32> -> vector<8x1xf32>
    %168 = vector.broadcast %167 : vector<8x1xf32> to vector<8x8xf32>
    %169 = arith.mulf %164, %168 : vector<8x8xf32>
    %170 = arith.truncf %169 : vector<8x8xf32> to vector<8x8xbf16>
    %cst_82 = arith.constant dense<0.000000e+00> : vector<8x8xf32>
    %171 = tpu.matmul %170, %155, %cst_82 {dimension_numbers = #tpu.dot_dimension_numbers<[1], [0], [0], [1], [0, 0, 1, 1], [], []>} : vector<8x8xbf16>, vector<8x8xbf16>, vector<8x8xf32> -> vector<8x8xf32>
    %172 = arith.truncf %171 : vector<8x8xf32> to vector<8x8xbf16>
    %c0_83 = arith.constant 0 : index
    %c0_84 = arith.constant 0 : index
    %173 = vector.load %arg30[%c0_83, %c0_84] : memref<8x32xbf16, #tpu.memory_space<vmem>>, vector<8x8xbf16>
    tpu.vector_store %arg30[%c0_83, %c0_84], %172 {strides = array<i32>} : memref<8x32xbf16, #tpu.memory_space<vmem>>, vector<8x8xbf16>,
    %c0_85 = arith.constant 0 : index
    %c8_86 = arith.constant 8 : index
    %174 = vector.load %arg29[%c0_85, %c8_86] : memref<8x32xbf16, #tpu.memory_space<vmem>>, vector<8x8xbf16>
    %c0_87 = arith.constant 0 : index
    %c8_88 = arith.constant 8 : index
    %175 = vector.load %arg28[%c0_87, %c8_88] : memref<8x64xbf16, #tpu.memory_space<vmem>>, vector<8x8xbf16>
    %c0_89 = arith.constant 0 : index
    %c40_90 = arith.constant 40 : index
    %176 = vector.load %arg28[%c0_89, %c40_90] : memref<8x64xbf16, #tpu.memory_space<vmem>>, vector<8x8xbf16>
    %cst_91 = arith.constant dense<0.000000e+00> : vector<8x8xf32>
    %177 = tpu.matmul %174, %175, %cst_91 {dimension_numbers = #tpu.dot_dimension_numbers<[1], [1], [0], [0], [0, 0, 1, 0], [], []>} : vector<8x8xbf16>, vector<8x8xbf16>, vector<8x8xf32> -> vector<8x8xf32>
    %178 = vector.broadcast %1 : f32 to vector<8x8xf32>
    %179 = arith.mulf %177, %178 : vector<8x8xf32>
    %180 = arith.addf %179, %23 : vector<8x8xf32>
    %cst_92 = arith.constant dense<0xFF800000> : vector<8xf32>
    %181 = vector.multi_reduction <maximumf>, %180, %cst_92 [1] : vector<8x8xf32> to vector<8xf32>
    %182 = vector.shape_cast %181 : vector<8xf32> to vector<8x1xf32>
    %183 = vector.broadcast %182 : vector<8x1xf32> to vector<8x8xf32>
    %184 = arith.subf %180, %183 : vector<8x8xf32>
    %185 = math.exp %184 : vector<8x8xf32>
    %cst_93 = arith.constant dense<0.000000e+00> : vector<8xf32>
    %186 = vector.multi_reduction <add>, %185, %cst_93 [1] : vector<8x8xf32> to vector<8xf32>
    %187 = vector.shape_cast %186 : vector<8xf32> to vector<8x1xf32>
    %188 = tpu.reciprocal %187 {approx = true} : vector<8x1xf32> -> vector<8x1xf32>
    %189 = vector.broadcast %188 : vector<8x1xf32> to vector<8x8xf32>
    %190 = arith.mulf %185, %189 : vector<8x8xf32>
    %191 = arith.truncf %190 : vector<8x8xf32> to vector<8x8xbf16>
    %cst_94 = arith.constant dense<0.000000e+00> : vector<8x8xf32>
    %192 = tpu.matmul %191, %176, %cst_94 {dimension_numbers = #tpu.dot_dimension_numbers<[1], [0], [0], [1], [0, 0, 1, 1], [], []>} : vector<8x8xbf16>, vector<8x8xbf16>, vector<8x8xf32> -> vector<8x8xf32>
    %193 = arith.truncf %192 : vector<8x8xf32> to vector<8x8xbf16>
    %c0_95 = arith.constant 0 : index
    %c8_96 = arith.constant 8 : index
    %194 = vector.load %arg30[%c0_95, %c8_96] : memref<8x32xbf16, #tpu.memory_space<vmem>>, vector<8x8xbf16>
    tpu.vector_store %arg30[%c0_95, %c8_96], %193 {strides = array<i32>} : memref<8x32xbf16, #tpu.memory_space<vmem>>, vector<8x8xbf16>,
    %c0_97 = arith.constant 0 : index
    %c16_98 = arith.constant 16 : index
    %195 = vector.load %arg29[%c0_97, %c16_98] : memref<8x32xbf16, #tpu.memory_space<vmem>>, vector<8x8xbf16>
    %c0_99 = arith.constant 0 : index
    %c16_100 = arith.constant 16 : index
    %196 = vector.load %arg28[%c0_99, %c16_100] : memref<8x64xbf16, #tpu.memory_space<vmem>>, vector<8x8xbf16>
    %c0_101 = arith.constant 0 : index
    %c48_102 = arith.constant 48 : index
    %197 = vector.load %arg28[%c0_101, %c48_102] : memref<8x64xbf16, #tpu.memory_space<vmem>>, vector<8x8xbf16>
    %cst_103 = arith.constant dense<0.000000e+00> : vector<8x8xf32>
    %198 = tpu.matmul %195, %196, %cst_103 {dimension_numbers = #tpu.dot_dimension_numbers<[1], [1], [0], [0], [0, 0, 1, 0], [], []>} : vector<8x8xbf16>, vector<8x8xbf16>, vector<8x8xf32> -> vector<8x8xf32>
    %199 = vector.broadcast %1 : f32 to vector<8x8xf32>
    %200 = arith.mulf %198, %199 : vector<8x8xf32>
    %201 = arith.addf %200, %23 : vector<8x8xf32>
    %cst_104 = arith.constant dense<0xFF800000> : vector<8xf32>
    %202 = vector.multi_reduction <maximumf>, %201, %cst_104 [1] : vector<8x8xf32> to vector<8xf32>
    %203 = vector.shape_cast %202 : vector<8xf32> to vector<8x1xf32>
    %204 = vector.broadcast %203 : vector<8x1xf32> to vector<8x8xf32>
    %205 = arith.subf %201, %204 : vector<8x8xf32>
    %206 = math.exp %205 : vector<8x8xf32>
    %cst_105 = arith.constant dense<0.000000e+00> : vector<8xf32>
    %207 = vector.multi_reduction <add>, %206, %cst_105 [1] : vector<8x8xf32> to vector<8xf32>
    %208 = vector.shape_cast %207 : vector<8xf32> to vector<8x1xf32>
    %209 = tpu.reciprocal %208 {approx = true} : vector<8x1xf32> -> vector<8x1xf32>
    %210 = vector.broadcast %209 : vector<8x1xf32> to vector<8x8xf32>
    %211 = arith.mulf %206, %210 : vector<8x8xf32>
    %212 = arith.truncf %211 : vector<8x8xf32> to vector<8x8xbf16>
    %cst_106 = arith.constant dense<0.000000e+00> : vector<8x8xf32>
    %213 = tpu.matmul %212, %197, %cst_106 {dimension_numbers = #tpu.dot_dimension_numbers<[1], [0], [0], [1], [0, 0, 1, 1], [], []>} : vector<8x8xbf16>, vector<8x8xbf16>, vector<8x8xf32> -> vector<8x8xf32>
    %214 = arith.truncf %213 : vector<8x8xf32> to vector<8x8xbf16>
    %c0_107 = arith.constant 0 : index
    %c16_108 = arith.constant 16 : index
    %215 = vector.load %arg30[%c0_107, %c16_108] : memref<8x32xbf16, #tpu.memory_space<vmem>>, vector<8x8xbf16>
    tpu.vector_store %arg30[%c0_107, %c16_108], %214 {strides = array<i32>} : memref<8x32xbf16, #tpu.memory_space<vmem>>, vector<8x8xbf16>,
    %c0_109 = arith.constant 0 : index
    %c24_110 = arith.constant 24 : index
    %216 = vector.load %arg29[%c0_109, %c24_110] : memref<8x32xbf16, #tpu.memory_space<vmem>>, vector<8x8xbf16>
    %c0_111 = arith.constant 0 : index
    %c24_112 = arith.constant 24 : index
    %217 = vector.load %arg28[%c0_111, %c24_112] : memref<8x64xbf16, #tpu.memory_space<vmem>>, vector<8x8xbf16>
    %c0_113 = arith.constant 0 : index
    %c56_114 = arith.constant 56 : index
    %218 = vector.load %arg28[%c0_113, %c56_114] : memref<8x64xbf16, #tpu.memory_space<vmem>>, vector<8x8xbf16>
    %cst_115 = arith.constant dense<0.000000e+00> : vector<8x8xf32>
    %219 = tpu.matmul %216, %217, %cst_115 {dimension_numbers = #tpu.dot_dimension_numbers<[1], [1], [0], [0], [0, 0, 1, 0], [], []>} : vector<8x8xbf16>, vector<8x8xbf16>, vector<8x8xf32> -> vector<8x8xf32>
    %220 = vector.broadcast %1 : f32 to vector<8x8xf32>
    %221 = arith.mulf %219, %220 : vector<8x8xf32>
    %222 = arith.addf %221, %23 : vector<8x8xf32>
    %cst_116 = arith.constant dense<0xFF800000> : vector<8xf32>
    %223 = vector.multi_reduction <maximumf>, %222, %cst_116 [1] : vector<8x8xf32> to vector<8xf32>
    %224 = vector.shape_cast %223 : vector<8xf32> to vector<8x1xf32>
    %225 = vector.broadcast %224 : vector<8x1xf32> to vector<8x8xf32>
    %226 = arith.subf %222, %225 : vector<8x8xf32>
    %227 = math.exp %226 : vector<8x8xf32>
    %cst_117 = arith.constant dense<0.000000e+00> : vector<8xf32>
    %228 = vector.multi_reduction <add>, %227, %cst_117 [1] : vector<8x8xf32> to vector<8xf32>
    %229 = vector.shape_cast %228 : vector<8xf32> to vector<8x1xf32>
    %230 = tpu.reciprocal %229 {approx = true} : vector<8x1xf32> -> vector<8x1xf32>
    %231 = vector.broadcast %230 : vector<8x1xf32> to vector<8x8xf32>
    %232 = arith.mulf %227, %231 : vector<8x8xf32>
    %233 = arith.truncf %232 : vector<8x8xf32> to vector<8x8xbf16>
    %cst_118 = arith.constant dense<0.000000e+00> : vector<8x8xf32>
    %234 = tpu.matmul %233, %218, %cst_118 {dimension_numbers = #tpu.dot_dimension_numbers<[1], [0], [0], [1], [0, 0, 1, 1], [], []>} : vector<8x8xbf16>, vector<8x8xbf16>, vector<8x8xf32> -> vector<8x8xf32>
    %235 = arith.truncf %234 : vector<8x8xf32> to vector<8x8xbf16>
    %c0_119 = arith.constant 0 : index
    %c24_120 = arith.constant 24 : index
    %236 = vector.load %arg30[%c0_119, %c24_120] : memref<8x32xbf16, #tpu.memory_space<vmem>>, vector<8x8xbf16>
    tpu.vector_store %arg30[%c0_119, %c24_120], %235 {strides = array<i32>} : memref<8x32xbf16, #tpu.memory_space<vmem>>, vector<8x8xbf16>,
    %c0_121 = arith.constant 0 : index
    %c0_122 = arith.constant 0 : index
    %237 = vector.load %arg30[%c0_121, %c0_122] : memref<8x32xbf16, #tpu.memory_space<vmem>>, vector<8x32xbf16>
    %cst_123 = arith.constant dense<0.000000e+00> : vector<8x32xf32>
    %238 = tpu.matmul %237, %151, %cst_123 {dimension_numbers = #tpu.dot_dimension_numbers<[1], [0], [0], [1], [0, 0, 1, 1], [], []>} : vector<8x32xbf16>, vector<32x32xbf16>, vector<8x32xf32> -> vector<8x32xf32>
    %239 = vector.broadcast %152 : vector<1x32xf32> to vector<8x32xf32>
    %240 = arith.addf %238, %239 : vector<8x32xf32>
    %241 = arith.addf %118, %240 : vector<8x32xf32>
    %c0_124 = arith.constant 0 : index
    %c0_125 = arith.constant 0 : index
    %242 = vector.load %arg10[%c0_124, %c0_125] : memref<1x32xf32, #tpu.memory_space<vmem>>, vector<1x32xf32>
    %c0_126 = arith.constant 0 : index
    %c0_127 = arith.constant 0 : index
    %243 = vector.load %arg11[%c0_126, %c0_127] : memref<1x32xf32, #tpu.memory_space<vmem>>, vector<1x32xf32>
    %cst_128 = arith.constant dense<0.000000e+00> : vector<8xf32>
    %244 = vector.multi_reduction <add>, %241, %cst_128 [1] : vector<8x32xf32> to vector<8xf32>
    %245 = vector.shape_cast %244 : vector<8xf32> to vector<8x1xf32>
    %cst_129 = arith.constant 3.200000e+01 : f32
    %246 = vector.broadcast %cst_129 : f32 to vector<8x1xf32>
    %247 = arith.divf %245, %246 : vector<8x1xf32>
    %248 = vector.broadcast %247 : vector<8x1xf32> to vector<8x32xf32>
    %249 = arith.subf %241, %248 : vector<8x32xf32>
    %250 = arith.mulf %249, %249 : vector<8x32xf32>
    %cst_130 = arith.constant dense<0.000000e+00> : vector<8xf32>
    %251 = vector.multi_reduction <add>, %250, %cst_130 [1] : vector<8x32xf32> to vector<8xf32>
    %252 = vector.shape_cast %251 : vector<8xf32> to vector<8x1xf32>
    %cst_131 = arith.constant 3.100000e+01 : f32
    %253 = vector.broadcast %cst_131 : f32 to vector<8x1xf32>
    %254 = arith.divf %252, %253 : vector<8x1xf32>
    %255 = vector.broadcast %247 : vector<8x1xf32> to vector<8x32xf32>
    %256 = arith.subf %241, %255 : vector<8x32xf32>
    %257 = vector.broadcast %242 : vector<1x32xf32> to vector<8x32xf32>
    %258 = arith.mulf %257, %256 : vector<8x32xf32>
    %259 = math.sqrt %254 : vector<8x1xf32>
    %cst_132 = arith.constant 9.99999997E-7 : f32
    %260 = vector.broadcast %cst_132 : f32 to vector<8x1xf32>
    %261 = arith.addf %259, %260 : vector<8x1xf32>
    %262 = vector.broadcast %261 : vector<8x1xf32> to vector<8x32xf32>
    %263 = arith.divf %258, %262 : vector<8x32xf32>
    %264 = vector.broadcast %243 : vector<1x32xf32> to vector<8x32xf32>
    %265 = arith.addf %263, %264 : vector<8x32xf32>
    %266 = arith.truncf %265 : vector<8x32xf32> to vector<8x32xbf16>
    %c0_133 = arith.constant 0 : index
    %c0_134 = arith.constant 0 : index
    %267 = vector.load %arg22[%c0_133, %c0_134] : memref<32x64xbf16, #tpu.memory_space<vmem>>, vector<32x64xbf16>
    %cst_135 = arith.constant dense<0.000000e+00> : vector<8x64xf32>
    %268 = tpu.matmul %266, %267, %cst_135 {dimension_numbers = #tpu.dot_dimension_numbers<[1], [0], [0], [1], [0, 0, 1, 1], [], []>} : vector<8x32xbf16>, vector<32x64xbf16>, vector<8x64xf32> -> vector<8x64xf32>
    %c0_136 = arith.constant 0 : index
    %c0_137 = arith.constant 0 : index
    %269 = vector.load %arg23[%c0_136, %c0_137] : memref<1x64xf32, #tpu.memory_space<vmem>>, vector<1x64xf32>
    %270 = vector.broadcast %269 : vector<1x64xf32> to vector<8x64xf32>
    %271 = arith.addf %268, %270 : vector<8x64xf32>
    %cst_138 = arith.constant 0.000000e+00 : f32
    %272 = vector.broadcast %cst_138 : f32 to vector<8x64xf32>
    %273 = arith.maximumf %271, %272 : vector<8x64xf32>
    %274 = arith.truncf %273 : vector<8x64xf32> to vector<8x64xbf16>
    %c0_139 = arith.constant 0 : index
    %c0_140 = arith.constant 0 : index
    %275 = vector.load %arg24[%c0_139, %c0_140] : memref<64x32xbf16, #tpu.memory_space<vmem>>, vector<64x32xbf16>
    %cst_141 = arith.constant dense<0.000000e+00> : vector<8x32xf32>
    %276 = tpu.matmul %274, %275, %cst_141 {dimension_numbers = #tpu.dot_dimension_numbers<[1], [0], [0], [1], [0, 0, 1, 1], [], []>} : vector<8x64xbf16>, vector<64x32xbf16>, vector<8x32xf32> -> vector<8x32xf32>
    %c0_142 = arith.constant 0 : index
    %c0_143 = arith.constant 0 : index
    %277 = vector.load %arg25[%c0_142, %c0_143] : memref<1x32xf32, #tpu.memory_space<vmem>>, vector<1x32xf32>
    %278 = vector.broadcast %277 : vector<1x32xf32> to vector<8x32xf32>
    %279 = arith.addf %276, %278 : vector<8x32xf32>
    %280 = arith.addf %241, %279 : vector<8x32xf32>
    %c0_144 = arith.constant 0 : index
    %c0_145 = arith.constant 0 : index
    %c0_146 = arith.constant 0 : index
    %281 = vector.load %arg26[%c0_144, %c0_145, %c0_146] : memref<1x8x32xf32, #tpu.memory_space<vmem>>, vector<1x8x32xf32>
    %282 = vector.shape_cast %281 : vector<1x8x32xf32> to vector<8x32xf32>
    %283 = vector.shape_cast %280 : vector<8x32xf32> to vector<1x8x32xf32>
    tpu.vector_store %arg26[%c0_144, %c0_145, %c0_146], %283 {strides = array<i32>} : memref<1x8x32xf32, #tpu.memory_space<vmem>>, vector<1x8x32xf32>,
    return
  }
  func.func @transform_0(%arg0: i32, %arg1: i32) -> (i32, i32, i32) {
    %c0_i32 = arith.constant 0 : i32
    %c0_i32_0 = arith.constant 0 : i32
    %c0_i32_1 = arith.constant 0 : i32
    return %arg0, %c0_i32, %c0_i32_0 : i32, i32, i32
  }
  func.func @transform_1(%arg0: i32, %arg1: i32) -> (i32, i32, i32) {
    %c0_i32 = arith.constant 0 : i32
    %c0_i32_0 = arith.constant 0 : i32
    %c0_i32_1 = arith.constant 0 : i32
    return %arg0, %c0_i32, %c0_i32_0 : i32, i32, i32
  }
  func.func @transform_2(%arg0: i32, %arg1: i32) -> (i32, i32, i32) {
    %c0_i32 = arith.constant 0 : i32
    %c0_i32_0 = arith.constant 0 : i32
    return %arg0, %arg1, %c0_i32 : i32, i32, i32
  }
  func.func @transform_3(%arg0: i32, %arg1: i32) -> (i32, i32, i32) {
    %c0_i32 = arith.constant 0 : i32
    %c0_i32_0 = arith.constant 0 : i32
    return %arg0, %arg1, %c0_i32 : i32, i32, i32
  }
  func.func @transform_4(%arg0: i32, %arg1: i32) -> (i32, i32) {
    %c0_i32 = arith.constant 0 : i32
    %c0_i32_0 = arith.constant 0 : i32
    %c0_i32_1 = arith.constant 0 : i32
    return %c0_i32, %c0_i32_0 : i32, i32
  }
  func.func @transform_5(%arg0: i32, %arg1: i32) -> (i32, i32) {
    %c0_i32 = arith.constant 0 : i32
    %c0_i32_0 = arith.constant 0 : i32
    %c0_i32_1 = arith.constant 0 : i32
    return %c0_i32, %c0_i32_0 : i32, i32
  }
  func.func @transform_6(%arg0: i32, %arg1: i32) -> (i32, i32) {
    %c0_i32 = arith.constant 0 : i32
    %c0_i32_0 = arith.constant 0 : i32
    %c0_i32_1 = arith.constant 0 : i32
    return %c0_i32, %c0_i32_0 : i32, i32
  }
  func.func @transform_7(%arg0: i32, %arg1: i32) -> (i32, i32) {
    %c0_i32 = arith.constant 0 : i32
    %c0_i32_0 = arith.constant 0 : i32
    %c0_i32_1 = arith.constant 0 : i32
    return %c0_i32, %c0_i32_0 : i32, i32
  }
  func.func @transform_8(%arg0: i32, %arg1: i32) -> (i32, i32) {
    %c0_i32 = arith.constant 0 : i32
    %c0_i32_0 = arith.constant 0 : i32
    %c0_i32_1 = arith.constant 0 : i32
    return %c0_i32, %c0_i32_0 : i32, i32
  }
  func.func @transform_9(%arg0: i32, %arg1: i32) -> (i32, i32) {
    %c0_i32 = arith.constant 0 : i32
    %c0_i32_0 = arith.constant 0 : i32
    %c0_i32_1 = arith.constant 0 : i32
    return %c0_i32, %c0_i32_0 : i32, i32
  }
  func.func @transform_10(%arg0: i32, %arg1: i32) -> (i32, i32) {
    %c0_i32 = arith.constant 0 : i32
    %c0_i32_0 = arith.constant 0 : i32
    %c0_i32_1 = arith.constant 0 : i32
    return %c0_i32, %c0_i32_0 : i32, i32
  }
  func.func @transform_11(%arg0: i32, %arg1: i32) -> (i32, i32) {
    %c0_i32 = arith.constant 0 : i32
    %c0_i32_0 = arith.constant 0 : i32
    %c0_i32_1 = arith.constant 0 : i32
    return %c0_i32, %c0_i32_0 : i32, i32
  }
  func.func @transform_12(%arg0: i32, %arg1: i32) -> (i32, i32) {
    %c0_i32 = arith.constant 0 : i32
    %c0_i32_0 = arith.constant 0 : i32
    %c0_i32_1 = arith.constant 0 : i32
    return %c0_i32, %c0_i32_0 : i32, i32
  }
  func.func @transform_13(%arg0: i32, %arg1: i32) -> (i32, i32) {
    %c0_i32 = arith.constant 0 : i32
    %c0_i32_0 = arith.constant 0 : i32
    %c0_i32_1 = arith.constant 0 : i32
    return %c0_i32, %c0_i32_0 : i32, i32
  }
  func.func @transform_14(%arg0: i32, %arg1: i32) -> (i32, i32) {
    %c0_i32 = arith.constant 0 : i32
    %c0_i32_0 = arith.constant 0 : i32
    %c0_i32_1 = arith.constant 0 : i32
    return %c0_i32, %c0_i32_0 : i32, i32
  }
  func.func @transform_15(%arg0: i32, %arg1: i32) -> (i32, i32) {
    %c0_i32 = arith.constant 0 : i32
    %c0_i32_0 = arith.constant 0 : i32
    %c0_i32_1 = arith.constant 0 : i32
    return %c0_i32, %c0_i32_0 : i32, i32
  }
  func.func @transform_16(%arg0: i32, %arg1: i32) -> (i32, i32) {
    %c0_i32 = arith.constant 0 : i32
    %c0_i32_0 = arith.constant 0 : i32
    %c0_i32_1 = arith.constant 0 : i32
    return %c0_i32, %c0_i32_0 : i32, i32
  }
  func.func @transform_17(%arg0: i32, %arg1: i32) -> (i32, i32) {
    %c0_i32 = arith.constant 0 : i32
    %c0_i32_0 = arith.constant 0 : i32
    %c0_i32_1 = arith.constant 0 : i32
    return %c0_i32, %c0_i32_0 : i32, i32
  }
  func.func @transform_18(%arg0: i32, %arg1: i32) -> (i32, i32) {
    %c0_i32 = arith.constant 0 : i32
    %c0_i32_0 = arith.constant 0 : i32
    %c0_i32_1 = arith.constant 0 : i32
    return %c0_i32, %c0_i32_0 : i32, i32
  }
  func.func @transform_19(%arg0: i32, %arg1: i32) -> (i32, i32) {
    %c0_i32 = arith.constant 0 : i32
    %c0_i32_0 = arith.constant 0 : i32
    %c0_i32_1 = arith.constant 0 : i32
    return %c0_i32, %c0_i32_0 : i32, i32
  }
  func.func @transform_20(%arg0: i32, %arg1: i32) -> (i32, i32) {
    %c0_i32 = arith.constant 0 : i32
    %c0_i32_0 = arith.constant 0 : i32
    %c0_i32_1 = arith.constant 0 : i32
    return %c0_i32, %c0_i32_0 : i32, i32
  }
  func.func @transform_21(%arg0: i32, %arg1: i32) -> (i32, i32) {
    %c0_i32 = arith.constant 0 : i32
    %c0_i32_0 = arith.constant 0 : i32
    %c0_i32_1 = arith.constant 0 : i32
    return %c0_i32, %c0_i32_0 : i32, i32
  }
  func.func @transform_22(%arg0: i32, %arg1: i32) -> (i32, i32) {
    %c0_i32 = arith.constant 0 : i32
    %c0_i32_0 = arith.constant 0 : i32
    %c0_i32_1 = arith.constant 0 : i32
    return %c0_i32, %c0_i32_0 : i32, i32
  }
  func.func @transform_23(%arg0: i32, %arg1: i32) -> (i32, i32) {
    %c0_i32 = arith.constant 0 : i32
    %c0_i32_0 = arith.constant 0 : i32
    %c0_i32_1 = arith.constant 0 : i32
    return %c0_i32, %c0_i32_0 : i32, i32
  }
  func.func @transform_24(%arg0: i32, %arg1: i32) -> (i32, i32, i32) {
    %c0_i32 = arith.constant 0 : i32
    %c0_i32_0 = arith.constant 0 : i32
    return %arg0, %arg1, %c0_i32 : i32, i32, i32
  }
}

</mosaic_0001>

<bundles_post_ra>
// kernel: self_align_attention_forward.1
= control target key start
LH: loop header
LB: loop body
LE: loop exit
PB: predicated region body
PF: predicated region fallthrough
CT: control target
= control target key end

     0   :  { %s4265_s0 = inlined_call_operand.vmem [shape: f32[2,8,32], index: 0, kind: input, shape index: {}]   ;;  %s4266_s1 = inlined_call_operand.vmem [shape: f32[2,8,32], index: 1, kind: input, shape index: {}]   ;;  %s4267_s2 = inlined_call_operand.hbm [shape: s8[2,8,8], index: 2, kind: input, shape index: {}]   ;;  %s4268_s3 = inlined_call_operand.hbm [shape: s8[2,8,8], index: 3, kind: input, shape index: {}]   ;;  %s4269_s4 = inlined_call_operand.vmem [shape: f32[1,32], index: 4, kind: input, shape index: {}]   ;;  %s4270_s5 = inlined_call_operand.hbm [shape: f32[1,32], index: 5, kind: input, shape index: {}]   ;;  %s4271_s6 = inlined_call_operand.hbm [shape: f32[1,32], index: 6, kind: input, shape index: {}]   ;;  %s4272_s7 = inlined_call_operand.hbm [shape: f32[1,32], index: 7, kind: input, shape index: {}]   ;;  %s4273_s8 = inlined_call_operand.hbm [shape: f32[1,32], index: 8, kind: input, shape index: {}]   ;;  %s4274_s9 = inlined_call_operand.hbm [shape: f32[1,32], index: 9, kind: input, shape index: {}]   ;;  %s4275_s10 = inlined_call_operand.vmem [shape: bf16[32,96], index: 10, kind: input, shape index: {}]   ;;  %s4276_s11 = inlined_call_operand.hbm [shape: f32[1,96], index: 11, kind: input, shape index: {}]   ;;  %s4277_s12 = inlined_call_operand.hbm [shape: bf16[32,32], index: 12, kind: input, shape index: {}]   ;;  %s4278_s13 = inlined_call_operand.hbm [shape: f32[1,32], index: 13, kind: input, shape index: {}]   ;;  %s4279_s14 = inlined_call_operand.hbm [shape: bf16[32,32], index: 14, kind: input, shape index: {}]   ;;  %s4280_s15 = inlined_call_operand.hbm [shape: f32[1,32], index: 15, kind: input, shape index: {}]   ;;  %s4281_s16 = inlined_call_operand.hbm [shape: bf16[32,64], index: 16, kind: input, shape index: {}]   ;;  %s4282_s17 = inlined_call_operand.hbm [shape: f32[1,64], index: 17, kind: input, shape index: {}]   ;;  %s4283_s18 = inlined_call_operand.hbm [shape: bf16[32,32], index: 18, kind: input, shape index: {}]   ;;  %s4284_s19 = inlined_call_operand.hbm [shape: f32[1,32], index: 19, kind: input, shape index: {}]   ;;  %s4285_s20 = inlined_call_operand.hbm [shape: bf16[32,64], index: 20, kind: input, shape index: {}]   ;;  %s4286_s21 = inlined_call_operand.hbm [shape: f32[1,64], index: 21, kind: input, shape index: {}]   ;;  %s4287_s22 = inlined_call_operand.vmem [shape: bf16[64,32], index: 22, kind: input, shape index: {}]   ;;  %s4288_s23 = inlined_call_operand.hbm [shape: f32[1,32], index: 23, kind: input, shape index: {}]   ;;  %s4289_s24 = inlined_call_operand.hbm [shape: f32[2,8,32], index: 24, kind: output, shape index: {}]  }
   0x1   :  { %4298 = sst [smem:[#allocation53_spill]] %s4265_s0 }
   0x2   :  { %4299 = sst [smem:[#allocation54_spill]] %s4266_s1 }
   0x3   :  { %4300 = sst [smem:[#allocation55_spill]] %s4267_s2 }
   0x4   :  { %4301 = sst [smem:[#allocation56_spill]] %s4268_s3 }
   0x5   :  { %4302 = sst [smem:[#allocation57_spill]] %s4269_s4 }
   0x6   :  { %4303 = sst [smem:[#allocation58_spill]] %s4270_s5 }
   0x7   :  { %4304 = sst [smem:[#allocation59_spill]] %s4271_s6 }
   0x8   :  { %4305 = sst [smem:[#allocation60_spill]] %s4272_s7 }
   0x9   :  { %4306 = sst [smem:[#allocation61_spill]] %s4273_s8 }
   0xa   :  { %4307 = sst [smem:[#allocation62_spill]] %s4274_s9 }
   0xb   :  { %4308 = sst [smem:[#allocation63_spill]] %s4275_s10 }
   0xc   :  { %4309 = sst [smem:[#allocation64_spill]] %s4276_s11 }
   0xd   :  { %4310 = sst [smem:[#allocation65_spill]] %s4277_s12 }
   0xe   :  { %4311 = sst [smem:[#allocation66_spill]] %s4278_s13 }
   0xf   :  { %4312 = sst [smem:[#allocation67_spill]] %s4279_s14 }
  0x10   :  { %4313 = sst [smem:[#allocation68_spill]] %s4280_s15 }
  0x11   :  { %4314 = sst [smem:[#allocation69_spill]] %s4281_s16 }
  0x12   :  { %4315 = sst [smem:[#allocation70_spill]] %s4282_s17 }
  0x13   :  { %4316 = sst [smem:[#allocation71_spill]] %s4283_s18 }
  0x14   :  { %4317 = sst [smem:[#allocation72_spill]] %s4284_s19 }
  0x15   :  { %4318 = sst [smem:[#allocation73_spill]] %s4287_s22 }
  0x16   :  { %4319 = sst [smem:[#allocation74_spill]] %s4288_s23 }
  0x17   :  { %4320 = sst [smem:[#allocation75_spill]] %s4289_s24 }
  0x18   :  { %29 = vsyncpa [#allocation7], 0 }
  0x19   :  { %31 = vsyncpa [#allocation7 + $0x1], 0 }
  0x1a   :  { %32 = vsyncpa [#allocation10], 0 }
  0x1b   :  { %34 = vsyncpa [#allocation10 + $0x1], 0 }
  0x1c   :  { %35 = vsyncpa [#allocation13], 0 }
  0x1d   :  { %36 = vsyncpa [#allocation16], 0 }
  0x1e   :  { %37 = vsyncpa [#allocation19], 0 }
  0x1f   :  { %38 = vsyncpa [#allocation22], 0 }
  0x20   :  { %39 = vsyncpa [#allocation25], 0 }
  0x21   :  { %40 = vsyncpa [#allocation28], 0 }
  0x22   :  { %41 = vsyncpa [#allocation31], 0 }
  0x23   :  { %42 = vsyncpa [#allocation34], 0 }
  0x24   :  { %43 = vsyncpa [#allocation8], 0 }
  0x25   :  { %45 = vsyncpa [#allocation8 + $0x1], 0  ;;  %s3792_s5 = smov 0   ;;  %s3794_s26 = smov 0  }
  0x26   :  { %s3796_s27 = smov 0   ;;  %s3798_s28 = smov 0  }
  0x27   :  { %s3800_s6 = smov 0   ;;  %s3802_s2 = smov 0  }
  0x28 LB: > { %4321 = sst [smem:[#allocation49_spill]] %s3610_s5  ;;  %s3823_s29 = sadd.s32 4294967295, %s3630_s2   ;;  %s3630_s2 = sphi %s3802_s2, %s51_s2   ;;  %s3626_s6 = sphi %s3800_s6, %s4365_s6   ;;  %s3622_s28 = sphi %s3798_s28, %s4364_s28   ;;  %s3618_s27 = sphi %s3796_s27, %s4363_s27   ;;  %s3614_s26 = sphi %s3794_s26, %s4362_s26   ;;  %s3610_s5 = sphi %s3792_s5, %s4361_s5  }
  0x29   : > { %4322 = sst [smem:[#allocation50_spill]] %s3622_s28  ;;  %p2466_p0 = scmp.ge.s32.totalorder %s3630_s2, 1 }
  0x2a   : > { %4323 = sst [smem:[#allocation51_spill]] %s3823_s29  ;;  %p138_p1 = scmp.eq.s32.totalorder %s3823_s29, 0 }
  0x2b   : > { %p624_p2 = scmp.lt.s32.totalorder %s3630_s2, 3  ;;  %s4324_s30 = sld [smem:[#allocation58_spill]] }
  0x2c   : > { %p2484_p4 = scmp.ge.s32.totalorder %s3630_s2, 2  ;;  %s3632_s8 = smov [#allocation11]  }
  0x2d   : > { %p3831_p3 = pnand %p2466_p0, %p624_p2  ;;  %s641_s4 = sshll.u32 %s3632_s8, 4  ;;  %s642_s4 = int_to_ptr.vmem [resolvable:$true] %s641_s4 }
  0x2e   : > { %s4327_s22 = sld [smem:[#allocation59_spill]]  ;;  %s3633_s23 = smov [#allocation12]  }
  0x2f   : > { %s4325_s25 = scalar_select %p3831_p3, 1, 0 }
  0x30   : > { %p2695_p5 = pneg %p3831_p3  ;;  %s4329_s28 = sld [smem:[#allocation61_spill]] }
  0x31   : > { %s639_s3 = sshll.u32 %s4324_s30, 4  ;;  %4326 = sst [smem:[#allocation52_spill]] %s4325_s25  ;;  %s640_s3 = int_to_ptr.hbm [resolvable:$true] %s639_s3 }
  0x32   : > { %p3843_p6 = pnand %p2695_p5, %p138_p1  ;;  %s653_s8 = sshll.u32 %s3633_s23, 4  ;;  %s654_s8 = int_to_ptr.vmem [resolvable:$true] %s653_s8 }
  0x33   : > { %s4330_s11 = sld [smem:[#allocation64_spill]]  ;;  %s3634_s29 = smov [#allocation15]  }
  0x34   : > { %s651_s10 = sshll.u32 %s4327_s22, 4  ;;  %s677_s5 = sshll.u32 %s3634_s29, 4  ;;  %s652_s10 = int_to_ptr.hbm [resolvable:$true] %s651_s10  ;;  %s678_s5 = int_to_ptr.vmem [resolvable:$true] %s677_s5 }
  0x35   : > { %2698 = dma.hbm_to_vmem [thread:$0]  (!%p3843_p6), %s640_s3, 16, %s642_s4, [#allocation10]  }
  0x36   : > { %s675_s25 = sshll.u32 %s4329_s28, 4  ;;  %s3635_s28 = smov [#allocation18]   ;;  %s676_s25 = int_to_ptr.hbm [resolvable:$true] %s675_s25 }
  0x37   : > { %2701 = dma.hbm_to_vmem [thread:$0]  (!%p3843_p6), %s652_s10, 16, %s654_s8, [#allocation13]  }
  0x38   : > { %2707 = dma.hbm_to_vmem [thread:$0]  (!%p3843_p6), %s676_s25, 16, %s678_s5, [#allocation16]  }
  0x39   : > { %s702_s1 = sshll.u32 %s4330_s11, 4  ;;  %s704_s23 = sshll.u32 %s3635_s28, 4  ;;  %s703_s1 = int_to_ptr.hbm [resolvable:$true] %s702_s1  ;;  %s705_s23 = int_to_ptr.vmem [resolvable:$true] %s704_s23 }
  0x3a   : > { %s4331_s13 = sld [smem:[#allocation66_spill]]  ;;  %s3636_s29 = smov [#allocation21]  }
  0x3b   : > { %2713 = dma.hbm_to_vmem [thread:$0]  (!%p3843_p6), %s703_s1, 16, %s705_s23, [#allocation19]  }
  0x3c   : > { %s4332_s15 = sld [smem:[#allocation68_spill]]  ;;  %s730_s22 = sshll.u32 %s3636_s29, 4  ;;  %s731_s22 = int_to_ptr.vmem [resolvable:$true] %s730_s22 }
  0x3d   : > { %s3637_s5 = smov [#allocation24]   ;;  %s4333_s17 = sld [smem:[#allocation70_spill]] }
  0x3e   : > { %s756_s25 = sshll.u32 %s3637_s5, 4  ;;  %s4334_s19 = sld [smem:[#allocation72_spill]]  ;;  %s757_s25 = int_to_ptr.vmem [resolvable:$true] %s756_s25 }
  0x3f   : > { %s3638_s10 = smov [#allocation27]   ;;  %s832_s24 = sshll.u32 %s4286_s21, 4  ;;  %s833_s24 = int_to_ptr.hbm [resolvable:$true] %s832_s24 }
  0x40   : > { %s728_s3 = sshll.u32 %s4331_s13, 4  ;;  %s782_s4 = sshll.u32 %s3638_s10, 4  ;;  %s729_s3 = int_to_ptr.hbm [resolvable:$true] %s728_s3  ;;  %s783_s4 = int_to_ptr.vmem [resolvable:$true] %s782_s4 }
  0x41   : > { %2719 = dma.hbm_to_vmem [thread:$0]  (!%p3843_p6), %s729_s3, 16, %s731_s22, [#allocation22]  }
  0x42   : > { %s754_s8 = sshll.u32 %s4332_s15, 4  ;;  %s3639_s3 = smov [#allocation30]   ;;  %s755_s8 = int_to_ptr.hbm [resolvable:$true] %s754_s8 }
  0x43   : > { %s780_s7 = sshll.u32 %s4333_s17, 4  ;;  %s808_s29 = sshll.u32 %s3639_s3, 4  ;;  %s781_s7 = int_to_ptr.hbm [resolvable:$true] %s780_s7  ;;  %s809_s29 = int_to_ptr.vmem [resolvable:$true] %s808_s29 }
  0x44   : > { %2725 = dma.hbm_to_vmem [thread:$0]  (!%p3843_p6), %s755_s8, 16, %s757_s25, [#allocation25]  }
  0x45   : > { %s806_s30 = sshll.u32 %s4334_s19, 4  ;;  %s4335_s28 = sld [smem:[#allocation60_spill]]  ;;  %s807_s30 = int_to_ptr.hbm [resolvable:$true] %s806_s30 }
  0x46   : > { %2731 = dma.hbm_to_vmem [thread:$0]  (!%p3843_p6), %s781_s7, 16, %s783_s4, [#allocation28]  }
  0x47   : > { %2737 = dma.hbm_to_vmem [thread:$0]  (!%p3843_p6), %s807_s30, 16, %s809_s29, [#allocation31]  }
  0x48   : > { %s3640_s23 = smov [#allocation33]   ;;  %s3641_s7 = smov [#allocation14]  }
  0x49   : > { %s834_s10 = sshll.u32 %s3640_s23, 4  ;;  %s665_s4 = sshll.u32 %s3641_s7, 4  ;;  %s835_s10 = int_to_ptr.vmem [resolvable:$true] %s834_s10  ;;  %s666_s4 = int_to_ptr.vmem [resolvable:$true] %s665_s4 }
  0x4a   : > { %2743 = dma.hbm_to_vmem [thread:$0]  (!%p3843_p6), %s833_s24, 16, %s835_s10, [#allocation34]  }
  0x4b   : > { %s663_s1 = sshll.u32 %s4335_s28, 4  ;;  %s4336_s9 = sld [smem:[#allocation62_spill]]  ;;  %s664_s1 = int_to_ptr.hbm [resolvable:$true] %s663_s1 }
  0x4c   : > { %2704 = dma.hbm_to_vmem [thread:$0]  (!%p3843_p6), %s664_s1, 16, %s666_s4, [#allocation13]  }
  0x4d   : > { %s4337_s12 = sld [smem:[#allocation65_spill]]  ;;  %s3642_s25 = smov [#allocation17]  }
  0x4e   : > { %s689_s28 = sshll.u32 %s3642_s25, 4  ;;  %s3643_s24 = smov [#allocation20]   ;;  %s690_s28 = int_to_ptr.vmem [resolvable:$true] %s689_s28 }
  0x4f   : > { %s715_s23 = sshll.u32 %s3643_s24, 4  ;;  %s3644_s10 = smov 64   ;;  %s716_s23 = int_to_ptr.vmem [resolvable:$true] %s715_s23 }
  0x50   : > { %s3645_s7 = smov 4   ;;  %s4338_s14 = sld [smem:[#allocation67_spill]] }
  0x51   : > { %s687_s5 = sshll.u32 %s4336_s9, 4  ;;  %s3646_s22 = smov [#allocation23]   ;;  %s688_s5 = int_to_ptr.hbm [resolvable:$true] %s687_s5 }
  0x52   : > { %2710 = dma.hbm_to_vmem [thread:$0]  (!%p3843_p6), %s688_s5, 16, %s690_s28, [#allocation16]  }
  0x53   : > { %s713_s8 = sshll.u32 %s4337_s12, 4  ;;  %s741_s30 = sshll.u32 %s3646_s22, 4  ;;  %s714_s8 = int_to_ptr.hbm [resolvable:$true] %s713_s8  ;;  %s742_s30 = int_to_ptr.vmem [resolvable:$true] %s741_s30 }
  0x54   : > { %2716 = dma.hbm_to_vmem [thread:$0]  (!%p3843_p6), %s714_s8, 256, %s716_s23, [#allocation19], %s3644_s10, %s3644_s10, %s3645_s7  }
  0x55   : > { %s4339_s16 = sld [smem:[#allocation69_spill]]  ;;  %s3647_s8 = smov [#allocation26]  }
  0x56   : > { %s739_s3 = sshll.u32 %s4338_s14, 4  ;;  %s767_s28 = sshll.u32 %s3647_s8, 4  ;;  %s740_s3 = int_to_ptr.hbm [resolvable:$true] %s739_s3  ;;  %s768_s28 = int_to_ptr.vmem [resolvable:$true] %s767_s28 }
  0x57   : > { %2722 = dma.hbm_to_vmem [thread:$0]  (!%p3843_p6), %s740_s3, 256, %s742_s30, [#allocation22], %s3644_s10, %s3644_s10, %s3645_s7  }
  0x58   : > { %s4340_s18 = sld [smem:[#allocation71_spill]]  ;;  %s817_s3 = sshll.u32 %s4285_s20, 4  ;;  %s818_s3 = int_to_ptr.hbm [resolvable:$true] %s817_s3 }
  0x59   : > { %s3648_s30 = smov [#allocation29]   ;;  %s3649_s29 = smov [#allocation32]  }
  0x5a   : > { %s793_s5 = sshll.u32 %s3648_s30, 4  ;;  %s819_s8 = sshll.u32 %s3649_s29, 4  ;;  %s794_s5 = int_to_ptr.vmem [resolvable:$true] %s793_s5  ;;  %s820_s8 = int_to_ptr.vmem [resolvable:$true] %s819_s8 }
  0x5b   : > { %s765_s25 = sshll.u32 %s4339_s16, 4  ;;  %s4342_s23 = sld [smem:[#allocation74_spill]]  ;;  %s766_s25 = int_to_ptr.hbm [resolvable:$true] %s765_s25 }
  0x5c   : > { %2728 = dma.hbm_to_vmem [thread:$0]  (!%p3843_p6), %s766_s25, 256, %s768_s28, [#allocation25], %s3644_s10, %s3644_s10, %s3645_s7  }
  0x5d   : > { %s4341_s25 = sld [smem:[#allocation49_spill]]  ;;  %s63_s29 = sadd.s32 1, %s3626_s6 }
  0x5e   : > { %s791_s1 = sshll.u32 %s4340_s18, 4  ;;  %s4343_s22 = sld [smem:[#allocation51_spill]]  ;;  %s792_s1 = int_to_ptr.hbm [resolvable:$true] %s791_s1 }
  0x5f   : > { %2734 = dma.hbm_to_vmem [thread:$0]  (!%p3843_p6), %s792_s1, 256, %s794_s5, [#allocation28], %s3644_s10, %s3644_s10, %s3645_s7  }
  0x60   : > { %2740 = dma.hbm_to_vmem [thread:$0]  (!%p3843_p6), %s818_s3, 256, %s820_s8, [#allocation31], %s3644_s10, %s3644_s10, %s3645_s7  }
  0x61   : > { %s847_s4 = sshll.u32 %s4342_s23, 4  ;;  %s3650_s1 = smov [#allocation35]   ;;  %s848_s4 = int_to_ptr.hbm [resolvable:$true] %s847_s4 }
  0x62   : > { %s849_s30 = sshll.u32 %s3650_s1, 4  ;;  %s2465_s5 = sadd.s32 4294967294, %s3630_s2   ;;  %s850_s30 = int_to_ptr.vmem [resolvable:$true] %s849_s30 }
  0x63   : > { %2746 = dma.hbm_to_vmem [thread:$0]  (!%p3843_p6), %s848_s4, 16, %s850_s30, [#allocation34]  }
  0x64   : > { %s124_s28 = sadd.s32 1, %s3618_s27  ;;  %p65_p7 = scmp.ge.s32.totalorder %s63_s29, 2 }
  0x65   : > { %p131_p8 = scmp.ne.s32.totalorder %s3618_s27, %s3614_s26  ;;  %p132_p9 = scmp.eq.s32.totalorder %s3630_s2, 0 }
  0x66   : > { %p137_p10 = scmp.ne.s32.totalorder %s3614_s26, %s4341_s25  ;;  %s4367_s29 = smov (%p65_p7, %s63_s29), 0 }
  0x67   : > { %p3951_p11 = por %p132_p9, %p131_p8  ;;  %s119_s7 = ssub.s32 %s3626_s6, %s4367_s29 }
  0x68   : > { %p3957_p12 = por %p138_p1, %p137_p10  ;;  %p611_p13 = scmp.eq.s32.totalorder %s4343_s22, 1 }
  0x69   : > { %p122_p0 = scmp.eq.s32.totalorder %s119_s7, 0  ;;  %p617_p2 = scmp.eq.s32.totalorder %s2465_s5, 1 }
  0x6a   : > { %p3964_p5 = por %p611_p13, %p131_p8  ;;  %p2775_p6 = scmp.lt.s32.totalorder %s3630_s2, 2 }
  0x6b   : > { %s3970_s25 = scalar_select %p122_p0, %s3618_s27, %s124_s28  }
  0x6c   : > { %p3972_p7 = por %p617_p2, %p137_p10  ;;  %s874_s24 = sand.u32 1, %s3618_s27  }
  0x6d   : > { %s2485_s23 = sshll.u32 %s874_s24, 1  ;;  %s2486_s4 = sshll.u32 %s3626_s6, 1 }
  0x6e   : > { %s4348_s30 = sld [smem:[#allocation55_spill]]  ;;  %s878_s5 = scalar_lea.vmem [#allocation6], %s2485_s23 }
  0x6f   : > { %s887_s9 = sshll.u32 %s878_s5, 4  ;;  %p2748_p8 = pnand %p2775_p6, %p3951_p11  ;;  %s888_s9 = int_to_ptr.vmem [resolvable:$true] %s887_s9 }
  0x70   : > { %s4349_s13 = sld [smem:[#allocation56_spill]]  ;;  %s894_s15 = sand.u32 1, %s3630_s2  }
  0x71   : > { %s875_s16 = scalar_lea.sflag [#allocation7], %s874_s24  ;;  %s898_s18 = scalar_lea.vmem [#allocation9], %s2485_s23 }
  0x72   : > { %s907_s19 = sshll.u32 %s898_s18, 4  ;;  %s895_s1 = scalar_lea.sflag [#allocation10], %s894_s15  ;;  %s908_s19 = int_to_ptr.vmem [resolvable:$true] %s907_s19 }
  0x73   : > { %s3990_s10 = sand.u32 (!%p3831_p3), 1, %s3614_s26  }
  0x74   : > { %s883_s7 = scalar_lea.hbm %s4348_s30, %s2486_s4  ;;  %s2490_s12 = sshll.u32 (!%p3831_p3), %s3990_s10, 1 }
  0x75   : > { %s885_s11 = sshll.u32 %s883_s7, 4  ;;  %916 = sbr.rel (%p3831_p3) target bundleno = 3915 (0xf4b), region = 116  ;;  %s886_s11 = int_to_ptr.hbm [resolvable:$true] %s885_s11 }
  0x76   : > { %s903_s14 = scalar_lea.hbm %s4349_s13, %s2486_s4  ;;  %s919_s13 = scalar_lea.sflag (!%p3831_p3), [#allocation7], %s3990_s10 }
  0x77   : > { %2750 = dma.hbm_to_vmem [thread:$0]  (!%p2748_p8), %s886_s11, 32, %s888_s9, %s875_s16  }
  0x78   : > { %s905_s17 = sshll.u32 %s903_s14, 4  ;;  %s3994_s24 = scalar_lea.vmem (!%p3831_p3), [#allocation6], %s2490_s12  ;;  %s906_s17 = int_to_ptr.hbm [resolvable:$true] %s905_s17 }
  0x79   : > { %2753 = dma.hbm_to_vmem [thread:$0]  (!%p2748_p8), %s906_s17, 32, %s908_s19, %s895_s1  }
  0x7a   : > { %3561 = dma.done.wait (%p3957_p12), %s919_s13, 32  }
  0x7b   : > { %3563 = vsyncadd (%p3957_p12), %s919_s13, 4294967264  ;;  %s4351_s9 = sld [smem:[#allocation51_spill]]  ;;  %s4001_s15 = scalar_lea.vmem [#allocation9], %s2490_s12 }
  0x81   : > { %s928_s11 = sand.u32 1, %s4351_s9  }
  0x82   : > { %s929_s14 = scalar_lea.sflag [#allocation10], %s928_s11 }
  0x83   : > { %3565 = dma.done.wait (%p3957_p12), %s929_s14, 32  }
  0x84   : > { %3567 = vsyncadd (%p3957_p12), %s929_s14, 4294967264 }
  0x85   : > { %3569 = dma.done.wait (%p138_p1), [#allocation10], 16  }
  0x86   : > { %3571 = vsyncadd (%p138_p1), [#allocation10], 4294967280 }
  0x87   : > { %3573 = dma.done.wait (%p138_p1), [#allocation13], 32  }
  0x88   : > { %3575 = vsyncadd (%p138_p1), [#allocation13], 4294967264 }
  0x89   : > { %3577 = dma.done.wait (%p138_p1), [#allocation16], 32  }
  0x8a   : > { %3579 = vsyncadd (%p138_p1), [#allocation16], 4294967264 }
  0x8b   : > { %3581 = dma.done.wait (%p138_p1), [#allocation19], 272  }
  0x8c   : > { %3583 = vsyncadd (%p138_p1), [#allocation19], 4294967024 }
  0x8d   : > { %3585 = dma.done.wait (%p138_p1), [#allocation22], 272  }
  0x8e   : > { %3587 = vsyncadd (%p138_p1), [#allocation22], 4294967024 }
  0x8f   : > { %3589 = dma.done.wait (%p138_p1), [#allocation25], 272  }
  0x90   : > { %3591 = vsyncadd (%p138_p1), [#allocation25], 4294967024 }
  0x91   : > { %3593 = dma.done.wait (%p138_p1), [#allocation28], 272  }
  0x92   : > { %3595 = vsyncadd (%p138_p1), [#allocation28], 4294967024 }
  0x93   : > { %3597 = dma.done.wait (%p138_p1), [#allocation31], 272  }
  0x94   : > { %3599 = vsyncadd (%p138_p1), [#allocation31], 4294967024 }
  0x95   : > { %3601 = dma.done.wait (%p138_p1), [#allocation34], 32  }
  0x96   : > { %3603 = vsyncadd (%p138_p1), [#allocation34], 4294967264  ;;  %s4352_s16 = sld [smem:[#allocation50_spill]]  ;;  %vm1112_vm0 = vcmask 261120   ;;  %v3651_v2 = vmov 32.0   ;;  %v3652_v14 = vmov 31.0  }
  0x97   : > { %s4353_s23 = sld [smem:[#allocation53_spill]]  ;;  %2890 = vrcp.f32 %v3651_v2  ;;  %v2878_v47 = vld [vmem:[#allocation11] ss:$0 sm:$0xff]  ;;  %v2879_v52 = vld [vmem:[#allocation18] ss:$0 sm:$0xff]  ;;  %vm1211_vm9 = vcmask 781312  }
  0x98   : > { %2892 = vrcp.f32 %v3652_v14  ;;  %s4354_s5 = sld [smem:[#allocation63_spill]]  ;;  %s3653_s11 = smov 88   ;;  %vm1322_vm10 = vcmask 1043456   ;;  %vm1283_vm11 = vcmask 64512   ;;  %vm1252_vm12 = vcmask 519168  }
  0x99   : > { %s4356_s9 = sld [smem:[#allocation57_spill]]  ;;  %s3654_s14 = smov 64   ;;  %vm1340_vm13 = vcmask 60416   ;;  %vm1413_vm14 = vcmask 126016   ;;  %vm1486_vm15 = vcmask 191616  }
  0x9a   : > { %s3655_s19 = smov 96   ;;  %s3656_s0 = smov 80  }
  0x9b   : > { %s3662_s22 = smov 56   ;;  %s3663_s12 = smov 40  }
  0x9c   : > { %p1096_p3 = scmp.lt.s32.totalorder %s4352_s16, 1  ;;  %s3664_s13 = smov 8  }
  0x9d   : > { %v2891_v3 = vpop.eup %2890 }
  0x9e   : > { %s4045_s17 = scalar_select %p1096_p3, %s4352_s16, 1  ;;  %v1117_v4 = vmul.f32 32.0, %v2891_v3  ;;  %vm1121_vm1 = vweird.f32 %v2891_v3  ;;  %v2893_v15 = vpop.eup %2892  ;;  %v2606_v19 = vld [vmem:[%s4354_s5 + $0x8] sm:$0xff] }
  0x9f   : > { %v1130_v16 = vmul.f32 31.0, %v2893_v15  ;;  %s4355_s1 = smov %s4354_s5  ;;  %1203 = vmatpush.bf16.msra.mxu0 %v2606_v19  ;;  %vm1134_vm2 = vweird.f32 %v2893_v15  ;;  %v2877_v40 = vld [vmem:[%s4356_s9] ss:$0 sm:$0xff]  ;;  %s4357_s5 = sld [smem:[#allocation54_spill]] }
  0xa0   : > { %s2510_s18 = sshll.u32 %s4045_s17, 3  ;;  %v1118_v5 = vsub.f32 1.0, %v1117_v4  ;;  %v2605_v20 = vld [vmem:[%s4355_s1] sm:$0xff]  ;;  %s3660_s17 = smov 104  }
  0xa1   : > { %s1099_s4 = scalar_lea.vmem %s4353_s23, %s2510_s18  ;;  %v1131_v17 = vsub.f32 1.0, %v1130_v16  ;;  %s3657_s23 = smov 120  }
  0xa2   : > { %v4053_v0 = vld [vmem:[%s1099_s4] sm:$0xff]  ;;  %v1119_v6 = vmul.f32 %v2891_v3, %v1118_v5  ;;  %s3658_s4 = smov 112   ;;  %s3665_s9 = smov 24  }
  0xa3   : > { %v1113_v1 = vsel %vm1112_vm0, %v4053_v0, 0.0  ;;  %v1132_v18 = vmul.f32 %v2893_v15, %v1131_v17  ;;  %1204 = vmatpush.bf16.msra.mxu0 %v2605_v20 }
  0xa4   : > { %1114 = vadd.xlane.f32.xlu0 %v1113_v1  ;;  %v1120_v7 = vadd.f32 %v2891_v3, %v1119_v6 }
  0xa5   : > { %v1133_v21 = vadd.f32 %v2893_v15, %v1132_v18  ;;  %s1103_s28 = scalar_lea.vmem %s4357_s5, %s2510_s18  ;;  %s3661_s18 = smov 48  }
  0xa6   : > { %v4057_v8 = vsel %vm1121_vm1, %v2891_v3, %v1120_v7  ;;  %vm1559_vm1 = vcmask 257216  }
  0xa7   : > { %v4068_v22 = vsel %vm1134_vm2, %v2893_v15, %v1133_v21 }
 0x117   : > { %v1115_v9 = vpop.xlane.xlu0 %1114 }
 0x118   : > { %v1123_v10 = vmul.f32 %v4057_v8, %v1115_v9 }
 0x11a   : > { %v1124_v11 = vsub.f32 %v4053_v0, %v1123_v10  ;;  %v2608_v10 = vld [vmem:[#allocation26 + $0x8] sm:$0xff] }
 0x11b   : > { %1244 = vmatpush.bf16.msra.mxu1 %v2608_v10 }
 0x11c   : > { %v1125_v12 = vmul.f32 %v1124_v11, %v1124_v11  ;;  %v1140_v45 = vmul.f32 %v2877_v40, %v1124_v11  ;;  %v2607_v11 = vld [vmem:[#allocation26] sm:$0xff] }
 0x11e   : > { %v1126_v13 = vsel %vm1112_vm0, %v1125_v12, 0.0  ;;  %v1213_v12 = vld [vmem:[%s1103_s28] sm:$0xff]  ;;  %s2509_s28 = sshll.u32 %s3990_s10, 3 }
 0x11f   : > { %1127 = vadd.xlane.f32.xlu0 %v1126_v13  ;;  %1245 = vmatpush.bf16.msra.mxu1 %v2607_v11  ;;  %v1214_v13 = vpack.c.bf16 %v1213_v12, %v1213_v12 }
 0x122   : > { %2529 = vmatmul.msk.bf16.vlgmr.msra.gmra.mxu1 %vm1112_vm0, %v1214_v13 }
 0x192   : > { %v1128_v23 = vpop.xlane.xlu0 %1127 }
 0x193   : > { %v1136_v24 = vmul.f32 %v4068_v22, %v1128_v23 }
 0x195   : > { %2894 = vrsqrt.f32 %v1136_v24  ;;  %vm1148_vm3 = vcmp.eq.f32.partialorder %v1136_v24, inf  ;;  %v1151_v32 = vand.u32 2147483648, %v1136_v24  ;;  %vm1150_vm4 = vcmp.eq.f32.partialorder %v1136_v24, 0.0 }
 0x19b   : > { %v2895_v25 = vpop.eup %2894 }
 0x19c   : > { %v1142_v26 = vmul.f32 %v2895_v25, %v1136_v24 }
 0x19e   : > { %v1143_v27 = vmul.f32 %v2895_v25, %v1142_v26 }
 0x19f   : > { %v1247_v26 = vpop.f32.mrf.mxu1 }
 0x1a0   : > { %v1144_v28 = vmul.f32 0.5, %v1143_v27 }
 0x1a2   : > { %v1145_v29 = vsub.f32 1.5, %v1144_v28 }
 0x1a4   : > { %v1146_v30 = vmul.f32 %v2895_v25, %v1145_v29  ;;  %v2880_v25 = vld [vmem:[#allocation27] ss:$0 sm:$0xff] }
 0x1a5   : > { %v1248_v27 = vadd.f32 %v2880_v25, %v1247_v26 }
 0x1a6   : > { %v1147_v31 = vmul.f32 %v1146_v30, %v1136_v24  ;;  %v1257_v30 = vld [vmem:[%s3994_s24] sm:$0x3]  ;;  %s3659_s24 = smov 72  }
 0x1a7   : > { %v1251_v28 = vpack.c.bf16 %v1248_v27, %v1248_v27  ;;  %v1249_v29 = vpop.f32.mrf.mxu1 }
 0x1a8   : > { %v1149_v33 = vsel %vm1148_vm3, %v1136_v24, %v1147_v31  ;;  %v1258_v31 = vunpack.c.0.s8 %v1257_v30 }
 0x1a9   : > { %v1152_v34 = vsel %vm1150_vm4, %v1151_v32, %v1149_v33  ;;  %1253 = vst.msk [vmem:[#allocation3] sm:$0xf] %vm1252_vm12, %v1251_v28 }
 0x1aa   : > { %v1153_v35 = vadd.f32 1e-06, %v1152_v34  ;;  %v1259_v32 = vcvt.s32.f32 %v1258_v31 }
 0x1ac   : > { %2896 = vrcp.f32 %v1153_v35  ;;  %v1165_v39 = vand.u32 2147483648, %v1153_v35  ;;  %v1163_v42 = vand.u32 2147483647, %v1153_v35  ;;  %vm1159_vm6 = vweird.f32 %v1153_v35 }
 0x1ad   : > { %v2530_v33 = vadd.f32 -1.0, %v1259_v32 }
 0x1ae   : > { %v1166_v44 = vor.u32 1.1754944e-38, %v1165_v39  ;;  %vm1164_vm8 = vcmp.eq.f32.partialorder %v1163_v42, 8.507059e+37 }
 0x1af   : > { %v1261_v34 = vmul.f32 1e+09, %v2530_v33 }
 0x1b0   : > { %v4113_v12 = vld [vmem:[#allocation3] sm:$0xf] }
 0x1b1   : > { %v1708_v13 = vsel %vm1283_vm11, %v4113_v12, 0 }
 0x1b2   : > { %v2897_v36 = vpop.eup %2896 }
 0x1b3   : > { %v1155_v37 = vmul.f32 %v2897_v36, %v1153_v35  ;;  %vm1160_vm5 = vweird.f32 %v2897_v36 }
 0x1b4   : > { %vm1161_vm7 = vmor %vm1159_vm6, %vm1160_vm5 }
 0x1b5   : > { %v1156_v38 = vsub.f32 1.0, %v1155_v37 }
 0x1b7   : > { %v1157_v41 = vmul.f32 %v2897_v36, %v1156_v38 }
 0x1b9   : > { %v1158_v43 = vadd.f32 %v2897_v36, %v1157_v41 }
 0x1bb   : > { %v1162_v46 = vsel %vm1161_vm7, %v2897_v36, %v1158_v43 }
 0x1bc   : > { %v1167_v48 = vsel %vm1164_vm8, %v1166_v44, %v1162_v46  ;;  %vm1695_vm8 = vcmask 257024  }
 0x1bd   : > { %v1168_v49 = vmul.f32 %v1167_v48, %v1140_v45 }
 0x1bf   : > { %v1172_v50 = vadd.f32 %v2878_v47, %v1168_v49 }
 0x1c1   : > { %v1173_v51 = vpack.c.bf16 %v1172_v50, %v1172_v50 }
 0x1c3   : > { %2520 = vmatmul.msk.bf16.vlgmr.msra.gmra.mxu0 %vm1112_vm0, %v1173_v51 }
 0x240   : > { %v1206_v53 = vpop.f32.mrf.mxu0 }
 0x241   : > { %v1207_v54 = vadd.f32 %v2879_v52, %v1206_v53 }
 0x243   : > { %v1210_v55 = vpack.c.bf16 %v1207_v54, %v1207_v54 }
 0x245   : > { %1212 = vst.msk [vmem:[#allocation2] sm:$0xf] %vm1211_vm9, %v1210_v55 }
 0x248   : > { %v1208_v56 = vpop.f32.mrf.mxu0 }
 0x24c   : > { %v1343_v57 = vld [vmem:[#allocation2] sm:$0xf] }
 0x24d   : > { %v1277_v58 = vld [vmem:[#allocation2] sm:$0xf]  ;;  %v1350_v59 = vunpack.c.l.b16 %v1343_v57 }
 0x24e   : > { %v1279_v60 = vunpack.c.l.b16 %v1277_v58  ;;  %v1416_v63 = vld [vmem:[#allocation2] sm:$0xf] }
 0x24f   : > { %v4075_v61 = vpack.c.b16 %v1350_v59, %v1350_v59  ;;  %v1342_v1 = vld [vmem:[#allocation2] sm:$0xf]  ;;  %v1423_v2 = vunpack.c.l.b16 %v1416_v63 }
 0x250   : > { %v1280_v62 = vpack.c.b16 %v1279_v60, %v1279_v60  ;;  %v1345_v3 = vunpack.c.l.b16 %v1342_v1  ;;  %v1415_v6 = vld [vmem:[#allocation2] sm:$0xf] }
 0x251   : > { %1352 = vrot.lane.b32.xlu0 %v4075_v61, %s3653_s11  ;;  %v4080_v4 = vpack.c.b16 %v1423_v2, %v1423_v2  ;;  %v1418_v7 = vunpack.c.l.b16 %v1415_v6  ;;  %v1276_v21 = vld [vmem:[#allocation2] sm:$0xf] }
 0x252   : > { %1317 = vrot.lane.b32.xlu2 %v1280_v62, %s3654_s14  ;;  %1281 = vrot.lane.b32.xlu1 %v1280_v62, %s3655_s19  ;;  %v1346_v5 = vpack.c.b16 %v1345_v3, %v1345_v3  ;;  %v1489_v50 = vld [vmem:[#allocation2] sm:$0xf]  ;;  %s3666_s14 = smov 16  }
 0x253   : > { %v1419_v9 = vpack.c.b16 %v1418_v7, %v1418_v7  ;;  %v1496_v51 = vunpack.c.l.b16 %v1489_v50  ;;  %v1488_v53 = vld [vmem:[#allocation2] sm:$0xf] }
 0x254   : > { %v1491_v54 = vunpack.c.l.b16 %v1488_v53 }
 0x255   : > { %v1497_v52 = vpack.c.b16 %v1496_v51, %v1496_v51 }
 0x256   : > { %v1492_v55 = vpack.c.b16 %v1491_v54, %v1491_v54 }
 0x259   : > { %1425 = vrot.lane.b32.xlu0 %v4080_v4, %s3656_s0 }
 0x25a   : > { %1347 = vrot.lane.b32.xlu2 %v1346_v5, %s3657_s23 }
 0x261   : > { %1420 = vrot.lane.b32.xlu0 %v1419_v9, %s3658_s4 }
 0x2ac   : > { %v1318_v14 = vpop.permute.xlu2 %1317 }
 0x2ad   : > { %v1324_v15 = vsel %vm1322_vm10, %v1318_v14, 0 }
 0x2ae   : > { %1333 = vmatpush.bf16.msra.mxu3 %v1324_v15 }
 0x2b4   : > { %v1348_v56 = vpop.permute.xlu2 %1347 }
 0x2c3   : > { %v1353_v16 = vpop.permute.xlu0 %1352 }
 0x2c4   : > { %v1282_v17 = vpop.permute.xlu1 %1281  ;;  %v1358_v18 = vsel %vm1283_vm11, %v1353_v16, 0 }
 0x2c5   : > { %v1288_v19 = vsel %vm1283_vm11, %v1282_v17, 0  ;;  %1367 = vmatpush.bf16.xpose.msrb.mxu3 %v1358_v18 }
 0x2c6   : > { %1297 = vmatpush.bf16.xpose.msra.mxu2 %v1288_v19 }
 0x2cb   : > { %v1426_v20 = vpop.permute.xlu0 %1425 }
 0x2cc   : > { %v1431_v23 = vsel %vm1283_vm11, %v1426_v20, 0 }
 0x2cd   : > { %2532 = vmatmul.msk.bf16.vlgmr.msra.gmra.mxu2 %vm1283_vm11, %v1276_v21  ;;  %1440 = vmatpush.bf16.xpose.msrb.mxu1 %v1431_v23 }
 0x2d3   : > { %v1421_v24 = vpop.permute.xlu0 %1420 }
 0x2d4   : > { %2536 = vmatmul.msk.bf16.vlgmr.msrb.gmra.mxu1 %vm1283_vm11, %v1421_v24 }
 0x350   : > { %v1299_v35 = vpop.f32.mrf.mxu2 }
 0x351   : > { %v1303_v36 = vmul.f32 0.35355338, %v1299_v35  ;;  %v1442_v37 = vpop.f32.mrf.mxu1 }
 0x352   : > { %v1446_v38 = vmul.f32 0.35355338, %v1442_v37 }
 0x353   : > { %v1304_v39 = vadd.f32 %v1303_v36, %v1261_v34 }
 0x354   : > { %v4099_v40 = vadd.f32 %v1446_v38, %v1261_v34 }
 0x355   : > { %v1305_v41 = vsel %vm1283_vm11, %v1304_v39, -inf }
 0x356   : > { %1306 = vmax.xlane.f32.xlu1 %v1305_v41  ;;  %v1448_v42 = vsel %vm1283_vm11, %v4099_v40, -inf }
 0x357   : > { %1449 = vmax.xlane.f32.xlu0 %v1448_v42 }
 0x358   : > { %v1301_v43 = vpop.f32.mrf.mxu2 }
 0x359   : > { %v1444_v44 = vpop.f32.mrf.mxu1 }
 0x3c9   : > { %v1307_v45 = vpop.xlane.xlu1 %1306 }
 0x3ca   : > { %v1308_v46 = vsub.f32 %v1304_v39, %v1307_v45 }
 0x3cc   : > { %v1309_v47 = vmul.f32 1.442695, %v1308_v46 }
 0x3ce   : > { %2898 = vpow2.f32 %v1309_v47 }
 0x3d4   : > { %v2899_v48 = vpop.eup %2898 }
 0x3d5   : > { %v1311_v49 = vsel %vm1283_vm11, %v2899_v48, 0.0 }
 0x3d6   : > { %1312 = vadd.xlane.f32.xlu2 %v1311_v49 }
 0x3ee   : > { %1498 = vrot.lane.b32.xlu2 %v1497_v52, %s3659_s24 }
 0x3f6   : > { %1493 = vrot.lane.b32.xlu2 %v1492_v55, %s3660_s17 }
 0x449   : > { %v1313_v57 = vpop.xlane.xlu2 %1312 }
 0x44a   : > { %2900 = vrcp.f32 %v1313_v57 }
 0x450   : > { %v2901_v58 = vpop.eup %2900 }
 0x451   : > { %v1315_v59 = vmul.f32 %v2901_v58, %v2899_v48  ;;  %v1499_v60 = vpop.permute.xlu2 %1498 }
 0x452   : > { %v1504_v63 = vsel %vm1283_vm11, %v1499_v60, 0  ;;  %v1836_v60 = vld [vmem:[#allocation3] sm:$0xf] }
 0x453   : > { %v1316_v62 = vpack.c.bf16 %v1315_v59, %v1315_v59 }
 0x455   : > { %2533 = vmatmul.msk.bf16.vlgmr.msra.gmra.mxu3 %vm1283_vm11, %v1316_v62  ;;  %v1843_v62 = vunpack.c.l.b16 %v1836_v60 }
 0x456   : > { %1513 = vmatpush.bf16.xpose.msra.mxu3 %v1504_v63 }
 0x457   : > { %v4136_v63 = vpack.c.b16 %v1843_v62, %v1843_v62 }
 0x459   : > { %v1494_v1 = vpop.permute.xlu2 %1493 }
 0x465   : > { %2534 = vmatmul.msk.bf16.vlgmr.msrb.gmra.mxu3 %vm1283_vm11, %v1348_v56  ;;  %v1764_v56 = vld [vmem:[#allocation3] sm:$0xf] }
 0x466   : > { %1717 = vmatpush.bf16.xpose.msrb.mxu3 %v1708_v13  ;;  %v1771_v57 = vunpack.c.l.b16 %v1764_v56 }
 0x468   : > { %v4132_v59 = vpack.c.b16 %v1771_v57, %v1771_v57  ;;  %v2883_v57 = vld [vmem:[#allocation14] ss:$0 sm:$0xff] }
 0x475   : > { %2538 = vmatmul.msk.bf16.vlgmr.msra.gmra.mxu3 %vm1283_vm11, %v1494_v1  ;;  %v1908_v1 = vld [vmem:[#allocation3] sm:$0xf] }
 0x4d8   : > { %v1335_v2 = vpop.f32.mrf.mxu3 }
 0x4d9   : > { %v1339_v3 = vpack.c.bf16 %v1335_v2, %v1335_v2  ;;  %v1915_v2 = vunpack.c.l.b16 %v1908_v1 }
 0x4db   : > { %1341 = vst.msk [vmem:[#allocation5] sm:$0xf] %vm1340_vm13, %v1339_v3  ;;  %v4140_v3 = vpack.c.b16 %v1915_v2, %v1915_v2  ;;  %v2884_v2 = vld [vmem:[#allocation24] ss:$0 sm:$0xff] }
 0x4e0   : > { %v1337_v5 = vpop.f32.mrf.mxu3 }
 0x4e8   : > { %v1369_v6 = vpop.f32.mrf.mxu3 }
 0x4e9   : > { %v1373_v7 = vmul.f32 0.35355338, %v1369_v6 }
 0x4eb   : > { %v1374_v9 = vadd.f32 %v1373_v7, %v1261_v34 }
 0x4ed   : > { %v1375_v10 = vsel %vm1283_vm11, %v1374_v9, -inf }
 0x4ee   : > { %1376 = vmax.xlane.f32.xlu1 %v1375_v10  ;;  %v2609_v10 = vld [vmem:[#allocation20] sm:$0xff] }
 0x4f0   : > { %v1371_v11 = vpop.f32.mrf.mxu3 }
 0x4f8   : > { %v1515_v14 = vpop.f32.mrf.mxu3 }
 0x4f9   : > { %v1519_v15 = vmul.f32 0.35355338, %v1515_v14 }
 0x4fb   : > { %v1520_v16 = vadd.f32 %v1519_v15, %v1261_v34 }
 0x4fd   : > { %v1521_v17 = vsel %vm1283_vm11, %v1520_v16, -inf }
 0x4fe   : > { %1522 = vmax.xlane.f32.xlu2 %v1521_v17 }
 0x500   : > { %v1517_v18 = vpop.f32.mrf.mxu3 }
 0x516   : > { %1460 = vrot.lane.b32.xlu2 %v4080_v4, %s3661_s18  ;;  %v1450_v4 = vpop.xlane.xlu0 %1449 }
 0x517   : > { %v1451_v32 = vsub.f32 %v4099_v40, %v1450_v4 }
 0x519   : > { %v1452_v33 = vmul.f32 1.442695, %v1451_v32 }
 0x561   : > { %v1377_v19 = vpop.xlane.xlu1 %1376 }
 0x562   : > { %v1378_v20 = vsub.f32 %v1374_v9, %v1377_v19  ;;  %v2610_v9 = vld [vmem:[#allocation20 + $0x8] sm:$0xff] }
 0x563   : > { %1587 = vmatpush.bf16.msra.mxu1 %v2610_v9 }
 0x564   : > { %v1379_v21 = vmul.f32 1.442695, %v1378_v20 }
 0x566   : > { %2902 = vpow2.f32 %v1379_v21 }
 0x567   : > { %1588 = vmatpush.bf16.msra.mxu1 %v2609_v10 }
 0x56c   : > { %v2903_v23 = vpop.eup %2902 }
 0x56d   : > { %v1381_v24 = vsel %vm1283_vm11, %v2903_v23, 0.0 }
 0x56e   : > { %1382 = vadd.xlane.f32.xlu1 %v1381_v24 }
 0x571   : > { %v1523_v25 = vpop.xlane.xlu2 %1522 }
 0x572   : > { %v1524_v26 = vsub.f32 %v1520_v16, %v1523_v25 }
 0x574   : > { %v1525_v27 = vmul.f32 1.442695, %v1524_v26 }
 0x576   : > { %2904 = vpow2.f32 %v1525_v27 }
 0x577   : > { %2906 = vpow2.f32 %v1452_v33  ;;  %v2612_v33 = vld [vmem:[#allocation23 + $0x8] sm:$0xff] }
 0x579   : > { %v1461_v28 = vpop.permute.xlu2 %1460 }
 0x57a   : > { %v1466_v29 = vsel %vm1322_vm10, %v1461_v28, 0 }
 0x57b   : > { %1475 = vmatpush.bf16.msrb.mxu2 %v1466_v29 }
 0x57c   : > { %v2905_v30 = vpop.eup %2904 }
 0x57d   : > { %v1527_v31 = vsel %vm1283_vm11, %v2905_v30, 0.0  ;;  %v2907_v34 = vpop.eup %2906 }
 0x57e   : > { %1528 = vadd.xlane.f32.xlu0 %v1527_v31  ;;  %v1454_v35 = vsel %vm1283_vm11, %v2907_v34, 0.0 }
 0x57f   : > { %1687 = vmatpush.bf16.msra.mxu2 %v2612_v33 }
 0x587   : > { %1387 = vrot.lane.b32.xlu1 %v4075_v61, %s3662_s22  ;;  %s4359_s22 = sld [smem:[#allocation75_spill]] }
 0x592   : > { %1533 = vrot.lane.b32.xlu0 %v1497_v52, %s3663_s12 }
 0x5b1   : > { %1455 = vadd.xlane.f32.xlu1 %v1454_v35 }
 0x5e1   : > { %v1383_v36 = vpop.xlane.xlu1 %1382 }
 0x5e2   : > { %2908 = vrcp.f32 %v1383_v36 }
 0x5e8   : > { %v2909_v37 = vpop.eup %2908 }
 0x5e9   : > { %v1385_v38 = vmul.f32 %v2909_v37, %v2903_v23  ;;  %v2881_v23 = vld [vmem:[#allocation21] ss:$0 sm:$0xff] }
 0x5eb   : > { %v1386_v42 = vpack.c.bf16 %v1385_v38, %v1385_v38 }
 0x5f1   : > { %v1529_v61 = vpop.xlane.xlu0 %1528 }
 0x5f2   : > { %2910 = vrcp.f32 %v1529_v61 }
 0x5f8   : > { %v2911_v43 = vpop.eup %2910 }
 0x5f9   : > { %v1388_v39 = vpop.permute.xlu1 %1387  ;;  %v1531_v45 = vmul.f32 %v2911_v43, %v2905_v30 }
 0x5fa   : > { %v1393_v41 = vsel %vm1322_vm10, %v1388_v39, 0 }
 0x5fb   : > { %1402 = vmatpush.bf16.msrb.mxu0 %v1393_v41  ;;  %v1532_v46 = vpack.c.bf16 %v1531_v45, %v1531_v45 }
 0x5fe   : > { %2535 = vmatmul.msk.bf16.vlgmr.msrb.gmra.mxu0 %vm1283_vm11, %v1386_v42 }
 0x604   : > { %v1534_v40 = vpop.permute.xlu0 %1533 }
 0x605   : > { %v1539_v44 = vsel %vm1322_vm10, %v1534_v40, 0 }
 0x606   : > { %1548 = vmatpush.bf16.msra.mxu0 %v1539_v44 }
 0x60e   : > { %2539 = vmatmul.msk.bf16.vlgmr.msra.gmra.mxu0 %vm1283_vm11, %v1532_v46 }
 0x624   : > { %v1456_v47 = vpop.xlane.xlu1 %1455 }
 0x625   : > { %2912 = vrcp.f32 %v1456_v47 }
 0x62b   : > { %v2913_v48 = vpop.eup %2912 }
 0x62c   : > { %v1458_v49 = vmul.f32 %v2913_v48, %v2907_v34  ;;  %v2611_v34 = vld [vmem:[#allocation23] sm:$0xff] }
 0x62d   : > { %1688 = vmatpush.bf16.msra.mxu2 %v2611_v34 }
 0x62e   : > { %v1459_v50 = vpack.c.bf16 %v1458_v49, %v1458_v49 }
 0x630   : > { %2537 = vmatmul.msk.bf16.vlgmr.msrb.gmra.mxu2 %vm1283_vm11, %v1459_v50  ;;  %v2882_v50 = vld [vmem:[#allocation12] ss:$0 sm:$0xff] }
 0x67b   : > { %v1404_v51 = vpop.f32.mrf.mxu0 }
 0x67c   : > { %v1408_v52 = vpack.c.bf16 %v1404_v51, %v1404_v51 }
 0x67e   : > { %1410 = vrot.lane.b32.xlu2 %v1408_v52, %s3664_s13 }
 0x683   : > { %v1406_v53 = vpop.f32.mrf.mxu0 }
 0x68b   : > { %v1550_v54 = vpop.f32.mrf.mxu0 }
 0x68c   : > { %v1554_v55 = vpack.c.bf16 %v1550_v54, %v1550_v54 }
 0x68e   : > { %1556 = vrot.lane.b32.xlu2 %v1554_v55, %s3665_s9 }
 0x693   : > { %v1552_v58 = vpop.f32.mrf.mxu0 }
 0x696   : > { %1773 = vrot.lane.b32.xlu2 %v4132_v59, %s3657_s23 }
 0x69e   : > { %1845 = vrot.lane.b32.xlu2 %v4136_v63, %s3658_s4 }
 0x6a6   : > { %1917 = vrot.lane.b32.xlu2 %v4140_v3, %s3660_s17 }
 0x6b3   : > { %v1477_v5 = vpop.f32.mrf.mxu2 }
 0x6b4   : > { %v1481_v6 = vpack.c.bf16 %v1477_v5, %v1477_v5 }
 0x6b6   : > { %1483 = vrot.lane.b32.xlu0 %v1481_v6, %s3666_s14 }
 0x6bb   : > { %v1479_v7 = vpop.f32.mrf.mxu2 }
 0x6d8   : > { %v1411_v11 = vpop.permute.xlu2 %1410 }
 0x6d9   : > { %1414 = vst.msk [vmem:[#allocation5] sm:$0xf] %vm1413_vm14, %v1411_v11 }
 0x6e8   : > { %v1557_v13 = vpop.permute.xlu2 %1556 }
 0x6f0   : > { %v1774_v14 = vpop.permute.xlu2 %1773 }
 0x6f1   : > { %v1779_v15 = vsel %vm1283_vm11, %v1774_v14, 0 }
 0x6f2   : > { %1788 = vmatpush.bf16.xpose.msrb.mxu1 %v1779_v15 }
 0x6f8   : > { %v1846_v16 = vpop.permute.xlu2 %1845 }
 0x6f9   : > { %v1851_v17 = vsel %vm1283_vm11, %v1846_v16, 0 }
 0x6fa   : > { %1860 = vmatpush.bf16.xpose.msra.mxu3 %v1851_v17 }
 0x700   : > { %v1918_v19 = vpop.permute.xlu2 %1917 }
 0x701   : > { %v1923_v21 = vsel %vm1283_vm11, %v1918_v19, 0 }
 0x728   : > { %v1484_v18 = vpop.permute.xlu0 %1483 }
 0x729   : > { %1487 = vst.msk [vmem:[#allocation5] sm:$0xf] %vm1486_vm15, %v1484_v18 }
 0x72a   : > { %1560 = vst.msk [vmem:[#allocation5] sm:$0xf] %vm1559_vm1, %v1557_v13 }
 0x731   : > { %v1561_v20 = vld [vmem:[#allocation5] sm:$0xf] }
 0x732   : > { %2548 = vmatmul.msk.bf16.vlgmr.msra.gmra.mxu1 %vm1112_vm0, %v1561_v20 }
 0x733   : > { %1932 = vmatpush.bf16.xpose.msra.mxu1 %v1923_v21 }
 0x7af   : > { %v1590_v24 = vpop.f32.mrf.mxu1 }
 0x7b0   : > { %v1591_v25 = vadd.f32 %v2881_v23, %v1590_v24  ;;  %v1262_v23 = vld [vmem:[%s4001_s15] sm:$0x3]  ;;  %s2155_s15 = scalar_lea.sflag [#allocation8], %s3990_s10 }
 0x7b2   : > { %v4153_v26 = vadd.f32 %v1591_v25, %v4053_v0  ;;  %v1263_v25 = vunpack.c.0.s8 %v1262_v23 }
 0x7b4   : > { %v1597_v27 = vsel %vm1112_vm0, %v4153_v26, 0.0 }
 0x7b5   : > { %1598 = vadd.xlane.f32.xlu0 %v1597_v27  ;;  %v1264_v27 = vcvt.s32.f32 %v1263_v25 }
 0x7b7   : > { %v1592_v28 = vpop.f32.mrf.mxu1 }
 0x7b8   : > { %v2531_v28 = vadd.f32 -1.0, %v1264_v27 }
 0x828   : > { %v1599_v29 = vpop.xlane.xlu0 %1598 }
 0x829   : > { %v1607_v30 = vmul.f32 %v1599_v29, %v4057_v8  ;;  %v1266_v29 = vmul.f32 1e+09, %v2531_v28 }
 0x82b   : > { %v1608_v31 = vsub.f32 %v4153_v26, %v1607_v30 }
 0x82d   : > { %v1609_v4 = vmul.f32 %v1608_v31, %v1608_v31  ;;  %v1624_v55 = vmul.f32 %v2882_v50, %v1608_v31 }
 0x82f   : > { %v1610_v32 = vsel %vm1112_vm0, %v1609_v4, 0.0 }
 0x830   : > { %1611 = vadd.xlane.f32.xlu1 %v1610_v32 }
 0x8a3   : > { %v1612_v35 = vpop.xlane.xlu1 %1611 }
 0x8a4   : > { %v1620_v0 = vmul.f32 %v1612_v35, %v4068_v22 }
 0x8a6   : > { %2914 = vrsqrt.f32 %v1620_v0  ;;  %vm1632_vm2 = vcmp.eq.f32.partialorder %v1620_v0, inf  ;;  %v1635_v40 = vand.u32 2147483648, %v1620_v0  ;;  %vm1634_vm3 = vcmp.eq.f32.partialorder %v1620_v0, 0.0 }
 0x8ac   : > { %v2915_v36 = vpop.eup %2914 }
 0x8ad   : > { %v1626_v37 = vmul.f32 %v2915_v36, %v1620_v0 }
 0x8af   : > { %v1627_v38 = vmul.f32 %v2915_v36, %v1626_v37 }
 0x8b1   : > { %v1628_v39 = vmul.f32 0.5, %v1627_v38 }
 0x8b3   : > { %v1629_v41 = vsub.f32 1.5, %v1628_v39 }
 0x8b5   : > { %v1630_v61 = vmul.f32 %v2915_v36, %v1629_v41 }
 0x8b7   : > { %v1631_v42 = vmul.f32 %v1630_v61, %v1620_v0 }
 0x8b9   : > { %v1633_v43 = vsel %vm1632_vm2, %v1620_v0, %v1631_v42 }
 0x8ba   : > { %v1636_v44 = vsel %vm1634_vm3, %v1635_v40, %v1633_v43 }
 0x8bb   : > { %v1637_v45 = vadd.f32 1e-06, %v1636_v44 }
 0x8bd   : > { %2916 = vrcp.f32 %v1637_v45  ;;  %v1649_v49 = vand.u32 2147483648, %v1637_v45  ;;  %v1647_v52 = vand.u32 2147483647, %v1637_v45  ;;  %vm1643_vm5 = vweird.f32 %v1637_v45 }
 0x8bf   : > { %v1650_v54 = vor.u32 1.1754944e-38, %v1649_v49  ;;  %vm1648_vm7 = vcmp.eq.f32.partialorder %v1647_v52, 8.507059e+37 }
 0x8c3   : > { %v2917_v46 = vpop.eup %2916 }
 0x8c4   : > { %v1639_v47 = vmul.f32 %v2917_v46, %v1637_v45  ;;  %vm1644_vm4 = vweird.f32 %v2917_v46 }
 0x8c5   : > { %vm1645_vm6 = vmor %vm1643_vm5, %vm1644_vm4 }
 0x8c6   : > { %v1640_v48 = vsub.f32 1.0, %v1639_v47 }
 0x8c8   : > { %v1641_v51 = vmul.f32 %v2917_v46, %v1640_v48 }
 0x8ca   : > { %v1642_v53 = vadd.f32 %v2917_v46, %v1641_v51 }
 0x8cc   : > { %v1646_v56 = vsel %vm1645_vm6, %v2917_v46, %v1642_v53  ;;  %v1738_v53 = vunpack.c.l.b16 %v4113_v12 }
 0x8cd   : > { %v1651_v58 = vsel %vm1648_vm7, %v1650_v54, %v1646_v56 }
 0x8ce   : > { %v1652_v60 = vmul.f32 %v1651_v58, %v1624_v55  ;;  %v1739_v54 = vpack.c.b16 %v1738_v53, %v1738_v53 }
 0x8d0   : > { %v1656_v62 = vadd.f32 %v2883_v57, %v1652_v60 }
 0x8d2   : > { %v1657_v1 = vpack.c.bf16 %v1656_v62, %v1656_v62 }
 0x8d4   : > { %2557 = vmatmul.msk.bf16.vlgmr.msra.gmra.mxu2 %vm1112_vm0, %v1657_v1 }
 0x957   : > { %v1690_v5 = vpop.f32.mrf.mxu2 }
 0x958   : > { %v1691_v6 = vadd.f32 %v2884_v2, %v1690_v5 }
 0x95a   : > { %v1694_v7 = vpack.c.bf16 %v1691_v6, %v1691_v6 }
 0x95c   : > { %1696 = vst.msk [vmem:[#allocation4] sm:$0xf] %vm1695_vm8, %v1694_v7 }
 0x95f   : > { %v1692_v9 = vpop.f32.mrf.mxu2 }
 0x963   : > { %v1702_v10 = vld [vmem:[#allocation4] sm:$0xf] }
 0x964   : > { %v1835_v11 = vld [vmem:[#allocation4] sm:$0xf]  ;;  %2558 = vmatmul.msk.bf16.vlgmr.msrb.gmra.mxu3 %vm1283_vm11, %v1702_v10 }
 0x965   : > { %v1763_v13 = vld [vmem:[#allocation4] sm:$0xf]  ;;  %v1838_v14 = vunpack.c.l.b16 %v1835_v11 }
 0x966   : > { %v1766_v15 = vunpack.c.l.b16 %v1763_v13  ;;  %v1907_v18 = vld [vmem:[#allocation4] sm:$0xf] }
 0x967   : > { %v1839_v16 = vpack.c.b16 %v1838_v14, %v1838_v14  ;;  %v1910_v19 = vunpack.c.l.b16 %v1907_v18 }
 0x968   : > { %v1767_v17 = vpack.c.b16 %v1766_v15, %v1766_v15 }
 0x969   : > { %1840 = vrot.lane.b32.xlu2 %v1839_v16, %s3658_s4  ;;  %v1911_v20 = vpack.c.b16 %v1910_v19, %v1910_v19  ;;  %s3528_s4 = scalar_lea.hbm %s4359_s22, 16 }
 0x96a   : > { %1768 = vrot.lane.b32.xlu1 %v1767_v17, %s3657_s23 }
 0x972   : > { %1912 = vrot.lane.b32.xlu1 %v1911_v20, %s3660_s17 }
 0x9c3   : > { %v1841_v21 = vpop.permute.xlu2 %1840 }
 0x9c4   : > { %2562 = vmatmul.msk.bf16.vlgmr.msra.gmra.mxu3 %vm1283_vm11, %v1841_v21 }
 0x9dc   : > { %v1769_v24 = vpop.permute.xlu1 %1768 }
 0x9dd   : > { %2560 = vmatmul.msk.bf16.vlgmr.msrb.gmra.mxu1 %vm1283_vm11, %v1769_v24 }
 0x9e4   : > { %v1913_v4 = vpop.permute.xlu1 %1912 }
 0x9e7   : > { %v1719_v30 = vpop.f32.mrf.mxu3 }
 0x9e8   : > { %v1723_v31 = vmul.f32 0.35355338, %v1719_v30 }
 0x9ea   : > { %v1724_v32 = vadd.f32 %v1723_v31, %v1266_v29 }
 0x9ec   : > { %v1725_v33 = vsel %vm1283_vm11, %v1724_v32, -inf }
 0x9ed   : > { %2564 = vmatmul.msk.bf16.vlgmr.msra.gmra.mxu1 %vm1283_vm11, %v1913_v4  ;;  %1726 = vmax.xlane.f32.xlu0 %v1725_v33 }
 0x9ef   : > { %v1721_v34 = vpop.f32.mrf.mxu3 }
 0xa47   : > { %v1862_v35 = vpop.f32.mrf.mxu3 }
 0xa48   : > { %v1866_v0 = vmul.f32 0.35355338, %v1862_v35 }
 0xa4a   : > { %v1867_v36 = vadd.f32 %v1866_v0, %v1266_v29 }
 0xa4c   : > { %v1868_v37 = vsel %vm1283_vm11, %v1867_v36, -inf }
 0xa4d   : > { %1869 = vmax.xlane.f32.xlu0 %v1868_v37 }
 0xa4f   : > { %v1864_v38 = vpop.f32.mrf.mxu3 }
 0xa5a   : > { %v1790_v39 = vpop.f32.mrf.mxu1 }
 0xa5b   : > { %v1794_v41 = vmul.f32 0.35355338, %v1790_v39 }
 0xa5d   : > { %v1795_v61 = vadd.f32 %v1794_v41, %v1266_v29 }
 0xa5f   : > { %v1796_v42 = vsel %vm1283_vm11, %v1795_v61, -inf }
 0xa60   : > { %1797 = vmax.xlane.f32.xlu2 %v1796_v42  ;;  %v1727_v43 = vpop.xlane.xlu0 %1726 }
 0xa61   : > { %v1728_v44 = vsub.f32 %v1724_v32, %v1727_v43 }
 0xa62   : > { %v1792_v40 = vpop.f32.mrf.mxu1 }
 0xa63   : > { %v1729_v45 = vmul.f32 1.442695, %v1728_v44 }
 0xa65   : > { %2918 = vpow2.f32 %v1729_v45  ;;  %v2614_v45 = vld [vmem:[#allocation29 + $0x8] sm:$0xff] }
 0xa66   : > { %2004 = vmatpush.bf16.msrb.mxu3 %v2614_v45 }
 0xa6a   : > { %v1934_v46 = vpop.f32.mrf.mxu1 }
 0xa6b   : > { %v1938_v47 = vmul.f32 0.35355338, %v1934_v46  ;;  %v2919_v48 = vpop.eup %2918 }
 0xa6c   : > { %v1731_v50 = vsel %vm1283_vm11, %v2919_v48, 0.0 }
 0xa6d   : > { %v1939_v49 = vadd.f32 %v1938_v47, %v1266_v29  ;;  %1732 = vadd.xlane.f32.xlu0 %v1731_v50  ;;  %v2613_v47 = vld [vmem:[#allocation29] sm:$0xff] }
 0xa6e   : > { %2005 = vmatpush.bf16.msrb.mxu3 %v2613_v47 }
 0xa6f   : > { %v1940_v51 = vsel %vm1283_vm11, %v1939_v49, -inf }
 0xa70   : > { %1941 = vmax.xlane.f32.xlu1 %v1940_v51  ;;  %v2885_v51 = vld [vmem:[#allocation30] ss:$0 sm:$0xff] }
 0xa72   : > { %v1936_v52 = vpop.f32.mrf.mxu1 }
 0xa78   : > { %1740 = vrot.lane.b32.xlu2 %v1739_v54, %s3655_s19  ;;  %s4358_s19 = sld [smem:[#allocation73_spill]] }
 0xa80   : > { %1880 = vrot.lane.b32.xlu2 %v4136_v63, %s3656_s0 }
 0xac0   : > { %v1870_v58 = vpop.xlane.xlu0 %1869 }
 0xac1   : > { %v1871_v16 = vsub.f32 %v1867_v36, %v1870_v58 }
 0xac3   : > { %v1872_v17 = vmul.f32 1.442695, %v1871_v16 }
 0xad3   : > { %v1798_v55 = vpop.xlane.xlu2 %1797 }
 0xad4   : > { %v1799_v56 = vsub.f32 %v1795_v61, %v1798_v55 }
 0xad6   : > { %v1800_v57 = vmul.f32 1.442695, %v1799_v56 }
 0xad8   : > { %2920 = vpow2.f32 %v1800_v57 }
 0xadb   : > { %v1741_v60 = vpop.permute.xlu2 %1740 }
 0xadc   : > { %v1746_v62 = vsel %vm1322_vm10, %v1741_v60, 0 }
 0xadd   : > { %1755 = vmatpush.bf16.msrb.mxu0 %v1746_v62 }
 0xade   : > { %v2921_v1 = vpop.eup %2920 }
 0xadf   : > { %v1802_v2 = vsel %vm1283_vm11, %v2921_v1, 0.0 }
 0xae0   : > { %1803 = vadd.xlane.f32.xlu0 %v1802_v2  ;;  %v1733_v12 = vpop.xlane.xlu0 %1732  ;;  %v2616_v2 = vld [vmem:[#allocation32 + $0x8] sm:$0xff] }
 0xae1   : > { %2922 = vrcp.f32 %v1733_v12  ;;  %v2615_v12 = vld [vmem:[#allocation32] sm:$0xff] }
 0xae3   : > { %v1881_v5 = vpop.permute.xlu2 %1880  ;;  %v1942_v6 = vpop.xlane.xlu1 %1941 }
 0xae4   : > { %v1886_v7 = vsel %vm1322_vm10, %v1881_v5, 0  ;;  %v1943_v63 = vsub.f32 %v1939_v49, %v1942_v6 }
 0xae5   : > { %1895 = vmatpush.bf16.msra.mxu0 %v1886_v7 }
 0xae6   : > { %v1944_v9 = vmul.f32 1.442695, %v1943_v63 }
 0xae7   : > { %v2923_v10 = vpop.eup %2922 }
 0xae8   : > { %2924 = vpow2.f32 %v1944_v9  ;;  %v1735_v11 = vmul.f32 %v2923_v10, %v2919_v48 }
 0xae9   : > { %2926 = vpow2.f32 %v1872_v17  ;;  %v2618_v17 = vld [vmem:[%s4358_s19 + $0x8] sm:$0xff] }
 0xaea   : > { %v1736_v13 = vpack.c.bf16 %v1735_v11, %v1735_v11 }
 0xaec   : > { %2559 = vmatmul.msk.bf16.vlgmr.msrb.gmra.mxu0 %vm1283_vm11, %v1736_v13  ;;  %v2619_v13 = vld [vmem:[%s4358_s19 + $0x10] sm:$0xff] }
 0xaed   : > { %2090 = vmatpush.bf16.msrb.mxu0 %v2616_v2 }
 0xaee   : > { %v2925_v14 = vpop.eup %2924 }
 0xaef   : > { %v1946_v15 = vsel %vm1283_vm11, %v2925_v14, 0.0  ;;  %v2927_v18 = vpop.eup %2926 }
 0xaf0   : > { %1947 = vadd.xlane.f32.xlu1 %v1946_v15  ;;  %v1874_v19 = vsel %vm1283_vm11, %v2927_v18, 0.0 }
 0xaf1   : > { %2091 = vmatpush.bf16.msrb.mxu0 %v2615_v12 }
 0xaf4   : > { %1808 = vrot.lane.b32.xlu0 %v4132_v59, %s3653_s11 }
 0xb09   : > { %1952 = vrot.lane.b32.xlu1 %v4140_v3, %s3659_s24  ;;  %s2602_s24 = sshll.u32 %s4352_s16, 3 }
 0xb0a   : > { %s2166_s12 = scalar_lea.hbm %s4359_s22, %s2602_s24 }
 0xb1e   : > { %1875 = vadd.xlane.f32.xlu0 %v1874_v19 }
 0xb53   : > { %v1804_v20 = vpop.xlane.xlu0 %1803 }
 0xb54   : > { %2928 = vrcp.f32 %v1804_v20 }
 0xb5a   : > { %v2929_v21 = vpop.eup %2928 }
 0xb5b   : > { %v1806_v23 = vmul.f32 %v2929_v21, %v2921_v1 }
 0xb5d   : > { %v1807_v27 = vpack.c.bf16 %v1806_v23, %v1806_v23 }
 0xb63   : > { %v1948_v28 = vpop.xlane.xlu1 %1947 }
 0xb64   : > { %2930 = vrcp.f32 %v1948_v28 }
 0xb66   : > { %v1809_v24 = vpop.permute.xlu0 %1808 }
 0xb67   : > { %v1814_v25 = vsel %vm1322_vm10, %v1809_v24, 0  ;;  %v2886_v24 = vld [vmem:[#allocation15] ss:$0 sm:$0xff] }
 0xb68   : > { %1823 = vmatpush.bf16.msrb.mxu2 %v1814_v25 }
 0xb69   : > { %v1757_v59 = vpop.f32.mrf.mxu0 }
 0xb6a   : > { %v1761_v3 = vpack.c.bf16 %v1757_v59, %v1757_v59  ;;  %v2931_v30 = vpop.eup %2930 }
 0xb6b   : > { %2561 = vmatmul.msk.bf16.vlgmr.msrb.gmra.mxu2 %vm1283_vm11, %v1807_v27  ;;  %v1950_v31 = vmul.f32 %v2931_v30, %v2925_v14  ;;  %v2887_v30 = vld [vmem:[#allocation17] ss:$0 sm:$0xff] }
 0xb6c   : > { %1762 = vst.msk [vmem:[#allocation5] sm:$0xf] %vm1340_vm13, %v1761_v3 }
 0xb6d   : > { %v1951_v33 = vpack.c.bf16 %v1950_v31, %v1950_v31 }
 0xb71   : > { %v1759_v29 = vpop.f32.mrf.mxu0 }
 0xb7b   : > { %v1953_v4 = vpop.permute.xlu1 %1952 }
 0xb7c   : > { %v1958_v32 = vsel %vm1322_vm10, %v1953_v4, 0 }
 0xb7d   : > { %1967 = vmatpush.bf16.msra.mxu2 %v1958_v32 }
 0xb80   : > { %2565 = vmatmul.msk.bf16.vlgmr.msra.gmra.mxu2 %vm1283_vm11, %v1951_v33 }
 0xb91   : > { %v1876_v34 = vpop.xlane.xlu0 %1875 }
 0xb92   : > { %2932 = vrcp.f32 %v1876_v34  ;;  %v2617_v34 = vld [vmem:[%s4358_s19] sm:$0xff] }
 0xb98   : > { %v2933_v35 = vpop.eup %2932 }
 0xb99   : > { %v1878_v0 = vmul.f32 %v2933_v35, %v2927_v18  ;;  %v2888_v35 = vld [vmem:[#allocation33] ss:$0 sm:$0xff] }
 0xb9b   : > { %v1879_v36 = vpack.c.bf16 %v1878_v0, %v1878_v0 }
 0xb9d   : > { %2563 = vmatmul.msk.bf16.vlgmr.msra.gmra.mxu0 %vm1283_vm11, %v1879_v36 }
 0xbee   : > { %v1825_v37 = vpop.f32.mrf.mxu2 }
 0xbef   : > { %v1829_v38 = vpack.c.bf16 %v1825_v37, %v1825_v37 }
 0xbf1   : > { %1831 = vrot.lane.b32.xlu2 %v1829_v38, %s3664_s13  ;;  %s1095_s13 = scalar_lea.vmem [#allocation36], %s2509_s28 }
 0xbf6   : > { %v1827_v39 = vpop.f32.mrf.mxu2 }
 0xc03   : > { %v1969_v41 = vpop.f32.mrf.mxu2 }
 0xc04   : > { %v1973_v61 = vpack.c.bf16 %v1969_v41, %v1969_v41  ;;  %v2889_v41 = vld [vmem:[#allocation35] ss:$0 sm:$0xff] }
 0xc06   : > { %1975 = vrot.lane.b32.xlu2 %v1973_v61, %s3665_s9  ;;  %s2168_s9 = sshll.u32 %s1095_s13, 4  ;;  %s2169_s9 = int_to_ptr.vmem [resolvable:$true] %s2168_s9 }
 0xc0b   : > { %v1971_v42 = vpop.f32.mrf.mxu2 }
 0xc1a   : > { %v1897_v40 = vpop.f32.mrf.mxu0 }
 0xc1b   : > { %v1901_v43 = vpack.c.bf16 %v1897_v40, %v1897_v40 }
 0xc1d   : > { %1903 = vrot.lane.b32.xlu1 %v1901_v43, %s3666_s14  ;;  %s2170_s14 = sshll.u32 %s2166_s12, 4  ;;  %s2171_s14 = int_to_ptr.hbm [resolvable:$true] %s2170_s14 }
 0xc1e   : > { %s3522_s11 = sshra.s32 %s2171_s14, 4  ;;  %s3523_s11 = int_to_ptr.hbm [resolvable:$true] %s3522_s11 }
 0xc1f   : > { %s3524_s16 = scalar_lea.hbm %s3523_s11, 8  ;;  %p3529_p11 = scmp.lt.s32.totalorder %s3523_s11, %s4359_s22 }
 0xc20   : > { %p3525_p1 = scmp.ne.s32.totalorder %s3523_s11, %s3524_s16  ;;  %p3530_p12 = scmp.lt.s32.totalorder %s3528_s4, %s3524_s16 }
 0xc22   : > { %v1899_v44 = vpop.f32.mrf.mxu0  ;;  %p3526_p9 = pnand %p3525_p1, %p3964_p5  ;;  %p3531_p13 = por %p3530_p12, %p3529_p11 }
 0xc24   : > { %p3527_p10 = pneg %p3526_p9 }
 0xc26   : > { %p3532_p0 = pnand %p3531_p13, %p3527_p10 }
 0xc4b   : > { %v1832_v46 = vpop.permute.xlu2 %1831 }
 0xc4c   : > { %1834 = vst.msk [vmem:[#allocation5] sm:$0xf] %vm1413_vm14, %v1832_v46 }
 0xc60   : > { %v1976_v49 = vpop.permute.xlu2 %1975 }
 0xc8f   : > { %v1904_v48 = vpop.permute.xlu1 %1903 }
 0xc90   : > { %1906 = vst.msk [vmem:[#allocation5] sm:$0xf] %vm1486_vm15, %v1904_v48  ;;  %vm2135_vm15 = vcmask 523264  }
 0xc91   : > { %1978 = vst.msk [vmem:[#allocation5] sm:$0xf] %vm1559_vm1, %v1976_v49 }
 0xc98   : > { %v1979_v50 = vld [vmem:[#allocation5] sm:$0xf] }
 0xc99   : > { %2574 = vmatmul.msk.bf16.vlgmr.msrb.gmra.mxu3 %vm1112_vm0, %v1979_v50 }
 0xd1c   : > { %v2007_v52 = vpop.f32.mrf.mxu3 }
 0xd1d   : > { %v2008_v53 = vadd.f32 %v2885_v51, %v2007_v52 }
 0xd1f   : > { %v4203_v54 = vadd.f32 %v2008_v53, %v4153_v26 }
 0xd21   : > { %v2014_v55 = vsel %vm1112_vm0, %v4203_v54, 0.0 }
 0xd22   : > { %2015 = vadd.xlane.f32.xlu1 %v2014_v55 }
 0xd24   : > { %v2009_v56 = vpop.f32.mrf.mxu3 }
 0xd95   : > { %v2016_v57 = vpop.xlane.xlu1 %2015 }
 0xd96   : > { %v2017_v58 = vmul.f32 %v2016_v57, %v4057_v8  ;;  %v2620_v8 = vld [vmem:[%s4358_s19 + $0x18] sm:$0xff] }
 0xd97   : > { %2143 = vmatpush.bf16.msrb.mxu1 %v2620_v8 }
 0xd98   : > { %v2018_v60 = vsub.f32 %v4203_v54, %v2017_v58 }
 0xd9a   : > { %v2019_v62 = vmul.f32 %v2018_v60, %v2018_v60  ;;  %v2027_v28 = vmul.f32 %v2886_v24, %v2018_v60 }
 0xd9b   : > { %2144 = vmatpush.bf16.msrb.mxu1 %v2619_v13 }
 0xd9c   : > { %v2020_v1 = vsel %vm1112_vm0, %v2019_v62, 0.0 }
 0xd9d   : > { %2021 = vadd.xlane.f32.xlu2 %v2020_v1 }
 0xd9f   : > { %2145 = vmatpush.bf16.msrb.mxu1 %v2618_v17 }
 0xda3   : > { %2146 = vmatpush.bf16.msrb.mxu1 %v2617_v34 }
 0xe10   : > { %v2022_v5 = vpop.xlane.xlu2 %2021 }
 0xe11   : > { %v2023_v26 = vmul.f32 %v2022_v5, %v4068_v22 }
 0xe13   : > { %2934 = vrsqrt.f32 %v2023_v26  ;;  %vm2035_vm9 = vcmp.eq.f32.partialorder %v2023_v26, inf  ;;  %v2038_v15 = vand.u32 2147483648, %v2023_v26  ;;  %vm2037_vm10 = vcmp.eq.f32.partialorder %v2023_v26, 0.0 }
 0xe19   : > { %v2935_v6 = vpop.eup %2934 }
 0xe1a   : > { %v2029_v7 = vmul.f32 %v2935_v6, %v2023_v26 }
 0xe1c   : > { %v2030_v63 = vmul.f32 %v2935_v6, %v2029_v7 }
 0xe1e   : > { %v2031_v9 = vmul.f32 0.5, %v2030_v63 }
 0xe20   : > { %v2032_v10 = vsub.f32 1.5, %v2031_v9 }
 0xe22   : > { %v2033_v11 = vmul.f32 %v2935_v6, %v2032_v10 }
 0xe24   : > { %v2034_v14 = vmul.f32 %v2033_v11, %v2023_v26 }
 0xe26   : > { %v2036_v22 = vsel %vm2035_vm9, %v2023_v26, %v2034_v14 }
 0xe27   : > { %v2039_v16 = vsel %vm2037_vm10, %v2038_v15, %v2036_v22 }
 0xe28   : > { %v2040_v18 = vadd.f32 1e-06, %v2039_v16 }
 0xe2a   : > { %2936 = vrcp.f32 %v2040_v18  ;;  %v2052_v23 = vand.u32 2147483648, %v2040_v18  ;;  %v2050_v27 = vand.u32 2147483647, %v2040_v18  ;;  %vm2046_vm12 = vweird.f32 %v2040_v18 }
 0xe2c   : > { %v2053_v3 = vor.u32 1.1754944e-38, %v2052_v23  ;;  %vm2051_vm14 = vcmp.eq.f32.partialorder %v2050_v27, 8.507059e+37 }
 0xe30   : > { %v2937_v19 = vpop.eup %2936 }
 0xe31   : > { %v2042_v20 = vmul.f32 %v2937_v19, %v2040_v18  ;;  %vm2047_vm11 = vweird.f32 %v2937_v19 }
 0xe32   : > { %vm2048_vm13 = vmor %vm2046_vm12, %vm2047_vm11 }
 0xe33   : > { %v2043_v21 = vsub.f32 1.0, %v2042_v20 }
 0xe35   : > { %v2044_v25 = vmul.f32 %v2937_v19, %v2043_v21 }
 0xe37   : > { %v2045_v59 = vadd.f32 %v2937_v19, %v2044_v25 }
 0xe39   : > { %v2049_v29 = vsel %vm2048_vm13, %v2937_v19, %v2045_v59 }
 0xe3a   : > { %v2054_v31 = vsel %vm2051_vm14, %v2053_v3, %v2049_v29 }
 0xe3b   : > { %v2055_v4 = vmul.f32 %v2054_v31, %v2027_v28 }
 0xe3d   : > { %v2059_v32 = vadd.f32 %v2887_v30, %v2055_v4 }
 0xe3f   : > { %v2060_v33 = vpack.c.bf16 %v2059_v32, %v2059_v32 }
 0xe41   : > { %2583 = vmatmul.msk.bf16.vlgmr.msrb.gmra.mxu0 %vm1112_vm0, %v2060_v33 }
 0xebe   : > { %v2093_v0 = vpop.f32.mrf.mxu0 }
 0xebf   : > { %v2094_v36 = vadd.f32 %v2888_v35, %v2093_v0 }
 0xec1   : > { %v2097_v37 = vmax.f32 %v2094_v36, 0.0 }
 0xec3   : > { %v2098_v38 = vpack.c.bf16 %v2097_v37, %v2097_v37 }
 0xec5   : > { %2600 = vmatmul.msk.bf16.vlgmr.msrb.gmra.mxu1 %vm2135_vm15, %v2098_v38 }
 0xec6   : > { %v2095_v39 = vpop.f32.mrf.mxu0 }
 0xf42   : > { %v2148_v61 = vpop.f32.mrf.mxu1 }
 0xf43   : > { %v2149_v42 = vadd.f32 %v2889_v41, %v2148_v61 }
 0xf45   : > { %v2152_v40 = vadd.f32 %v2149_v42, %v4203_v54 }
 0xf47   : > { %2153 = vst.msk [vmem:[%s1095_s13] sm:$0xff] %vm1112_vm0, %v2152_v40 }
 0xf48   : > { %3535 = shalt.err (!%p3532_p0)
}
 0xf49   : > { %2693 = dma.vmem_to_hbm [thread:$0]  (%p3964_p5), %s2169_s9, 128, %s2171_s14, %s2155_s15  }
 0xf4a   : > { %v2150_v43 = vpop.f32.mrf.mxu1 }
 0xf4b PF: > { %s4360_s10 = sld [smem:[#allocation49_spill]]  ;;  %p2755_p2 = pnand %p2484_p4, %p3972_p7 }
 0xf4d   : > { %p2756_p6 = pneg %p2755_p2 }
 0xf51   : > { %s2182_s5 = sand.u32 1, %s4360_s10  }
 0xf52   : > { %s2183_s28 = scalar_lea.sflag [#allocation8], %s2182_s5 }
 0xf53   : > { %3605 = dma.done.wait (%p2756_p6), %s2183_s28, 128  }
 0xf54   : > { %3607 = vsyncadd (%p2756_p6), %s2183_s28, 4294967168  ;;  %s51_s2 = sadd.s32 1, %s3630_s2   ;;  %s4361_s5 = smov %s3614_s26 }
 0xf55   : > { %p48_p8 = scmp.ge.s32.totalorder %s51_s2, 4   ;;  %s4362_s26 = smov %s3618_s27 }
 0xf56   : > { %s4363_s27 = smov %s3970_s25  ;;  %s4364_s28 = smov %s3626_s6 }
 0xf57   : > { %s4365_s6 = smov %s4367_s29  ;;  %50 = sbr.rel (!%p48_p8) target bundleno = 40 (0x28), region = 254 }
 0xf5c   :  { %2189 = vsyncpa [#allocation7], 1 }
 0xf5d   :  { %2191 = vsyncpa [#allocation7 + $0x1], 1 }
 0xf5e   :  { %2192 = vsyncpa [#allocation10], 1 }
 0xf5f   :  { %2194 = vsyncpa [#allocation10 + $0x1], 1 }
 0xf60   :  { %2195 = vsyncpa [#allocation13], 1 }
 0xf61   :  { %2196 = vsyncpa [#allocation16], 1 }
 0xf62   :  { %2197 = vsyncpa [#allocation19], 1 }
 0xf63   :  { %2198 = vsyncpa [#allocation22], 1 }
 0xf64   :  { %2199 = vsyncpa [#allocation25], 1 }
 0xf65   :  { %2200 = vsyncpa [#allocation28], 1 }
 0xf66   :  { %2201 = vsyncpa [#allocation31], 1 }
 0xf67   :  { %2202 = vsyncpa [#allocation34], 1 }
 0xf68   :  { %2203 = vsyncpa [#allocation8], 1 }
 0xf69   :  { %2205 = vsyncpa [#allocation8 + $0x1], 1 }

// kernel: self_align_attention_forward.1
= control target key start
LH: loop header
LB: loop body
LE: loop exit
PB: predicated region body
PF: predicated region fallthrough
CT: control target
= control target key end

     0   :  { %s4265_s0 = inlined_call_operand.vmem [shape: f32[2,8,32], index: 0, kind: input, shape index: {}]   ;;  %s4266_s1 = inlined_call_operand.vmem [shape: f32[2,8,32], index: 1, kind: input, shape index: {}]   ;;  %s4267_s2 = inlined_call_operand.hbm [shape: s8[2,8,8], index: 2, kind: input, shape index: {}]   ;;  %s4268_s3 = inlined_call_operand.hbm [shape: s8[2,8,8], index: 3, kind: input, shape index: {}]   ;;  %s4269_s4 = inlined_call_operand.vmem [shape: f32[1,32], index: 4, kind: input, shape index: {}]   ;;  %s4270_s5 = inlined_call_operand.hbm [shape: f32[1,32], index: 5, kind: input, shape index: {}]   ;;  %s4271_s6 = inlined_call_operand.hbm [shape: f32[1,32], index: 6, kind: input, shape index: {}]   ;;  %s4272_s7 = inlined_call_operand.hbm [shape: f32[1,32], index: 7, kind: input, shape index: {}]   ;;  %s4273_s8 = inlined_call_operand.hbm [shape: f32[1,32], index: 8, kind: input, shape index: {}]   ;;  %s4274_s9 = inlined_call_operand.hbm [shape: f32[1,32], index: 9, kind: input, shape index: {}]   ;;  %s4275_s10 = inlined_call_operand.vmem [shape: bf16[32,96], index: 10, kind: input, shape index: {}]   ;;  %s4276_s11 = inlined_call_operand.hbm [shape: f32[1,96], index: 11, kind: input, shape index: {}]   ;;  %s4277_s12 = inlined_call_operand.hbm [shape: bf16[32,32], index: 12, kind: input, shape index: {}]   ;;  %s4278_s13 = inlined_call_operand.hbm [shape: f32[1,32], index: 13, kind: input, shape index: {}]   ;;  %s4279_s14 = inlined_call_operand.hbm [shape: bf16[32,32], index: 14, kind: input, shape index: {}]   ;;  %s4280_s15 = inlined_call_operand.hbm [shape: f32[1,32], index: 15, kind: input, shape index: {}]   ;;  %s4281_s16 = inlined_call_operand.hbm [shape: bf16[32,64], index: 16, kind: input, shape index: {}]   ;;  %s4282_s17 = inlined_call_operand.hbm [shape: f32[1,64], index: 17, kind: input, shape index: {}]   ;;  %s4283_s18 = inlined_call_operand.hbm [shape: bf16[32,32], index: 18, kind: input, shape index: {}]   ;;  %s4284_s19 = inlined_call_operand.hbm [shape: f32[1,32], index: 19, kind: input, shape index: {}]   ;;  %s4285_s20 = inlined_call_operand.hbm [shape: bf16[32,64], index: 20, kind: input, shape index: {}]   ;;  %s4286_s21 = inlined_call_operand.hbm [shape: f32[1,64], index: 21, kind: input, shape index: {}]   ;;  %s4287_s22 = inlined_call_operand.vmem [shape: bf16[64,32], index: 22, kind: input, shape index: {}]   ;;  %s4288_s23 = inlined_call_operand.hbm [shape: f32[1,32], index: 23, kind: input, shape index: {}]   ;;  %s4289_s24 = inlined_call_operand.hbm [shape: f32[2,8,32], index: 24, kind: output, shape index: {}]  }
   0x1   :  { %4298 = sst [smem:[#allocation53_spill]] %s4265_s0 }
   0x2   :  { %4299 = sst [smem:[#allocation54_spill]] %s4266_s1 }
   0x3   :  { %4300 = sst [smem:[#allocation55_spill]] %s4267_s2 }
   0x4   :  { %4301 = sst [smem:[#allocation56_spill]] %s4268_s3 }
   0x5   :  { %4302 = sst [smem:[#allocation57_spill]] %s4269_s4 }
   0x6   :  { %4303 = sst [smem:[#allocation58_spill]] %s4270_s5 }
   0x7   :  { %4304 = sst [smem:[#allocation59_spill]] %s4271_s6 }
   0x8   :  { %4305 = sst [smem:[#allocation60_spill]] %s4272_s7 }
   0x9   :  { %4306 = sst [smem:[#allocation61_spill]] %s4273_s8 }
   0xa   :  { %4307 = sst [smem:[#allocation62_spill]] %s4274_s9 }
   0xb   :  { %4308 = sst [smem:[#allocation63_spill]] %s4275_s10 }
   0xc   :  { %4309 = sst [smem:[#allocation64_spill]] %s4276_s11 }
   0xd   :  { %4310 = sst [smem:[#allocation65_spill]] %s4277_s12 }
   0xe   :  { %4311 = sst [smem:[#allocation66_spill]] %s4278_s13 }
   0xf   :  { %4312 = sst [smem:[#allocation67_spill]] %s4279_s14 }
  0x10   :  { %4313 = sst [smem:[#allocation68_spill]] %s4280_s15 }
  0x11   :  { %4314 = sst [smem:[#allocation69_spill]] %s4281_s16 }
  0x12   :  { %4315 = sst [smem:[#allocation70_spill]] %s4282_s17 }
  0x13   :  { %4316 = sst [smem:[#allocation71_spill]] %s4283_s18 }
  0x14   :  { %4317 = sst [smem:[#allocation72_spill]] %s4284_s19 }
  0x15   :  { %4318 = sst [smem:[#allocation73_spill]] %s4287_s22 }
  0x16   :  { %4319 = sst [smem:[#allocation74_spill]] %s4288_s23 }
  0x17   :  { %4320 = sst [smem:[#allocation75_spill]] %s4289_s24 }
  0x18   :  { %29 = vsyncpa [#allocation7], 0 }
  0x19   :  { %31 = vsyncpa [#allocation7 + $0x1], 0 }
  0x1a   :  { %32 = vsyncpa [#allocation10], 0 }
  0x1b   :  { %34 = vsyncpa [#allocation10 + $0x1], 0 }
  0x1c   :  { %35 = vsyncpa [#allocation13], 0 }
  0x1d   :  { %36 = vsyncpa [#allocation16], 0 }
  0x1e   :  { %37 = vsyncpa [#allocation19], 0 }
  0x1f   :  { %38 = vsyncpa [#allocation22], 0 }
  0x20   :  { %39 = vsyncpa [#allocation25], 0 }
  0x21   :  { %40 = vsyncpa [#allocation28], 0 }
  0x22   :  { %41 = vsyncpa [#allocation31], 0 }
  0x23   :  { %42 = vsyncpa [#allocation34], 0 }
  0x24   :  { %43 = vsyncpa [#allocation8], 0 }
  0x25   :  { %45 = vsyncpa [#allocation8 + $0x1], 0  ;;  %s3792_s5 = smov 0   ;;  %s3794_s26 = smov 0  }
  0x26   :  { %s3796_s27 = smov 0   ;;  %s3798_s28 = smov 0  }
  0x27   :  { %s3800_s6 = smov 0   ;;  %s3802_s2 = smov 0  }
  0x28 LB: > { %4321 = sst [smem:[#allocation49_spill]] %s3610_s5  ;;  %s3823_s29 = sadd.s32 4294967295, %s3630_s2   ;;  %s3630_s2 = sphi %s3802_s2, %s51_s2   ;;  %s3626_s6 = sphi %s3800_s6, %s4365_s6   ;;  %s3622_s28 = sphi %s3798_s28, %s4364_s28   ;;  %s3618_s27 = sphi %s3796_s27, %s4363_s27   ;;  %s3614_s26 = sphi %s3794_s26, %s4362_s26   ;;  %s3610_s5 = sphi %s3792_s5, %s4361_s5  }
  0x29   : > { %4322 = sst [smem:[#allocation50_spill]] %s3622_s28  ;;  %p2466_p0 = scmp.ge.s32.totalorder %s3630_s2, 1 }
  0x2a   : > { %4323 = sst [smem:[#allocation51_spill]] %s3823_s29  ;;  %p138_p1 = scmp.eq.s32.totalorder %s3823_s29, 0 }
  0x2b   : > { %p624_p2 = scmp.lt.s32.totalorder %s3630_s2, 3  ;;  %s4324_s30 = sld [smem:[#allocation58_spill]] }
  0x2c   : > { %p2484_p4 = scmp.ge.s32.totalorder %s3630_s2, 2  ;;  %s3632_s8 = smov [#allocation11]  }
  0x2d   : > { %p3831_p3 = pnand %p2466_p0, %p624_p2  ;;  %s641_s4 = sshll.u32 %s3632_s8, 4  ;;  %s642_s4 = int_to_ptr.vmem [resolvable:$true] %s641_s4 }
  0x2e   : > { %s4327_s22 = sld [smem:[#allocation59_spill]]  ;;  %s3633_s23 = smov [#allocation12]  }
  0x2f   : > { %s4325_s25 = scalar_select %p3831_p3, 1, 0 }
  0x30   : > { %p2695_p5 = pneg %p3831_p3  ;;  %s4329_s28 = sld [smem:[#allocation61_spill]] }
  0x31   : > { %s639_s3 = sshll.u32 %s4324_s30, 4  ;;  %4326 = sst [smem:[#allocation52_spill]] %s4325_s25  ;;  %s640_s3 = int_to_ptr.hbm [resolvable:$true] %s639_s3 }
  0x32   : > { %p3843_p6 = pnand %p2695_p5, %p138_p1  ;;  %s653_s8 = sshll.u32 %s3633_s23, 4  ;;  %s654_s8 = int_to_ptr.vmem [resolvable:$true] %s653_s8 }
  0x33   : > { %s4330_s11 = sld [smem:[#allocation64_spill]]  ;;  %s3634_s29 = smov [#allocation15]  }
  0x34   : > { %s651_s10 = sshll.u32 %s4327_s22, 4  ;;  %s677_s5 = sshll.u32 %s3634_s29, 4  ;;  %s652_s10 = int_to_ptr.hbm [resolvable:$true] %s651_s10  ;;  %s678_s5 = int_to_ptr.vmem [resolvable:$true] %s677_s5 }
  0x35   : > { %2698 = dma.hbm_to_vmem [thread:$0]  (!%p3843_p6), %s640_s3, 16, %s642_s4, [#allocation10]  }
  0x36   : > { %s675_s25 = sshll.u32 %s4329_s28, 4  ;;  %s3635_s28 = smov [#allocation18]   ;;  %s676_s25 = int_to_ptr.hbm [resolvable:$true] %s675_s25 }
  0x37   : > { %2701 = dma.hbm_to_vmem [thread:$0]  (!%p3843_p6), %s652_s10, 16, %s654_s8, [#allocation13]  }
  0x38   : > { %2707 = dma.hbm_to_vmem [thread:$0]  (!%p3843_p6), %s676_s25, 16, %s678_s5, [#allocation16]  }
  0x39   : > { %s702_s1 = sshll.u32 %s4330_s11, 4  ;;  %s704_s23 = sshll.u32 %s3635_s28, 4  ;;  %s703_s1 = int_to_ptr.hbm [resolvable:$true] %s702_s1  ;;  %s705_s23 = int_to_ptr.vmem [resolvable:$true] %s704_s23 }
  0x3a   : > { %s4331_s13 = sld [smem:[#allocation66_spill]]  ;;  %s3636_s29 = smov [#allocation21]  }
  0x3b   : > { %2713 = dma.hbm_to_vmem [thread:$0]  (!%p3843_p6), %s703_s1, 16, %s705_s23, [#allocation19]  }
  0x3c   : > { %s4332_s15 = sld [smem:[#allocation68_spill]]  ;;  %s730_s22 = sshll.u32 %s3636_s29, 4  ;;  %s731_s22 = int_to_ptr.vmem [resolvable:$true] %s730_s22 }
  0x3d   : > { %s3637_s5 = smov [#allocation24]   ;;  %s4333_s17 = sld [smem:[#allocation70_spill]] }
  0x3e   : > { %s756_s25 = sshll.u32 %s3637_s5, 4  ;;  %s4334_s19 = sld [smem:[#allocation72_spill]]  ;;  %s757_s25 = int_to_ptr.vmem [resolvable:$true] %s756_s25 }
  0x3f   : > { %s3638_s10 = smov [#allocation27]   ;;  %s832_s24 = sshll.u32 %s4286_s21, 4  ;;  %s833_s24 = int_to_ptr.hbm [resolvable:$true] %s832_s24 }
  0x40   : > { %s728_s3 = sshll.u32 %s4331_s13, 4  ;;  %s782_s4 = sshll.u32 %s3638_s10, 4  ;;  %s729_s3 = int_to_ptr.hbm [resolvable:$true] %s728_s3  ;;  %s783_s4 = int_to_ptr.vmem [resolvable:$true] %s782_s4 }
  0x41   : > { %2719 = dma.hbm_to_vmem [thread:$0]  (!%p3843_p6), %s729_s3, 16, %s731_s22, [#allocation22]  }
  0x42   : > { %s754_s8 = sshll.u32 %s4332_s15, 4  ;;  %s3639_s3 = smov [#allocation30]   ;;  %s755_s8 = int_to_ptr.hbm [resolvable:$true] %s754_s8 }
  0x43   : > { %s780_s7 = sshll.u32 %s4333_s17, 4  ;;  %s808_s29 = sshll.u32 %s3639_s3, 4  ;;  %s781_s7 = int_to_ptr.hbm [resolvable:$true] %s780_s7  ;;  %s809_s29 = int_to_ptr.vmem [resolvable:$true] %s808_s29 }
  0x44   : > { %2725 = dma.hbm_to_vmem [thread:$0]  (!%p3843_p6), %s755_s8, 16, %s757_s25, [#allocation25]  }
  0x45   : > { %s806_s30 = sshll.u32 %s4334_s19, 4  ;;  %s4335_s28 = sld [smem:[#allocation60_spill]]  ;;  %s807_s30 = int_to_ptr.hbm [resolvable:$true] %s806_s30 }
  0x46   : > { %2731 = dma.hbm_to_vmem [thread:$0]  (!%p3843_p6), %s781_s7, 16, %s783_s4, [#allocation28]  }
  0x47   : > { %2737 = dma.hbm_to_vmem [thread:$0]  (!%p3843_p6), %s807_s30, 16, %s809_s29, [#allocation31]  }
  0x48   : > { %s3640_s23 = smov [#allocation33]   ;;  %s3641_s7 = smov [#allocation14]  }
  0x49   : > { %s834_s10 = sshll.u32 %s3640_s23, 4  ;;  %s665_s4 = sshll.u32 %s3641_s7, 4  ;;  %s835_s10 = int_to_ptr.vmem [resolvable:$true] %s834_s10  ;;  %s666_s4 = int_to_ptr.vmem [resolvable:$true] %s665_s4 }
  0x4a   : > { %2743 = dma.hbm_to_vmem [thread:$0]  (!%p3843_p6), %s833_s24, 16, %s835_s10, [#allocation34]  }
  0x4b   : > { %s663_s1 = sshll.u32 %s4335_s28, 4  ;;  %s4336_s9 = sld [smem:[#allocation62_spill]]  ;;  %s664_s1 = int_to_ptr.hbm [resolvable:$true] %s663_s1 }
  0x4c   : > { %2704 = dma.hbm_to_vmem [thread:$0]  (!%p3843_p6), %s664_s1, 16, %s666_s4, [#allocation13]  }
  0x4d   : > { %s4337_s12 = sld [smem:[#allocation65_spill]]  ;;  %s3642_s25 = smov [#allocation17]  }
  0x4e   : > { %s689_s28 = sshll.u32 %s3642_s25, 4  ;;  %s3643_s24 = smov [#allocation20]   ;;  %s690_s28 = int_to_ptr.vmem [resolvable:$true] %s689_s28 }
  0x4f   : > { %s715_s23 = sshll.u32 %s3643_s24, 4  ;;  %s3644_s10 = smov 64   ;;  %s716_s23 = int_to_ptr.vmem [resolvable:$true] %s715_s23 }
  0x50   : > { %s3645_s7 = smov 4   ;;  %s4338_s14 = sld [smem:[#allocation67_spill]] }
  0x51   : > { %s687_s5 = sshll.u32 %s4336_s9, 4  ;;  %s3646_s22 = smov [#allocation23]   ;;  %s688_s5 = int_to_ptr.hbm [resolvable:$true] %s687_s5 }
  0x52   : > { %2710 = dma.hbm_to_vmem [thread:$0]  (!%p3843_p6), %s688_s5, 16, %s690_s28, [#allocation16]  }
  0x53   : > { %s713_s8 = sshll.u32 %s4337_s12, 4  ;;  %s741_s30 = sshll.u32 %s3646_s22, 4  ;;  %s714_s8 = int_to_ptr.hbm [resolvable:$true] %s713_s8  ;;  %s742_s30 = int_to_ptr.vmem [resolvable:$true] %s741_s30 }
  0x54   : > { %2716 = dma.hbm_to_vmem [thread:$0]  (!%p3843_p6), %s714_s8, 256, %s716_s23, [#allocation19], %s3644_s10, %s3644_s10, %s3645_s7  }
  0x55   : > { %s4339_s16 = sld [smem:[#allocation69_spill]]  ;;  %s3647_s8 = smov [#allocation26]  }
  0x56   : > { %s739_s3 = sshll.u32 %s4338_s14, 4  ;;  %s767_s28 = sshll.u32 %s3647_s8, 4  ;;  %s740_s3 = int_to_ptr.hbm [resolvable:$true] %s739_s3  ;;  %s768_s28 = int_to_ptr.vmem [resolvable:$true] %s767_s28 }
  0x57   : > { %2722 = dma.hbm_to_vmem [thread:$0]  (!%p3843_p6), %s740_s3, 256, %s742_s30, [#allocation22], %s3644_s10, %s3644_s10, %s3645_s7  }
  0x58   : > { %s4340_s18 = sld [smem:[#allocation71_spill]]  ;;  %s817_s3 = sshll.u32 %s4285_s20, 4  ;;  %s818_s3 = int_to_ptr.hbm [resolvable:$true] %s817_s3 }
  0x59   : > { %s3648_s30 = smov [#allocation29]   ;;  %s3649_s29 = smov [#allocation32]  }
  0x5a   : > { %s793_s5 = sshll.u32 %s3648_s30, 4  ;;  %s819_s8 = sshll.u32 %s3649_s29, 4  ;;  %s794_s5 = int_to_ptr.vmem [resolvable:$true] %s793_s5  ;;  %s820_s8 = int_to_ptr.vmem [resolvable:$true] %s819_s8 }
  0x5b   : > { %s765_s25 = sshll.u32 %s4339_s16, 4  ;;  %s4342_s23 = sld [smem:[#allocation74_spill]]  ;;  %s766_s25 = int_to_ptr.hbm [resolvable:$true] %s765_s25 }
  0x5c   : > { %2728 = dma.hbm_to_vmem [thread:$0]  (!%p3843_p6), %s766_s25, 256, %s768_s28, [#allocation25], %s3644_s10, %s3644_s10, %s3645_s7  }
  0x5d   : > { %s4341_s25 = sld [smem:[#allocation49_spill]]  ;;  %s63_s29 = sadd.s32 1, %s3626_s6 }
  0x5e   : > { %s791_s1 = sshll.u32 %s4340_s18, 4  ;;  %s4343_s22 = sld [smem:[#allocation51_spill]]  ;;  %s792_s1 = int_to_ptr.hbm [resolvable:$true] %s791_s1 }
  0x5f   : > { %2734 = dma.hbm_to_vmem [thread:$0]  (!%p3843_p6), %s792_s1, 256, %s794_s5, [#allocation28], %s3644_s10, %s3644_s10, %s3645_s7  }
  0x60   : > { %2740 = dma.hbm_to_vmem [thread:$0]  (!%p3843_p6), %s818_s3, 256, %s820_s8, [#allocation31], %s3644_s10, %s3644_s10, %s3645_s7  }
  0x61   : > { %s847_s4 = sshll.u32 %s4342_s23, 4  ;;  %s3650_s1 = smov [#allocation35]   ;;  %s848_s4 = int_to_ptr.hbm [resolvable:$true] %s847_s4 }
  0x62   : > { %s849_s30 = sshll.u32 %s3650_s1, 4  ;;  %s2465_s5 = sadd.s32 4294967294, %s3630_s2   ;;  %s850_s30 = int_to_ptr.vmem [resolvable:$true] %s849_s30 }
  0x63   : > { %2746 = dma.hbm_to_vmem [thread:$0]  (!%p3843_p6), %s848_s4, 16, %s850_s30, [#allocation34]  }
  0x64   : > { %s124_s28 = sadd.s32 1, %s3618_s27  ;;  %p65_p7 = scmp.ge.s32.totalorder %s63_s29, 2 }
  0x65   : > { %p131_p8 = scmp.ne.s32.totalorder %s3618_s27, %s3614_s26  ;;  %p132_p9 = scmp.eq.s32.totalorder %s3630_s2, 0 }
  0x66   : > { %p137_p10 = scmp.ne.s32.totalorder %s3614_s26, %s4341_s25  ;;  %s4367_s29 = smov (%p65_p7, %s63_s29), 0 }
  0x67   : > { %p3951_p11 = por %p132_p9, %p131_p8  ;;  %s119_s7 = ssub.s32 %s3626_s6, %s4367_s29 }
  0x68   : > { %p3957_p12 = por %p138_p1, %p137_p10  ;;  %p611_p13 = scmp.eq.s32.totalorder %s4343_s22, 1 }
  0x69   : > { %p122_p0 = scmp.eq.s32.totalorder %s119_s7, 0  ;;  %p617_p2 = scmp.eq.s32.totalorder %s2465_s5, 1 }
  0x6a   : > { %p3964_p5 = por %p611_p13, %p131_p8  ;;  %p2775_p6 = scmp.lt.s32.totalorder %s3630_s2, 2 }
  0x6b   : > { %s3970_s25 = scalar_select %p122_p0, %s3618_s27, %s124_s28  }
  0x6c   : > { %p3972_p7 = por %p617_p2, %p137_p10  ;;  %s874_s24 = sand.u32 1, %s3618_s27  }
  0x6d   : > { %s2485_s23 = sshll.u32 %s874_s24, 1  ;;  %s2486_s4 = sshll.u32 %s3626_s6, 1 }
  0x6e   : > { %s4348_s30 = sld [smem:[#allocation55_spill]]  ;;  %s878_s5 = scalar_lea.vmem [#allocation6], %s2485_s23 }
  0x6f   : > { %s887_s9 = sshll.u32 %s878_s5, 4  ;;  %p2748_p8 = pnand %p2775_p6, %p3951_p11  ;;  %s888_s9 = int_to_ptr.vmem [resolvable:$true] %s887_s9 }
  0x70   : > { %s4349_s13 = sld [smem:[#allocation56_spill]]  ;;  %s894_s15 = sand.u32 1, %s3630_s2  }
  0x71   : > { %s875_s16 = scalar_lea.sflag [#allocation7], %s874_s24  ;;  %s898_s18 = scalar_lea.vmem [#allocation9], %s2485_s23 }
  0x72   : > { %s907_s19 = sshll.u32 %s898_s18, 4  ;;  %s895_s1 = scalar_lea.sflag [#allocation10], %s894_s15  ;;  %s908_s19 = int_to_ptr.vmem [resolvable:$true] %s907_s19 }
  0x73   : > { %s3990_s10 = sand.u32 (!%p3831_p3), 1, %s3614_s26  }
  0x74   : > { %s883_s7 = scalar_lea.hbm %s4348_s30, %s2486_s4  ;;  %s2490_s12 = sshll.u32 (!%p3831_p3), %s3990_s10, 1 }
  0x75   : > { %s885_s11 = sshll.u32 %s883_s7, 4  ;;  %916 = sbr.rel (%p3831_p3) target bundleno = 3915 (0xf4b), region = 116  ;;  %s886_s11 = int_to_ptr.hbm [resolvable:$true] %s885_s11 }
  0x76   : > { %s903_s14 = scalar_lea.hbm %s4349_s13, %s2486_s4  ;;  %s919_s13 = scalar_lea.sflag (!%p3831_p3), [#allocation7], %s3990_s10 }
  0x77   : > { %2750 = dma.hbm_to_vmem [thread:$0]  (!%p2748_p8), %s886_s11, 32, %s888_s9, %s875_s16  }
  0x78   : > { %s905_s17 = sshll.u32 %s903_s14, 4  ;;  %s3994_s24 = scalar_lea.vmem (!%p3831_p3), [#allocation6], %s2490_s12  ;;  %s906_s17 = int_to_ptr.hbm [resolvable:$true] %s905_s17 }
  0x79   : > { %2753 = dma.hbm_to_vmem [thread:$0]  (!%p2748_p8), %s906_s17, 32, %s908_s19, %s895_s1  }
  0x7a   : > { %3561 = dma.done.wait (%p3957_p12), %s919_s13, 32  }
  0x7b   : > { %3563 = vsyncadd (%p3957_p12), %s919_s13, 4294967264  ;;  %s4351_s9 = sld [smem:[#allocation51_spill]]  ;;  %s4001_s15 = scalar_lea.vmem [#allocation9], %s2490_s12 }
  0x81   : > { %s928_s11 = sand.u32 1, %s4351_s9  }
  0x82   : > { %s929_s14 = scalar_lea.sflag [#allocation10], %s928_s11 }
  0x83   : > { %3565 = dma.done.wait (%p3957_p12), %s929_s14, 32  }
  0x84   : > { %3567 = vsyncadd (%p3957_p12), %s929_s14, 4294967264 }
  0x85   : > { %3569 = dma.done.wait (%p138_p1), [#allocation10], 16  }
  0x86   : > { %3571 = vsyncadd (%p138_p1), [#allocation10], 4294967280 }
  0x87   : > { %3573 = dma.done.wait (%p138_p1), [#allocation13], 32  }
  0x88   : > { %3575 = vsyncadd (%p138_p1), [#allocation13], 4294967264 }
  0x89   : > { %3577 = dma.done.wait (%p138_p1), [#allocation16], 32  }
  0x8a   : > { %3579 = vsyncadd (%p138_p1), [#allocation16], 4294967264 }
  0x8b   : > { %3581 = dma.done.wait (%p138_p1), [#allocation19], 272  }
  0x8c   : > { %3583 = vsyncadd (%p138_p1), [#allocation19], 4294967024 }
  0x8d   : > { %3585 = dma.done.wait (%p138_p1), [#allocation22], 272  }
  0x8e   : > { %3587 = vsyncadd (%p138_p1), [#allocation22], 4294967024 }
  0x8f   : > { %3589 = dma.done.wait (%p138_p1), [#allocation25], 272  }
  0x90   : > { %3591 = vsyncadd (%p138_p1), [#allocation25], 4294967024 }
  0x91   : > { %3593 = dma.done.wait (%p138_p1), [#allocation28], 272  }
  0x92   : > { %3595 = vsyncadd (%p138_p1), [#allocation28], 4294967024 }
  0x93   : > { %3597 = dma.done.wait (%p138_p1), [#allocation31], 272  }
  0x94   : > { %3599 = vsyncadd (%p138_p1), [#allocation31], 4294967024 }
  0x95   : > { %3601 = dma.done.wait (%p138_p1), [#allocation34], 32  }
  0x96   : > { %3603 = vsyncadd (%p138_p1), [#allocation34], 4294967264  ;;  %s4352_s16 = sld [smem:[#allocation50_spill]]  ;;  %vm1112_vm0 = vcmask 261120   ;;  %v3651_v2 = vmov 32.0   ;;  %v3652_v14 = vmov 31.0  }
  0x97   : > { %s4353_s23 = sld [smem:[#allocation53_spill]]  ;;  %2890 = vrcp.f32 %v3651_v2  ;;  %v2878_v47 = vld [vmem:[#allocation11] ss:$0 sm:$0xff]  ;;  %v2879_v52 = vld [vmem:[#allocation18] ss:$0 sm:$0xff]  ;;  %vm1211_vm9 = vcmask 781312  }
  0x98   : > { %2892 = vrcp.f32 %v3652_v14  ;;  %s4354_s5 = sld [smem:[#allocation63_spill]]  ;;  %s3653_s11 = smov 88   ;;  %vm1322_vm10 = vcmask 1043456   ;;  %vm1283_vm11 = vcmask 64512   ;;  %vm1252_vm12 = vcmask 519168  }
  0x99   : > { %s4356_s9 = sld [smem:[#allocation57_spill]]  ;;  %s3654_s14 = smov 64   ;;  %vm1340_vm13 = vcmask 60416   ;;  %vm1413_vm14 = vcmask 126016   ;;  %vm1486_vm15 = vcmask 191616  }
  0x9a   : > { %s3655_s19 = smov 96   ;;  %s3656_s0 = smov 80  }
  0x9b   : > { %s3662_s22 = smov 56   ;;  %s3663_s12 = smov 40  }
  0x9c   : > { %p1096_p3 = scmp.lt.s32.totalorder %s4352_s16, 1  ;;  %s3664_s13 = smov 8  }
  0x9d   : > { %v2891_v3 = vpop.eup %2890 }
  0x9e   : > { %s4045_s17 = scalar_select %p1096_p3, %s4352_s16, 1  ;;  %v1117_v4 = vmul.f32 32.0, %v2891_v3  ;;  %vm1121_vm1 = vweird.f32 %v2891_v3  ;;  %v2893_v15 = vpop.eup %2892  ;;  %v2606_v19 = vld [vmem:[%s4354_s5 + $0x8] sm:$0xff] }
  0x9f   : > { %v1130_v16 = vmul.f32 31.0, %v2893_v15  ;;  %s4355_s1 = smov %s4354_s5  ;;  %1203 = vmatpush.bf16.msra.mxu0 %v2606_v19  ;;  %vm1134_vm2 = vweird.f32 %v2893_v15  ;;  %v2877_v40 = vld [vmem:[%s4356_s9] ss:$0 sm:$0xff]  ;;  %s4357_s5 = sld [smem:[#allocation54_spill]] }
  0xa0   : > { %s2510_s18 = sshll.u32 %s4045_s17, 3  ;;  %v1118_v5 = vsub.f32 1.0, %v1117_v4  ;;  %v2605_v20 = vld [vmem:[%s4355_s1] sm:$0xff]  ;;  %s3660_s17 = smov 104  }
  0xa1   : > { %s1099_s4 = scalar_lea.vmem %s4353_s23, %s2510_s18  ;;  %v1131_v17 = vsub.f32 1.0, %v1130_v16  ;;  %s3657_s23 = smov 120  }
  0xa2   : > { %v4053_v0 = vld [vmem:[%s1099_s4] sm:$0xff]  ;;  %v1119_v6 = vmul.f32 %v2891_v3, %v1118_v5  ;;  %s3658_s4 = smov 112   ;;  %s3665_s9 = smov 24  }
  0xa3   : > { %v1113_v1 = vsel %vm1112_vm0, %v4053_v0, 0.0  ;;  %v1132_v18 = vmul.f32 %v2893_v15, %v1131_v17  ;;  %1204 = vmatpush.bf16.msra.mxu0 %v2605_v20 }
  0xa4   : > { %1114 = vadd.xlane.f32.xlu0 %v1113_v1  ;;  %v1120_v7 = vadd.f32 %v2891_v3, %v1119_v6 }
  0xa5   : > { %v1133_v21 = vadd.f32 %v2893_v15, %v1132_v18  ;;  %s1103_s28 = scalar_lea.vmem %s4357_s5, %s2510_s18  ;;  %s3661_s18 = smov 48  }
  0xa6   : > { %v4057_v8 = vsel %vm1121_vm1, %v2891_v3, %v1120_v7  ;;  %vm1559_vm1 = vcmask 257216  }
  0xa7   : > { %v4068_v22 = vsel %vm1134_vm2, %v2893_v15, %v1133_v21 }
 0x117   : > { %v1115_v9 = vpop.xlane.xlu0 %1114 }
 0x118   : > { %v1123_v10 = vmul.f32 %v4057_v8, %v1115_v9 }
 0x11a   : > { %v1124_v11 = vsub.f32 %v4053_v0, %v1123_v10  ;;  %v2608_v10 = vld [vmem:[#allocation26 + $0x8] sm:$0xff] }
 0x11b   : > { %1244 = vmatpush.bf16.msra.mxu1 %v2608_v10 }
 0x11c   : > { %v1125_v12 = vmul.f32 %v1124_v11, %v1124_v11  ;;  %v1140_v45 = vmul.f32 %v2877_v40, %v1124_v11  ;;  %v2607_v11 = vld [vmem:[#allocation26] sm:$0xff] }
 0x11e   : > { %v1126_v13 = vsel %vm1112_vm0, %v1125_v12, 0.0  ;;  %v1213_v12 = vld [vmem:[%s1103_s28] sm:$0xff]  ;;  %s2509_s28 = sshll.u32 %s3990_s10, 3 }
 0x11f   : > { %1127 = vadd.xlane.f32.xlu0 %v1126_v13  ;;  %1245 = vmatpush.bf16.msra.mxu1 %v2607_v11  ;;  %v1214_v13 = vpack.c.bf16 %v1213_v12, %v1213_v12 }
 0x122   : > { %2529 = vmatmul.msk.bf16.vlgmr.msra.gmra.mxu1 %vm1112_vm0, %v1214_v13 }
 0x192   : > { %v1128_v23 = vpop.xlane.xlu0 %1127 }
 0x193   : > { %v1136_v24 = vmul.f32 %v4068_v22, %v1128_v23 }
 0x195   : > { %2894 = vrsqrt.f32 %v1136_v24  ;;  %vm1148_vm3 = vcmp.eq.f32.partialorder %v1136_v24, inf  ;;  %v1151_v32 = vand.u32 2147483648, %v1136_v24  ;;  %vm1150_vm4 = vcmp.eq.f32.partialorder %v1136_v24, 0.0 }
 0x19b   : > { %v2895_v25 = vpop.eup %2894 }
 0x19c   : > { %v1142_v26 = vmul.f32 %v2895_v25, %v1136_v24 }
 0x19e   : > { %v1143_v27 = vmul.f32 %v2895_v25, %v1142_v26 }
 0x19f   : > { %v1247_v26 = vpop.f32.mrf.mxu1 }
 0x1a0   : > { %v1144_v28 = vmul.f32 0.5, %v1143_v27 }
 0x1a2   : > { %v1145_v29 = vsub.f32 1.5, %v1144_v28 }
 0x1a4   : > { %v1146_v30 = vmul.f32 %v2895_v25, %v1145_v29  ;;  %v2880_v25 = vld [vmem:[#allocation27] ss:$0 sm:$0xff] }
 0x1a5   : > { %v1248_v27 = vadd.f32 %v2880_v25, %v1247_v26 }
 0x1a6   : > { %v1147_v31 = vmul.f32 %v1146_v30, %v1136_v24  ;;  %v1257_v30 = vld [vmem:[%s3994_s24] sm:$0x3]  ;;  %s3659_s24 = smov 72  }
 0x1a7   : > { %v1251_v28 = vpack.c.bf16 %v1248_v27, %v1248_v27  ;;  %v1249_v29 = vpop.f32.mrf.mxu1 }
 0x1a8   : > { %v1149_v33 = vsel %vm1148_vm3, %v1136_v24, %v1147_v31  ;;  %v1258_v31 = vunpack.c.0.s8 %v1257_v30 }
 0x1a9   : > { %v1152_v34 = vsel %vm1150_vm4, %v1151_v32, %v1149_v33  ;;  %1253 = vst.msk [vmem:[#allocation3] sm:$0xf] %vm1252_vm12, %v1251_v28 }
 0x1aa   : > { %v1153_v35 = vadd.f32 1e-06, %v1152_v34  ;;  %v1259_v32 = vcvt.s32.f32 %v1258_v31 }
 0x1ac   : > { %2896 = vrcp.f32 %v1153_v35  ;;  %v1165_v39 = vand.u32 2147483648, %v1153_v35  ;;  %v1163_v42 = vand.u32 2147483647, %v1153_v35  ;;  %vm1159_vm6 = vweird.f32 %v1153_v35 }
 0x1ad   : > { %v2530_v33 = vadd.f32 -1.0, %v1259_v32 }
 0x1ae   : > { %v1166_v44 = vor.u32 1.1754944e-38, %v1165_v39  ;;  %vm1164_vm8 = vcmp.eq.f32.partialorder %v1163_v42, 8.507059e+37 }
 0x1af   : > { %v1261_v34 = vmul.f32 1e+09, %v2530_v33 }
 0x1b0   : > { %v4113_v12 = vld [vmem:[#allocation3] sm:$0xf] }
 0x1b1   : > { %v1708_v13 = vsel %vm1283_vm11, %v4113_v12, 0 }
 0x1b2   : > { %v2897_v36 = vpop.eup %2896 }
 0x1b3   : > { %v1155_v37 = vmul.f32 %v2897_v36, %v1153_v35  ;;  %vm1160_vm5 = vweird.f32 %v2897_v36 }
 0x1b4   : > { %vm1161_vm7 = vmor %vm1159_vm6, %vm1160_vm5 }
 0x1b5   : > { %v1156_v38 = vsub.f32 1.0, %v1155_v37 }
 0x1b7   : > { %v1157_v41 = vmul.f32 %v2897_v36, %v1156_v38 }
 0x1b9   : > { %v1158_v43 = vadd.f32 %v2897_v36, %v1157_v41 }
 0x1bb   : > { %v1162_v46 = vsel %vm1161_vm7, %v2897_v36, %v1158_v43 }
 0x1bc   : > { %v1167_v48 = vsel %vm1164_vm8, %v1166_v44, %v1162_v46  ;;  %vm1695_vm8 = vcmask 257024  }
 0x1bd   : > { %v1168_v49 = vmul.f32 %v1167_v48, %v1140_v45 }
 0x1bf   : > { %v1172_v50 = vadd.f32 %v2878_v47, %v1168_v49 }
 0x1c1   : > { %v1173_v51 = vpack.c.bf16 %v1172_v50, %v1172_v50 }
 0x1c3   : > { %2520 = vmatmul.msk.bf16.vlgmr.msra.gmra.mxu0 %vm1112_vm0, %v1173_v51 }
 0x240   : > { %v1206_v53 = vpop.f32.mrf.mxu0 }
 0x241   : > { %v1207_v54 = vadd.f32 %v2879_v52, %v1206_v53 }
 0x243   : > { %v1210_v55 = vpack.c.bf16 %v1207_v54, %v1207_v54 }
 0x245   : > { %1212 = vst.msk [vmem:[#allocation2] sm:$0xf] %vm1211_vm9, %v1210_v55 }
 0x248   : > { %v1208_v56 = vpop.f32.mrf.mxu0 }
 0x24c   : > { %v1343_v57 = vld [vmem:[#allocation2] sm:$0xf] }
 0x24d   : > { %v1277_v58 = vld [vmem:[#allocation2] sm:$0xf]  ;;  %v1350_v59 = vunpack.c.l.b16 %v1343_v57 }
 0x24e   : > { %v1279_v60 = vunpack.c.l.b16 %v1277_v58  ;;  %v1416_v63 = vld [vmem:[#allocation2] sm:$0xf] }
 0x24f   : > { %v4075_v61 = vpack.c.b16 %v1350_v59, %v1350_v59  ;;  %v1342_v1 = vld [vmem:[#allocation2] sm:$0xf]  ;;  %v1423_v2 = vunpack.c.l.b16 %v1416_v63 }
 0x250   : > { %v1280_v62 = vpack.c.b16 %v1279_v60, %v1279_v60  ;;  %v1345_v3 = vunpack.c.l.b16 %v1342_v1  ;;  %v1415_v6 = vld [vmem:[#allocation2] sm:$0xf] }
 0x251   : > { %1352 = vrot.lane.b32.xlu0 %v4075_v61, %s3653_s11  ;;  %v4080_v4 = vpack.c.b16 %v1423_v2, %v1423_v2  ;;  %v1418_v7 = vunpack.c.l.b16 %v1415_v6  ;;  %v1276_v21 = vld [vmem:[#allocation2] sm:$0xf] }
 0x252   : > { %1317 = vrot.lane.b32.xlu2 %v1280_v62, %s3654_s14  ;;  %1281 = vrot.lane.b32.xlu1 %v1280_v62, %s3655_s19  ;;  %v1346_v5 = vpack.c.b16 %v1345_v3, %v1345_v3  ;;  %v1489_v50 = vld [vmem:[#allocation2] sm:$0xf]  ;;  %s3666_s14 = smov 16  }
 0x253   : > { %v1419_v9 = vpack.c.b16 %v1418_v7, %v1418_v7  ;;  %v1496_v51 = vunpack.c.l.b16 %v1489_v50  ;;  %v1488_v53 = vld [vmem:[#allocation2] sm:$0xf] }
 0x254   : > { %v1491_v54 = vunpack.c.l.b16 %v1488_v53 }
 0x255   : > { %v1497_v52 = vpack.c.b16 %v1496_v51, %v1496_v51 }
 0x256   : > { %v1492_v55 = vpack.c.b16 %v1491_v54, %v1491_v54 }
 0x259   : > { %1425 = vrot.lane.b32.xlu0 %v4080_v4, %s3656_s0 }
 0x25a   : > { %1347 = vrot.lane.b32.xlu2 %v1346_v5, %s3657_s23 }
 0x261   : > { %1420 = vrot.lane.b32.xlu0 %v1419_v9, %s3658_s4 }
 0x2ac   : > { %v1318_v14 = vpop.permute.xlu2 %1317 }
 0x2ad   : > { %v1324_v15 = vsel %vm1322_vm10, %v1318_v14, 0 }
 0x2ae   : > { %1333 = vmatpush.bf16.msra.mxu3 %v1324_v15 }
 0x2b4   : > { %v1348_v56 = vpop.permute.xlu2 %1347 }
 0x2c3   : > { %v1353_v16 = vpop.permute.xlu0 %1352 }
 0x2c4   : > { %v1282_v17 = vpop.permute.xlu1 %1281  ;;  %v1358_v18 = vsel %vm1283_vm11, %v1353_v16, 0 }
 0x2c5   : > { %v1288_v19 = vsel %vm1283_vm11, %v1282_v17, 0  ;;  %1367 = vmatpush.bf16.xpose.msrb.mxu3 %v1358_v18 }
 0x2c6   : > { %1297 = vmatpush.bf16.xpose.msra.mxu2 %v1288_v19 }
 0x2cb   : > { %v1426_v20 = vpop.permute.xlu0 %1425 }
 0x2cc   : > { %v1431_v23 = vsel %vm1283_vm11, %v1426_v20, 0 }
 0x2cd   : > { %2532 = vmatmul.msk.bf16.vlgmr.msra.gmra.mxu2 %vm1283_vm11, %v1276_v21  ;;  %1440 = vmatpush.bf16.xpose.msrb.mxu1 %v1431_v23 }
 0x2d3   : > { %v1421_v24 = vpop.permute.xlu0 %1420 }
 0x2d4   : > { %2536 = vmatmul.msk.bf16.vlgmr.msrb.gmra.mxu1 %vm1283_vm11, %v1421_v24 }
 0x350   : > { %v1299_v35 = vpop.f32.mrf.mxu2 }
 0x351   : > { %v1303_v36 = vmul.f32 0.35355338, %v1299_v35  ;;  %v1442_v37 = vpop.f32.mrf.mxu1 }
 0x352   : > { %v1446_v38 = vmul.f32 0.35355338, %v1442_v37 }
 0x353   : > { %v1304_v39 = vadd.f32 %v1303_v36, %v1261_v34 }
 0x354   : > { %v4099_v40 = vadd.f32 %v1446_v38, %v1261_v34 }
 0x355   : > { %v1305_v41 = vsel %vm1283_vm11, %v1304_v39, -inf }
 0x356   : > { %1306 = vmax.xlane.f32.xlu1 %v1305_v41  ;;  %v1448_v42 = vsel %vm1283_vm11, %v4099_v40, -inf }
 0x357   : > { %1449 = vmax.xlane.f32.xlu0 %v1448_v42 }
 0x358   : > { %v1301_v43 = vpop.f32.mrf.mxu2 }
 0x359   : > { %v1444_v44 = vpop.f32.mrf.mxu1 }
 0x3c9   : > { %v1307_v45 = vpop.xlane.xlu1 %1306 }
 0x3ca   : > { %v1308_v46 = vsub.f32 %v1304_v39, %v1307_v45 }
 0x3cc   : > { %v1309_v47 = vmul.f32 1.442695, %v1308_v46 }
 0x3ce   : > { %2898 = vpow2.f32 %v1309_v47 }
 0x3d4   : > { %v2899_v48 = vpop.eup %2898 }
 0x3d5   : > { %v1311_v49 = vsel %vm1283_vm11, %v2899_v48, 0.0 }
 0x3d6   : > { %1312 = vadd.xlane.f32.xlu2 %v1311_v49 }
 0x3ee   : > { %1498 = vrot.lane.b32.xlu2 %v1497_v52, %s3659_s24 }
 0x3f6   : > { %1493 = vrot.lane.b32.xlu2 %v1492_v55, %s3660_s17 }
 0x449   : > { %v1313_v57 = vpop.xlane.xlu2 %1312 }
 0x44a   : > { %2900 = vrcp.f32 %v1313_v57 }
 0x450   : > { %v2901_v58 = vpop.eup %2900 }
 0x451   : > { %v1315_v59 = vmul.f32 %v2901_v58, %v2899_v48  ;;  %v1499_v60 = vpop.permute.xlu2 %1498 }
 0x452   : > { %v1504_v63 = vsel %vm1283_vm11, %v1499_v60, 0  ;;  %v1836_v60 = vld [vmem:[#allocation3] sm:$0xf] }
 0x453   : > { %v1316_v62 = vpack.c.bf16 %v1315_v59, %v1315_v59 }
 0x455   : > { %2533 = vmatmul.msk.bf16.vlgmr.msra.gmra.mxu3 %vm1283_vm11, %v1316_v62  ;;  %v1843_v62 = vunpack.c.l.b16 %v1836_v60 }
 0x456   : > { %1513 = vmatpush.bf16.xpose.msra.mxu3 %v1504_v63 }
 0x457   : > { %v4136_v63 = vpack.c.b16 %v1843_v62, %v1843_v62 }
 0x459   : > { %v1494_v1 = vpop.permute.xlu2 %1493 }
 0x465   : > { %2534 = vmatmul.msk.bf16.vlgmr.msrb.gmra.mxu3 %vm1283_vm11, %v1348_v56  ;;  %v1764_v56 = vld [vmem:[#allocation3] sm:$0xf] }
 0x466   : > { %1717 = vmatpush.bf16.xpose.msrb.mxu3 %v1708_v13  ;;  %v1771_v57 = vunpack.c.l.b16 %v1764_v56 }
 0x468   : > { %v4132_v59 = vpack.c.b16 %v1771_v57, %v1771_v57  ;;  %v2883_v57 = vld [vmem:[#allocation14] ss:$0 sm:$0xff] }
 0x475   : > { %2538 = vmatmul.msk.bf16.vlgmr.msra.gmra.mxu3 %vm1283_vm11, %v1494_v1  ;;  %v1908_v1 = vld [vmem:[#allocation3] sm:$0xf] }
 0x4d8   : > { %v1335_v2 = vpop.f32.mrf.mxu3 }
 0x4d9   : > { %v1339_v3 = vpack.c.bf16 %v1335_v2, %v1335_v2  ;;  %v1915_v2 = vunpack.c.l.b16 %v1908_v1 }
 0x4db   : > { %1341 = vst.msk [vmem:[#allocation5] sm:$0xf] %vm1340_vm13, %v1339_v3  ;;  %v4140_v3 = vpack.c.b16 %v1915_v2, %v1915_v2  ;;  %v2884_v2 = vld [vmem:[#allocation24] ss:$0 sm:$0xff] }
 0x4e0   : > { %v1337_v5 = vpop.f32.mrf.mxu3 }
 0x4e8   : > { %v1369_v6 = vpop.f32.mrf.mxu3 }
 0x4e9   : > { %v1373_v7 = vmul.f32 0.35355338, %v1369_v6 }
 0x4eb   : > { %v1374_v9 = vadd.f32 %v1373_v7, %v1261_v34 }
 0x4ed   : > { %v1375_v10 = vsel %vm1283_vm11, %v1374_v9, -inf }
 0x4ee   : > { %1376 = vmax.xlane.f32.xlu1 %v1375_v10  ;;  %v2609_v10 = vld [vmem:[#allocation20] sm:$0xff] }
 0x4f0   : > { %v1371_v11 = vpop.f32.mrf.mxu3 }
 0x4f8   : > { %v1515_v14 = vpop.f32.mrf.mxu3 }
 0x4f9   : > { %v1519_v15 = vmul.f32 0.35355338, %v1515_v14 }
 0x4fb   : > { %v1520_v16 = vadd.f32 %v1519_v15, %v1261_v34 }
 0x4fd   : > { %v1521_v17 = vsel %vm1283_vm11, %v1520_v16, -inf }
 0x4fe   : > { %1522 = vmax.xlane.f32.xlu2 %v1521_v17 }
 0x500   : > { %v1517_v18 = vpop.f32.mrf.mxu3 }
 0x516   : > { %1460 = vrot.lane.b32.xlu2 %v4080_v4, %s3661_s18  ;;  %v1450_v4 = vpop.xlane.xlu0 %1449 }
 0x517   : > { %v1451_v32 = vsub.f32 %v4099_v40, %v1450_v4 }
 0x519   : > { %v1452_v33 = vmul.f32 1.442695, %v1451_v32 }
 0x561   : > { %v1377_v19 = vpop.xlane.xlu1 %1376 }
 0x562   : > { %v1378_v20 = vsub.f32 %v1374_v9, %v1377_v19  ;;  %v2610_v9 = vld [vmem:[#allocation20 + $0x8] sm:$0xff] }
 0x563   : > { %1587 = vmatpush.bf16.msra.mxu1 %v2610_v9 }
 0x564   : > { %v1379_v21 = vmul.f32 1.442695, %v1378_v20 }
 0x566   : > { %2902 = vpow2.f32 %v1379_v21 }
 0x567   : > { %1588 = vmatpush.bf16.msra.mxu1 %v2609_v10 }
 0x56c   : > { %v2903_v23 = vpop.eup %2902 }
 0x56d   : > { %v1381_v24 = vsel %vm1283_vm11, %v2903_v23, 0.0 }
 0x56e   : > { %1382 = vadd.xlane.f32.xlu1 %v1381_v24 }
 0x571   : > { %v1523_v25 = vpop.xlane.xlu2 %1522 }
 0x572   : > { %v1524_v26 = vsub.f32 %v1520_v16, %v1523_v25 }
 0x574   : > { %v1525_v27 = vmul.f32 1.442695, %v1524_v26 }
 0x576   : > { %2904 = vpow2.f32 %v1525_v27 }
 0x577   : > { %2906 = vpow2.f32 %v1452_v33  ;;  %v2612_v33 = vld [vmem:[#allocation23 + $0x8] sm:$0xff] }
 0x579   : > { %v1461_v28 = vpop.permute.xlu2 %1460 }
 0x57a   : > { %v1466_v29 = vsel %vm1322_vm10, %v1461_v28, 0 }
 0x57b   : > { %1475 = vmatpush.bf16.msrb.mxu2 %v1466_v29 }
 0x57c   : > { %v2905_v30 = vpop.eup %2904 }
 0x57d   : > { %v1527_v31 = vsel %vm1283_vm11, %v2905_v30, 0.0  ;;  %v2907_v34 = vpop.eup %2906 }
 0x57e   : > { %1528 = vadd.xlane.f32.xlu0 %v1527_v31  ;;  %v1454_v35 = vsel %vm1283_vm11, %v2907_v34, 0.0 }
 0x57f   : > { %1687 = vmatpush.bf16.msra.mxu2 %v2612_v33 }
 0x587   : > { %1387 = vrot.lane.b32.xlu1 %v4075_v61, %s3662_s22  ;;  %s4359_s22 = sld [smem:[#allocation75_spill]] }
 0x592   : > { %1533 = vrot.lane.b32.xlu0 %v1497_v52, %s3663_s12 }
 0x5b1   : > { %1455 = vadd.xlane.f32.xlu1 %v1454_v35 }
 0x5e1   : > { %v1383_v36 = vpop.xlane.xlu1 %1382 }
 0x5e2   : > { %2908 = vrcp.f32 %v1383_v36 }
 0x5e8   : > { %v2909_v37 = vpop.eup %2908 }
 0x5e9   : > { %v1385_v38 = vmul.f32 %v2909_v37, %v2903_v23  ;;  %v2881_v23 = vld [vmem:[#allocation21] ss:$0 sm:$0xff] }
 0x5eb   : > { %v1386_v42 = vpack.c.bf16 %v1385_v38, %v1385_v38 }
 0x5f1   : > { %v1529_v61 = vpop.xlane.xlu0 %1528 }
 0x5f2   : > { %2910 = vrcp.f32 %v1529_v61 }
 0x5f8   : > { %v2911_v43 = vpop.eup %2910 }
 0x5f9   : > { %v1388_v39 = vpop.permute.xlu1 %1387  ;;  %v1531_v45 = vmul.f32 %v2911_v43, %v2905_v30 }
 0x5fa   : > { %v1393_v41 = vsel %vm1322_vm10, %v1388_v39, 0 }
 0x5fb   : > { %1402 = vmatpush.bf16.msrb.mxu0 %v1393_v41  ;;  %v1532_v46 = vpack.c.bf16 %v1531_v45, %v1531_v45 }
 0x5fe   : > { %2535 = vmatmul.msk.bf16.vlgmr.msrb.gmra.mxu0 %vm1283_vm11, %v1386_v42 }
 0x604   : > { %v1534_v40 = vpop.permute.xlu0 %1533 }
 0x605   : > { %v1539_v44 = vsel %vm1322_vm10, %v1534_v40, 0 }
 0x606   : > { %1548 = vmatpush.bf16.msra.mxu0 %v1539_v44 }
 0x60e   : > { %2539 = vmatmul.msk.bf16.vlgmr.msra.gmra.mxu0 %vm1283_vm11, %v1532_v46 }
 0x624   : > { %v1456_v47 = vpop.xlane.xlu1 %1455 }
 0x625   : > { %2912 = vrcp.f32 %v1456_v47 }
 0x62b   : > { %v2913_v48 = vpop.eup %2912 }
 0x62c   : > { %v1458_v49 = vmul.f32 %v2913_v48, %v2907_v34  ;;  %v2611_v34 = vld [vmem:[#allocation23] sm:$0xff] }
 0x62d   : > { %1688 = vmatpush.bf16.msra.mxu2 %v2611_v34 }
 0x62e   : > { %v1459_v50 = vpack.c.bf16 %v1458_v49, %v1458_v49 }
 0x630   : > { %2537 = vmatmul.msk.bf16.vlgmr.msrb.gmra.mxu2 %vm1283_vm11, %v1459_v50  ;;  %v2882_v50 = vld [vmem:[#allocation12] ss:$0 sm:$0xff] }
 0x67b   : > { %v1404_v51 = vpop.f32.mrf.mxu0 }
 0x67c   : > { %v1408_v52 = vpack.c.bf16 %v1404_v51, %v1404_v51 }
 0x67e   : > { %1410 = vrot.lane.b32.xlu2 %v1408_v52, %s3664_s13 }
 0x683   : > { %v1406_v53 = vpop.f32.mrf.mxu0 }
 0x68b   : > { %v1550_v54 = vpop.f32.mrf.mxu0 }
 0x68c   : > { %v1554_v55 = vpack.c.bf16 %v1550_v54, %v1550_v54 }
 0x68e   : > { %1556 = vrot.lane.b32.xlu2 %v1554_v55, %s3665_s9 }
 0x693   : > { %v1552_v58 = vpop.f32.mrf.mxu0 }
 0x696   : > { %1773 = vrot.lane.b32.xlu2 %v4132_v59, %s3657_s23 }
 0x69e   : > { %1845 = vrot.lane.b32.xlu2 %v4136_v63, %s3658_s4 }
 0x6a6   : > { %1917 = vrot.lane.b32.xlu2 %v4140_v3, %s3660_s17 }
 0x6b3   : > { %v1477_v5 = vpop.f32.mrf.mxu2 }
 0x6b4   : > { %v1481_v6 = vpack.c.bf16 %v1477_v5, %v1477_v5 }
 0x6b6   : > { %1483 = vrot.lane.b32.xlu0 %v1481_v6, %s3666_s14 }
 0x6bb   : > { %v1479_v7 = vpop.f32.mrf.mxu2 }
 0x6d8   : > { %v1411_v11 = vpop.permute.xlu2 %1410 }
 0x6d9   : > { %1414 = vst.msk [vmem:[#allocation5] sm:$0xf] %vm1413_vm14, %v1411_v11 }
 0x6e8   : > { %v1557_v13 = vpop.permute.xlu2 %1556 }
 0x6f0   : > { %v1774_v14 = vpop.permute.xlu2 %1773 }
 0x6f1   : > { %v1779_v15 = vsel %vm1283_vm11, %v1774_v14, 0 }
 0x6f2   : > { %1788 = vmatpush.bf16.xpose.msrb.mxu1 %v1779_v15 }
 0x6f8   : > { %v1846_v16 = vpop.permute.xlu2 %1845 }
 0x6f9   : > { %v1851_v17 = vsel %vm1283_vm11, %v1846_v16, 0 }
 0x6fa   : > { %1860 = vmatpush.bf16.xpose.msra.mxu3 %v1851_v17 }
 0x700   : > { %v1918_v19 = vpop.permute.xlu2 %1917 }
 0x701   : > { %v1923_v21 = vsel %vm1283_vm11, %v1918_v19, 0 }
 0x728   : > { %v1484_v18 = vpop.permute.xlu0 %1483 }
 0x729   : > { %1487 = vst.msk [vmem:[#allocation5] sm:$0xf] %vm1486_vm15, %v1484_v18 }
 0x72a   : > { %1560 = vst.msk [vmem:[#allocation5] sm:$0xf] %vm1559_vm1, %v1557_v13 }
 0x731   : > { %v1561_v20 = vld [vmem:[#allocation5] sm:$0xf] }
 0x732   : > { %2548 = vmatmul.msk.bf16.vlgmr.msra.gmra.mxu1 %vm1112_vm0, %v1561_v20 }
 0x733   : > { %1932 = vmatpush.bf16.xpose.msra.mxu1 %v1923_v21 }
 0x7af   : > { %v1590_v24 = vpop.f32.mrf.mxu1 }
 0x7b0   : > { %v1591_v25 = vadd.f32 %v2881_v23, %v1590_v24  ;;  %v1262_v23 = vld [vmem:[%s4001_s15] sm:$0x3]  ;;  %s2155_s15 = scalar_lea.sflag [#allocation8], %s3990_s10 }
 0x7b2   : > { %v4153_v26 = vadd.f32 %v1591_v25, %v4053_v0  ;;  %v1263_v25 = vunpack.c.0.s8 %v1262_v23 }
 0x7b4   : > { %v1597_v27 = vsel %vm1112_vm0, %v4153_v26, 0.0 }
 0x7b5   : > { %1598 = vadd.xlane.f32.xlu0 %v1597_v27  ;;  %v1264_v27 = vcvt.s32.f32 %v1263_v25 }
 0x7b7   : > { %v1592_v28 = vpop.f32.mrf.mxu1 }
 0x7b8   : > { %v2531_v28 = vadd.f32 -1.0, %v1264_v27 }
 0x828   : > { %v1599_v29 = vpop.xlane.xlu0 %1598 }
 0x829   : > { %v1607_v30 = vmul.f32 %v1599_v29, %v4057_v8  ;;  %v1266_v29 = vmul.f32 1e+09, %v2531_v28 }
 0x82b   : > { %v1608_v31 = vsub.f32 %v4153_v26, %v1607_v30 }
 0x82d   : > { %v1609_v4 = vmul.f32 %v1608_v31, %v1608_v31  ;;  %v1624_v55 = vmul.f32 %v2882_v50, %v1608_v31 }
 0x82f   : > { %v1610_v32 = vsel %vm1112_vm0, %v1609_v4, 0.0 }
 0x830   : > { %1611 = vadd.xlane.f32.xlu1 %v1610_v32 }
 0x8a3   : > { %v1612_v35 = vpop.xlane.xlu1 %1611 }
 0x8a4   : > { %v1620_v0 = vmul.f32 %v1612_v35, %v4068_v22 }
 0x8a6   : > { %2914 = vrsqrt.f32 %v1620_v0  ;;  %vm1632_vm2 = vcmp.eq.f32.partialorder %v1620_v0, inf  ;;  %v1635_v40 = vand.u32 2147483648, %v1620_v0  ;;  %vm1634_vm3 = vcmp.eq.f32.partialorder %v1620_v0, 0.0 }
 0x8ac   : > { %v2915_v36 = vpop.eup %2914 }
 0x8ad   : > { %v1626_v37 = vmul.f32 %v2915_v36, %v1620_v0 }
 0x8af   : > { %v1627_v38 = vmul.f32 %v2915_v36, %v1626_v37 }
 0x8b1   : > { %v1628_v39 = vmul.f32 0.5, %v1627_v38 }
 0x8b3   : > { %v1629_v41 = vsub.f32 1.5, %v1628_v39 }
 0x8b5   : > { %v1630_v61 = vmul.f32 %v2915_v36, %v1629_v41 }
 0x8b7   : > { %v1631_v42 = vmul.f32 %v1630_v61, %v1620_v0 }
 0x8b9   : > { %v1633_v43 = vsel %vm1632_vm2, %v1620_v0, %v1631_v42 }
 0x8ba   : > { %v1636_v44 = vsel %vm1634_vm3, %v1635_v40, %v1633_v43 }
 0x8bb   : > { %v1637_v45 = vadd.f32 1e-06, %v1636_v44 }
 0x8bd   : > { %2916 = vrcp.f32 %v1637_v45  ;;  %v1649_v49 = vand.u32 2147483648, %v1637_v45  ;;  %v1647_v52 = vand.u32 2147483647, %v1637_v45  ;;  %vm1643_vm5 = vweird.f32 %v1637_v45 }
 0x8bf   : > { %v1650_v54 = vor.u32 1.1754944e-38, %v1649_v49  ;;  %vm1648_vm7 = vcmp.eq.f32.partialorder %v1647_v52, 8.507059e+37 }
 0x8c3   : > { %v2917_v46 = vpop.eup %2916 }
 0x8c4   : > { %v1639_v47 = vmul.f32 %v2917_v46, %v1637_v45  ;;  %vm1644_vm4 = vweird.f32 %v2917_v46 }
 0x8c5   : > { %vm1645_vm6 = vmor %vm1643_vm5, %vm1644_vm4 }
 0x8c6   : > { %v1640_v48 = vsub.f32 1.0, %v1639_v47 }
 0x8c8   : > { %v1641_v51 = vmul.f32 %v2917_v46, %v1640_v48 }
 0x8ca   : > { %v1642_v53 = vadd.f32 %v2917_v46, %v1641_v51 }
 0x8cc   : > { %v1646_v56 = vsel %vm1645_vm6, %v2917_v46, %v1642_v53  ;;  %v1738_v53 = vunpack.c.l.b16 %v4113_v12 }
 0x8cd   : > { %v1651_v58 = vsel %vm1648_vm7, %v1650_v54, %v1646_v56 }
 0x8ce   : > { %v1652_v60 = vmul.f32 %v1651_v58, %v1624_v55  ;;  %v1739_v54 = vpack.c.b16 %v1738_v53, %v1738_v53 }
 0x8d0   : > { %v1656_v62 = vadd.f32 %v2883_v57, %v1652_v60 }
 0x8d2   : > { %v1657_v1 = vpack.c.bf16 %v1656_v62, %v1656_v62 }
 0x8d4   : > { %2557 = vmatmul.msk.bf16.vlgmr.msra.gmra.mxu2 %vm1112_vm0, %v1657_v1 }
 0x957   : > { %v1690_v5 = vpop.f32.mrf.mxu2 }
 0x958   : > { %v1691_v6 = vadd.f32 %v2884_v2, %v1690_v5 }
 0x95a   : > { %v1694_v7 = vpack.c.bf16 %v1691_v6, %v1691_v6 }
 0x95c   : > { %1696 = vst.msk [vmem:[#allocation4] sm:$0xf] %vm1695_vm8, %v1694_v7 }
 0x95f   : > { %v1692_v9 = vpop.f32.mrf.mxu2 }
 0x963   : > { %v1702_v10 = vld [vmem:[#allocation4] sm:$0xf] }
 0x964   : > { %v1835_v11 = vld [vmem:[#allocation4] sm:$0xf]  ;;  %2558 = vmatmul.msk.bf16.vlgmr.msrb.gmra.mxu3 %vm1283_vm11, %v1702_v10 }
 0x965   : > { %v1763_v13 = vld [vmem:[#allocation4] sm:$0xf]  ;;  %v1838_v14 = vunpack.c.l.b16 %v1835_v11 }
 0x966   : > { %v1766_v15 = vunpack.c.l.b16 %v1763_v13  ;;  %v1907_v18 = vld [vmem:[#allocation4] sm:$0xf] }
 0x967   : > { %v1839_v16 = vpack.c.b16 %v1838_v14, %v1838_v14  ;;  %v1910_v19 = vunpack.c.l.b16 %v1907_v18 }
 0x968   : > { %v1767_v17 = vpack.c.b16 %v1766_v15, %v1766_v15 }
 0x969   : > { %1840 = vrot.lane.b32.xlu2 %v1839_v16, %s3658_s4  ;;  %v1911_v20 = vpack.c.b16 %v1910_v19, %v1910_v19  ;;  %s3528_s4 = scalar_lea.hbm %s4359_s22, 16 }
 0x96a   : > { %1768 = vrot.lane.b32.xlu1 %v1767_v17, %s3657_s23 }
 0x972   : > { %1912 = vrot.lane.b32.xlu1 %v1911_v20, %s3660_s17 }
 0x9c3   : > { %v1841_v21 = vpop.permute.xlu2 %1840 }
 0x9c4   : > { %2562 = vmatmul.msk.bf16.vlgmr.msra.gmra.mxu3 %vm1283_vm11, %v1841_v21 }
 0x9dc   : > { %v1769_v24 = vpop.permute.xlu1 %1768 }
 0x9dd   : > { %2560 = vmatmul.msk.bf16.vlgmr.msrb.gmra.mxu1 %vm1283_vm11, %v1769_v24 }
 0x9e4   : > { %v1913_v4 = vpop.permute.xlu1 %1912 }
 0x9e7   : > { %v1719_v30 = vpop.f32.mrf.mxu3 }
 0x9e8   : > { %v1723_v31 = vmul.f32 0.35355338, %v1719_v30 }
 0x9ea   : > { %v1724_v32 = vadd.f32 %v1723_v31, %v1266_v29 }
 0x9ec   : > { %v1725_v33 = vsel %vm1283_vm11, %v1724_v32, -inf }
 0x9ed   : > { %2564 = vmatmul.msk.bf16.vlgmr.msra.gmra.mxu1 %vm1283_vm11, %v1913_v4  ;;  %1726 = vmax.xlane.f32.xlu0 %v1725_v33 }
 0x9ef   : > { %v1721_v34 = vpop.f32.mrf.mxu3 }
 0xa47   : > { %v1862_v35 = vpop.f32.mrf.mxu3 }
 0xa48   : > { %v1866_v0 = vmul.f32 0.35355338, %v1862_v35 }
 0xa4a   : > { %v1867_v36 = vadd.f32 %v1866_v0, %v1266_v29 }
 0xa4c   : > { %v1868_v37 = vsel %vm1283_vm11, %v1867_v36, -inf }
 0xa4d   : > { %1869 = vmax.xlane.f32.xlu0 %v1868_v37 }
 0xa4f   : > { %v1864_v38 = vpop.f32.mrf.mxu3 }
 0xa5a   : > { %v1790_v39 = vpop.f32.mrf.mxu1 }
 0xa5b   : > { %v1794_v41 = vmul.f32 0.35355338, %v1790_v39 }
 0xa5d   : > { %v1795_v61 = vadd.f32 %v1794_v41, %v1266_v29 }
 0xa5f   : > { %v1796_v42 = vsel %vm1283_vm11, %v1795_v61, -inf }
 0xa60   : > { %1797 = vmax.xlane.f32.xlu2 %v1796_v42  ;;  %v1727_v43 = vpop.xlane.xlu0 %1726 }
 0xa61   : > { %v1728_v44 = vsub.f32 %v1724_v32, %v1727_v43 }
 0xa62   : > { %v1792_v40 = vpop.f32.mrf.mxu1 }
 0xa63   : > { %v1729_v45 = vmul.f32 1.442695, %v1728_v44 }
 0xa65   : > { %2918 = vpow2.f32 %v1729_v45  ;;  %v2614_v45 = vld [vmem:[#allocation29 + $0x8] sm:$0xff] }
 0xa66   : > { %2004 = vmatpush.bf16.msrb.mxu3 %v2614_v45 }
 0xa6a   : > { %v1934_v46 = vpop.f32.mrf.mxu1 }
 0xa6b   : > { %v1938_v47 = vmul.f32 0.35355338, %v1934_v46  ;;  %v2919_v48 = vpop.eup %2918 }
 0xa6c   : > { %v1731_v50 = vsel %vm1283_vm11, %v2919_v48, 0.0 }
 0xa6d   : > { %v1939_v49 = vadd.f32 %v1938_v47, %v1266_v29  ;;  %1732 = vadd.xlane.f32.xlu0 %v1731_v50  ;;  %v2613_v47 = vld [vmem:[#allocation29] sm:$0xff] }
 0xa6e   : > { %2005 = vmatpush.bf16.msrb.mxu3 %v2613_v47 }
 0xa6f   : > { %v1940_v51 = vsel %vm1283_vm11, %v1939_v49, -inf }
 0xa70   : > { %1941 = vmax.xlane.f32.xlu1 %v1940_v51  ;;  %v2885_v51 = vld [vmem:[#allocation30] ss:$0 sm:$0xff] }
 0xa72   : > { %v1936_v52 = vpop.f32.mrf.mxu1 }
 0xa78   : > { %1740 = vrot.lane.b32.xlu2 %v1739_v54, %s3655_s19  ;;  %s4358_s19 = sld [smem:[#allocation73_spill]] }
 0xa80   : > { %1880 = vrot.lane.b32.xlu2 %v4136_v63, %s3656_s0 }
 0xac0   : > { %v1870_v58 = vpop.xlane.xlu0 %1869 }
 0xac1   : > { %v1871_v16 = vsub.f32 %v1867_v36, %v1870_v58 }
 0xac3   : > { %v1872_v17 = vmul.f32 1.442695, %v1871_v16 }
 0xad3   : > { %v1798_v55 = vpop.xlane.xlu2 %1797 }
 0xad4   : > { %v1799_v56 = vsub.f32 %v1795_v61, %v1798_v55 }
 0xad6   : > { %v1800_v57 = vmul.f32 1.442695, %v1799_v56 }
 0xad8   : > { %2920 = vpow2.f32 %v1800_v57 }
 0xadb   : > { %v1741_v60 = vpop.permute.xlu2 %1740 }
 0xadc   : > { %v1746_v62 = vsel %vm1322_vm10, %v1741_v60, 0 }
 0xadd   : > { %1755 = vmatpush.bf16.msrb.mxu0 %v1746_v62 }
 0xade   : > { %v2921_v1 = vpop.eup %2920 }
 0xadf   : > { %v1802_v2 = vsel %vm1283_vm11, %v2921_v1, 0.0 }
 0xae0   : > { %1803 = vadd.xlane.f32.xlu0 %v1802_v2  ;;  %v1733_v12 = vpop.xlane.xlu0 %1732  ;;  %v2616_v2 = vld [vmem:[#allocation32 + $0x8] sm:$0xff] }
 0xae1   : > { %2922 = vrcp.f32 %v1733_v12  ;;  %v2615_v12 = vld [vmem:[#allocation32] sm:$0xff] }
 0xae3   : > { %v1881_v5 = vpop.permute.xlu2 %1880  ;;  %v1942_v6 = vpop.xlane.xlu1 %1941 }
 0xae4   : > { %v1886_v7 = vsel %vm1322_vm10, %v1881_v5, 0  ;;  %v1943_v63 = vsub.f32 %v1939_v49, %v1942_v6 }
 0xae5   : > { %1895 = vmatpush.bf16.msra.mxu0 %v1886_v7 }
 0xae6   : > { %v1944_v9 = vmul.f32 1.442695, %v1943_v63 }
 0xae7   : > { %v2923_v10 = vpop.eup %2922 }
 0xae8   : > { %2924 = vpow2.f32 %v1944_v9  ;;  %v1735_v11 = vmul.f32 %v2923_v10, %v2919_v48 }
 0xae9   : > { %2926 = vpow2.f32 %v1872_v17  ;;  %v2618_v17 = vld [vmem:[%s4358_s19 + $0x8] sm:$0xff] }
 0xaea   : > { %v1736_v13 = vpack.c.bf16 %v1735_v11, %v1735_v11 }
 0xaec   : > { %2559 = vmatmul.msk.bf16.vlgmr.msrb.gmra.mxu0 %vm1283_vm11, %v1736_v13  ;;  %v2619_v13 = vld [vmem:[%s4358_s19 + $0x10] sm:$0xff] }
 0xaed   : > { %2090 = vmatpush.bf16.msrb.mxu0 %v2616_v2 }
 0xaee   : > { %v2925_v14 = vpop.eup %2924 }
 0xaef   : > { %v1946_v15 = vsel %vm1283_vm11, %v2925_v14, 0.0  ;;  %v2927_v18 = vpop.eup %2926 }
 0xaf0   : > { %1947 = vadd.xlane.f32.xlu1 %v1946_v15  ;;  %v1874_v19 = vsel %vm1283_vm11, %v2927_v18, 0.0 }
 0xaf1   : > { %2091 = vmatpush.bf16.msrb.mxu0 %v2615_v12 }
 0xaf4   : > { %1808 = vrot.lane.b32.xlu0 %v4132_v59, %s3653_s11 }
 0xb09   : > { %1952 = vrot.lane.b32.xlu1 %v4140_v3, %s3659_s24  ;;  %s2602_s24 = sshll.u32 %s4352_s16, 3 }
 0xb0a   : > { %s2166_s12 = scalar_lea.hbm %s4359_s22, %s2602_s24 }
 0xb1e   : > { %1875 = vadd.xlane.f32.xlu0 %v1874_v19 }
 0xb53   : > { %v1804_v20 = vpop.xlane.xlu0 %1803 }
 0xb54   : > { %2928 = vrcp.f32 %v1804_v20 }
 0xb5a   : > { %v2929_v21 = vpop.eup %2928 }
 0xb5b   : > { %v1806_v23 = vmul.f32 %v2929_v21, %v2921_v1 }
 0xb5d   : > { %v1807_v27 = vpack.c.bf16 %v1806_v23, %v1806_v23 }
 0xb63   : > { %v1948_v28 = vpop.xlane.xlu1 %1947 }
 0xb64   : > { %2930 = vrcp.f32 %v1948_v28 }
 0xb66   : > { %v1809_v24 = vpop.permute.xlu0 %1808 }
 0xb67   : > { %v1814_v25 = vsel %vm1322_vm10, %v1809_v24, 0  ;;  %v2886_v24 = vld [vmem:[#allocation15] ss:$0 sm:$0xff] }
 0xb68   : > { %1823 = vmatpush.bf16.msrb.mxu2 %v1814_v25 }
 0xb69   : > { %v1757_v59 = vpop.f32.mrf.mxu0 }
 0xb6a   : > { %v1761_v3 = vpack.c.bf16 %v1757_v59, %v1757_v59  ;;  %v2931_v30 = vpop.eup %2930 }
 0xb6b   : > { %2561 = vmatmul.msk.bf16.vlgmr.msrb.gmra.mxu2 %vm1283_vm11, %v1807_v27  ;;  %v1950_v31 = vmul.f32 %v2931_v30, %v2925_v14  ;;  %v2887_v30 = vld [vmem:[#allocation17] ss:$0 sm:$0xff] }
 0xb6c   : > { %1762 = vst.msk [vmem:[#allocation5] sm:$0xf] %vm1340_vm13, %v1761_v3 }
 0xb6d   : > { %v1951_v33 = vpack.c.bf16 %v1950_v31, %v1950_v31 }
 0xb71   : > { %v1759_v29 = vpop.f32.mrf.mxu0 }
 0xb7b   : > { %v1953_v4 = vpop.permute.xlu1 %1952 }
 0xb7c   : > { %v1958_v32 = vsel %vm1322_vm10, %v1953_v4, 0 }
 0xb7d   : > { %1967 = vmatpush.bf16.msra.mxu2 %v1958_v32 }
 0xb80   : > { %2565 = vmatmul.msk.bf16.vlgmr.msra.gmra.mxu2 %vm1283_vm11, %v1951_v33 }
 0xb91   : > { %v1876_v34 = vpop.xlane.xlu0 %1875 }
 0xb92   : > { %2932 = vrcp.f32 %v1876_v34  ;;  %v2617_v34 = vld [vmem:[%s4358_s19] sm:$0xff] }
 0xb98   : > { %v2933_v35 = vpop.eup %2932 }
 0xb99   : > { %v1878_v0 = vmul.f32 %v2933_v35, %v2927_v18  ;;  %v2888_v35 = vld [vmem:[#allocation33] ss:$0 sm:$0xff] }
 0xb9b   : > { %v1879_v36 = vpack.c.bf16 %v1878_v0, %v1878_v0 }
 0xb9d   : > { %2563 = vmatmul.msk.bf16.vlgmr.msra.gmra.mxu0 %vm1283_vm11, %v1879_v36 }
 0xbee   : > { %v1825_v37 = vpop.f32.mrf.mxu2 }
 0xbef   : > { %v1829_v38 = vpack.c.bf16 %v1825_v37, %v1825_v37 }
 0xbf1   : > { %1831 = vrot.lane.b32.xlu2 %v1829_v38, %s3664_s13  ;;  %s1095_s13 = scalar_lea.vmem [#allocation36], %s2509_s28 }
 0xbf6   : > { %v1827_v39 = vpop.f32.mrf.mxu2 }
 0xc03   : > { %v1969_v41 = vpop.f32.mrf.mxu2 }
 0xc04   : > { %v1973_v61 = vpack.c.bf16 %v1969_v41, %v1969_v41  ;;  %v2889_v41 = vld [vmem:[#allocation35] ss:$0 sm:$0xff] }
 0xc06   : > { %1975 = vrot.lane.b32.xlu2 %v1973_v61, %s3665_s9  ;;  %s2168_s9 = sshll.u32 %s1095_s13, 4  ;;  %s2169_s9 = int_to_ptr.vmem [resolvable:$true] %s2168_s9 }
 0xc0b   : > { %v1971_v42 = vpop.f32.mrf.mxu2 }
 0xc1a   : > { %v1897_v40 = vpop.f32.mrf.mxu0 }
 0xc1b   : > { %v1901_v43 = vpack.c.bf16 %v1897_v40, %v1897_v40 }
 0xc1d   : > { %1903 = vrot.lane.b32.xlu1 %v1901_v43, %s3666_s14  ;;  %s2170_s14 = sshll.u32 %s2166_s12, 4  ;;  %s2171_s14 = int_to_ptr.hbm [resolvable:$true] %s2170_s14 }
 0xc1e   : > { %s3522_s11 = sshra.s32 %s2171_s14, 4  ;;  %s3523_s11 = int_to_ptr.hbm [resolvable:$true] %s3522_s11 }
 0xc1f   : > { %s3524_s16 = scalar_lea.hbm %s3523_s11, 8  ;;  %p3529_p11 = scmp.lt.s32.totalorder %s3523_s11, %s4359_s22 }
 0xc20   : > { %p3525_p1 = scmp.ne.s32.totalorder %s3523_s11, %s3524_s16  ;;  %p3530_p12 = scmp.lt.s32.totalorder %s3528_s4, %s3524_s16 }
 0xc22   : > { %v1899_v44 = vpop.f32.mrf.mxu0  ;;  %p3526_p9 = pnand %p3525_p1, %p3964_p5  ;;  %p3531_p13 = por %p3530_p12, %p3529_p11 }
 0xc24   : > { %p3527_p10 = pneg %p3526_p9 }
 0xc26   : > { %p3532_p0 = pnand %p3531_p13, %p3527_p10 }
 0xc4b   : > { %v1832_v46 = vpop.permute.xlu2 %1831 }
 0xc4c   : > { %1834 = vst.msk [vmem:[#allocation5] sm:$0xf] %vm1413_vm14, %v1832_v46 }
 0xc60   : > { %v1976_v49 = vpop.permute.xlu2 %1975 }
 0xc8f   : > { %v1904_v48 = vpop.permute.xlu1 %1903 }
 0xc90   : > { %1906 = vst.msk [vmem:[#allocation5] sm:$0xf] %vm1486_vm15, %v1904_v48  ;;  %vm2135_vm15 = vcmask 523264  }
 0xc91   : > { %1978 = vst.msk [vmem:[#allocation5] sm:$0xf] %vm1559_vm1, %v1976_v49 }
 0xc98   : > { %v1979_v50 = vld [vmem:[#allocation5] sm:$0xf] }
 0xc99   : > { %2574 = vmatmul.msk.bf16.vlgmr.msrb.gmra.mxu3 %vm1112_vm0, %v1979_v50 }
 0xd1c   : > { %v2007_v52 = vpop.f32.mrf.mxu3 }
 0xd1d   : > { %v2008_v53 = vadd.f32 %v2885_v51, %v2007_v52 }
 0xd1f   : > { %v4203_v54 = vadd.f32 %v2008_v53, %v4153_v26 }
 0xd21   : > { %v2014_v55 = vsel %vm1112_vm0, %v4203_v54, 0.0 }
 0xd22   : > { %2015 = vadd.xlane.f32.xlu1 %v2014_v55 }
 0xd24   : > { %v2009_v56 = vpop.f32.mrf.mxu3 }
 0xd95   : > { %v2016_v57 = vpop.xlane.xlu1 %2015 }
 0xd96   : > { %v2017_v58 = vmul.f32 %v2016_v57, %v4057_v8  ;;  %v2620_v8 = vld [vmem:[%s4358_s19 + $0x18] sm:$0xff] }
 0xd97   : > { %2143 = vmatpush.bf16.msrb.mxu1 %v2620_v8 }
 0xd98   : > { %v2018_v60 = vsub.f32 %v4203_v54, %v2017_v58 }
 0xd9a   : > { %v2019_v62 = vmul.f32 %v2018_v60, %v2018_v60  ;;  %v2027_v28 = vmul.f32 %v2886_v24, %v2018_v60 }
 0xd9b   : > { %2144 = vmatpush.bf16.msrb.mxu1 %v2619_v13 }
 0xd9c   : > { %v2020_v1 = vsel %vm1112_vm0, %v2019_v62, 0.0 }
 0xd9d   : > { %2021 = vadd.xlane.f32.xlu2 %v2020_v1 }
 0xd9f   : > { %2145 = vmatpush.bf16.msrb.mxu1 %v2618_v17 }
 0xda3   : > { %2146 = vmatpush.bf16.msrb.mxu1 %v2617_v34 }
 0xe10   : > { %v2022_v5 = vpop.xlane.xlu2 %2021 }
 0xe11   : > { %v2023_v26 = vmul.f32 %v2022_v5, %v4068_v22 }
 0xe13   : > { %2934 = vrsqrt.f32 %v2023_v26  ;;  %vm2035_vm9 = vcmp.eq.f32.partialorder %v2023_v26, inf  ;;  %v2038_v15 = vand.u32 2147483648, %v2023_v26  ;;  %vm2037_vm10 = vcmp.eq.f32.partialorder %v2023_v26, 0.0 }
 0xe19   : > { %v2935_v6 = vpop.eup %2934 }
 0xe1a   : > { %v2029_v7 = vmul.f32 %v2935_v6, %v2023_v26 }
 0xe1c   : > { %v2030_v63 = vmul.f32 %v2935_v6, %v2029_v7 }
 0xe1e   : > { %v2031_v9 = vmul.f32 0.5, %v2030_v63 }
 0xe20   : > { %v2032_v10 = vsub.f32 1.5, %v2031_v9 }
 0xe22   : > { %v2033_v11 = vmul.f32 %v2935_v6, %v2032_v10 }
 0xe24   : > { %v2034_v14 = vmul.f32 %v2033_v11, %v2023_v26 }
 0xe26   : > { %v2036_v22 = vsel %vm2035_vm9, %v2023_v26, %v2034_v14 }
 0xe27   : > { %v2039_v16 = vsel %vm2037_vm10, %v2038_v15, %v2036_v22 }
 0xe28   : > { %v2040_v18 = vadd.f32 1e-06, %v2039_v16 }
 0xe2a   : > { %2936 = vrcp.f32 %v2040_v18  ;;  %v2052_v23 = vand.u32 2147483648, %v2040_v18  ;;  %v2050_v27 = vand.u32 2147483647, %v2040_v18  ;;  %vm2046_vm12 = vweird.f32 %v2040_v18 }
 0xe2c   : > { %v2053_v3 = vor.u32 1.1754944e-38, %v2052_v23  ;;  %vm2051_vm14 = vcmp.eq.f32.partialorder %v2050_v27, 8.507059e+37 }
 0xe30   : > { %v2937_v19 = vpop.eup %2936 }
 0xe31   : > { %v2042_v20 = vmul.f32 %v2937_v19, %v2040_v18  ;;  %vm2047_vm11 = vweird.f32 %v2937_v19 }
 0xe32   : > { %vm2048_vm13 = vmor %vm2046_vm12, %vm2047_vm11 }
 0xe33   : > { %v2043_v21 = vsub.f32 1.0, %v2042_v20 }
 0xe35   : > { %v2044_v25 = vmul.f32 %v2937_v19, %v2043_v21 }
 0xe37   : > { %v2045_v59 = vadd.f32 %v2937_v19, %v2044_v25 }
 0xe39   : > { %v2049_v29 = vsel %vm2048_vm13, %v2937_v19, %v2045_v59 }
 0xe3a   : > { %v2054_v31 = vsel %vm2051_vm14, %v2053_v3, %v2049_v29 }
 0xe3b   : > { %v2055_v4 = vmul.f32 %v2054_v31, %v2027_v28 }
 0xe3d   : > { %v2059_v32 = vadd.f32 %v2887_v30, %v2055_v4 }
 0xe3f   : > { %v2060_v33 = vpack.c.bf16 %v2059_v32, %v2059_v32 }
 0xe41   : > { %2583 = vmatmul.msk.bf16.vlgmr.msrb.gmra.mxu0 %vm1112_vm0, %v2060_v33 }
 0xebe   : > { %v2093_v0 = vpop.f32.mrf.mxu0 }
 0xebf   : > { %v2094_v36 = vadd.f32 %v2888_v35, %v2093_v0 }
 0xec1   : > { %v2097_v37 = vmax.f32 %v2094_v36, 0.0 }
 0xec3   : > { %v2098_v38 = vpack.c.bf16 %v2097_v37, %v2097_v37 }
 0xec5   : > { %2600 = vmatmul.msk.bf16.vlgmr.msrb.gmra.mxu1 %vm2135_vm15, %v2098_v38 }
 0xec6   : > { %v2095_v39 = vpop.f32.mrf.mxu0 }
 0xf42   : > { %v2148_v61 = vpop.f32.mrf.mxu1 }
 0xf43   : > { %v2149_v42 = vadd.f32 %v2889_v41, %v2148_v61 }
 0xf45   : > { %v2152_v40 = vadd.f32 %v2149_v42, %v4203_v54 }
 0xf47   : > { %2153 = vst.msk [vmem:[%s1095_s13] sm:$0xff] %vm1112_vm0, %v2152_v40 }
 0xf48   : > { %3535 = shalt.err (!%p3532_p0)
}
 0xf49   : > { %2693 = dma.vmem_to_hbm [thread:$0]  (%p3964_p5), %s2169_s9, 128, %s2171_s14, %s2155_s15  }
 0xf4a   : > { %v2150_v43 = vpop.f32.mrf.mxu1 }
 0xf4b PF: > { %s4360_s10 = sld [smem:[#allocation49_spill]]  ;;  %p2755_p2 = pnand %p2484_p4, %p3972_p7 }
 0xf4d   : > { %p2756_p6 = pneg %p2755_p2 }
 0xf51   : > { %s2182_s5 = sand.u32 1, %s4360_s10  }
 0xf52   : > { %s2183_s28 = scalar_lea.sflag [#allocation8], %s2182_s5 }
 0xf53   : > { %3605 = dma.done.wait (%p2756_p6), %s2183_s28, 128  }
 0xf54   : > { %3607 = vsyncadd (%p2756_p6), %s2183_s28, 4294967168  ;;  %s51_s2 = sadd.s32 1, %s3630_s2   ;;  %s4361_s5 = smov %s3614_s26 }
 0xf55   : > { %p48_p8 = scmp.ge.s32.totalorder %s51_s2, 4   ;;  %s4362_s26 = smov %s3618_s27 }
 0xf56   : > { %s4363_s27 = smov %s3970_s25  ;;  %s4364_s28 = smov %s3626_s6 }
 0xf57   : > { %s4365_s6 = smov %s4367_s29  ;;  %50 = sbr.rel (!%p48_p8) target bundleno = 40 (0x28), region = 254 }
 0xf5c   :  { %2189 = vsyncpa [#allocation7], 1 }
 0xf5d   :  { %2191 = vsyncpa [#allocation7 + $0x1], 1 }
 0xf5e   :  { %2192 = vsyncpa [#allocation10], 1 }
 0xf5f   :  { %2194 = vsyncpa [#allocation10 + $0x1], 1 }
 0xf60   :  { %2195 = vsyncpa [#allocation13], 1 }
 0xf61   :  { %2196 = vsyncpa [#allocation16], 1 }
 0xf62   :  { %2197 = vsyncpa [#allocation19], 1 }
 0xf63   :  { %2198 = vsyncpa [#allocation22], 1 }
 0xf64   :  { %2199 = vsyncpa [#allocation25], 1 }
 0xf65   :  { %2200 = vsyncpa [#allocation28], 1 }
 0xf66   :  { %2201 = vsyncpa [#allocation31], 1 }
 0xf67   :  { %2202 = vsyncpa [#allocation34], 1 }
 0xf68   :  { %2203 = vsyncpa [#allocation8], 1 }
 0xf69   :  { %2205 = vsyncpa [#allocation8 + $0x1], 1 }

</bundles_post_ra>
